<compile_context>
chip_gen: v6e
topology: v6e:2x2x1
jax: 0.10.0
libtpu: 0.0.40
codegen_flags: <defaults>
</compile_context>

<pallas_src>
from functools import partial

import numpy as np
import jax
import jax.numpy as jnp
from jax.experimental import pallas as pl
from jax.experimental.pallas import tpu as pltpu

WS = 5  # window_size in the reference module


# ----------------------------------------------------------------------------
# Host-side constant construction (faithful replays of the torch code paths
# that are data-independent).
# ----------------------------------------------------------------------------
def split_overlay_map_np(grid):
    m, n = grid.shape
    visit = np.zeros((m, n), dtype=bool)
    result = []
    for i in range(m):
        for j in range(n):
            if not visit[i][j]:
                if grid[i][j] == 0:
                    visit[i][j] = True
                    continue
                queue = [[i, j]]
                top, left = float("inf"), float("inf")
                bot, right = float("-inf"), float("-inf")
                while queue:
                    i_cp, j_cp = queue.pop(0)
                    if 0 <= i_cp < m and 0 <= j_cp < n and grid[i_cp][j_cp] == 255:
                        top = min(i_cp, top)
                        left = min(j_cp, left)
                        bot = max(i_cp, bot)
                        right = max(j_cp, right)
                    if 0 <= i_cp < m and 0 <= j_cp < n and not visit[i_cp][j_cp]:
                        visit[i_cp][j_cp] = True
                        if grid[i_cp][j_cp] == 255:
                            queue += [[i_cp, j_cp + 1], [i_cp + 1, j_cp],
                                      [i_cp, j_cp - 1], [i_cp - 1, j_cp],
                                      [i_cp - 1, j_cp - 1], [i_cp - 1, j_cp + 1],
                                      [i_cp + 1, j_cp - 1], [i_cp + 1, j_cp + 1]]
                result.append([max(0, top), max(0, left), min(bot + 1, m), min(right + 1, n)])
    return result


def compute_point_mask_np(H, W):
    # density_map is identically zero (see header); topk of an all-zero tensor
    # -> indices [0..9] (ascending tie-break assumed).
    w_stride = W // 4
    h_stride = H // 4
    grid_idx = list(range(10))
    grid = np.zeros((4, 4), dtype=np.uint8)
    for item in grid_idx:
        grid[item // 4, item % 4] = 255
    result = np.array(split_overlay_map_np(grid), dtype=np.int64)
    result[:, 0::2] = np.clip(result[:, 0::2] * w_stride, 0, W)
    result[:, 1::2] = np.clip(result[:, 1::2] * h_stride, 0, H)
    result[:, 2] = result[:, 2] - result[:, 0]
    result[:, 3] = result[:, 3] - result[:, 1]
    mask = np.zeros((H, W), np.float32)
    for x, y, w, h in result:
        mask[y:y + h, x:x + w] = 1.0
    return mask


def _round_up(x, m):
    return ((x + m - 1) // m) * m


# ----------------------------------------------------------------------------
# Fused Pallas kernel: heads + masking + region_deformer + bilinear grid_sample
# ----------------------------------------------------------------------------
def fused_kernel(xf_ref, m_ref, w1_ref, t1_ref, w2_ref, b2_ref,
                 pool_ref, s2_ref, t2_ref, w3_ref, b3_ref,
                 e_ref, wxc_ref, wyc_ref, xq_ref, yq_ref,
                 y_ref, out_ref,
                 xm_sc, coef_sc, *, H, W):
    pj = pl.program_id(1)

    # ---- per-image work: only on the first output-pixel tile ----------------
    @pl.when(pj == 0)
    def _heads():
        x = xf_ref[0]                      # [C, HWp]
        m = m_ref[...]                     # [1, HWp]

        # distribution_head: 1x1 conv (BN scale folded into weight, shift in t1)
        # -> ReLU -> grouped 1x1 conv (block-diagonal weight).
        h = jnp.maximum(
            jnp.dot(w1_ref[...], x, preferred_element_type=jnp.float32) + t1_ref[...],
            0.0)
        y_ref[0] = jnp.dot(w2_ref[...], h, preferred_element_type=jnp.float32) + b2_ref[...]

        # point_mask(...) + feats  (in-place mutation -> 2x the masked tensor).
        xm = 2.0 * (x * m + (1.0 - m) * 1e-5)
        xm_sc[...] = xm                    # stays in VMEM for all pixel tiles

        # deformation_head: AvgPool(5,5) as 0/1 membership matmul (1/25 folded
        # into the BN scale) -> BN(folded) -> ReLU -> 1x1 conv to 8.
        pooled = jnp.dot(xm, pool_ref[...], preferred_element_type=jnp.float32)  # [C, HnWn]
        z = jnp.maximum(pooled * s2_ref[...] + t2_ref[...], 0.0)
        co = jnp.dot(w3_ref[...], z, preferred_element_type=jnp.float32) + b3_ref[...]

        # Closed-form window transforms (derived ONCE per image, not per tile):
        # T0 = s*[[cos(xr+yr), sin(xr+yr)], [-sin, cos]],  T1 = sx*Rx@ty + tx,
        # bottom row = [0,0,1] so the perspective divide is exactly a no-op.
        xr, yr = co[0:1], co[1:2]
        sx, sy = co[2:3], co[3:4]
        s = sx * sy
        cxy = jnp.cos(xr + yr)
        sxy = jnp.sin(xr + yr)
        cx = jnp.cos(xr)
        snx = jnp.sin(xr)
        a_w = s * cxy
        b_w = s * sxy
        t0_w = sx * (cx * co[6:7] + snx * co[7:8]) + co[4:5]
        t1_w = sx * (-snx * co[6:7] + cx * co[7:8]) + co[5:6]
        pad4 = jnp.zeros_like(co[0:4])
        # rows 0..3 = [a, b, t0, t1]; rows 4..7 unused (sublane padding only).
        coef_sc[...] = jnp.concatenate([a_w, b_w, t0_w, t1_w, pad4], axis=0)

    # ---- every tile: expand window coefficients -> sampling coordinates -----
    # One stacked matmul against the streamed window-membership tile E
    # ([HnWn, PT]) turns per-window coefficients into per-pixel values.
    cp = jnp.dot(coef_sc[...], e_ref[...], preferred_element_type=jnp.float32)  # [8, PT]
    a_p, b_p, t0_p, t1_p = cp[0:1], cp[1:2], cp[2:3], cp[3:4]
    wxc = wxc_ref[...]                     # [1, PT] base window x-coordinate
    wyc = wyc_ref[...]                     # [1, PT] base window y-coordinate
    gx = a_p * wxc + b_p * wyc + t0_p
    gy = -b_p * wxc + a_p * wyc + t1_p

    # grid_sample(align_corners=True): [-1, 1] grid -> absolute pixel coords.
    ix = (gx + 1.0) * (0.5 * (W - 1))      # [1, PT]
    iy = (gy + 1.0) * (0.5 * (H - 1))

    # Separable hat weights == bilinear with padding_mode='zeros'.  Padded
    # input rows carry xq/yq = -1e4 so they never contribute.
    wgt = (jnp.maximum(1.0 - jnp.abs(xq_ref[...] - ix), 0.0) *
           jnp.maximum(1.0 - jnp.abs(yq_ref[...] - iy), 0.0))       # [HWp, PT]
    out_ref[0] = jnp.dot(xm_sc[...], wgt, preferred_element_type=jnp.float32)


# ----------------------------------------------------------------------------
# Module builder
# ----------------------------------------------------------------------------
def build_distribution_et(dim, imgsz, num_classes, key):
    H, W = imgsz
    ws = WS
    assert H % ws == 0 and W % ws == 0, "imgsz must be a multiple of window_size=5"
    Hn, Wn = H // ws, W // ws
    C, NC = dim, num_classes
    NC4 = NC * 4
    HW = H * W
    HnWn = Hn * Wn
    HWp = _round_up(HW, 128)               # lane-dense padded pixel axis
    PT = 256 if HWp % 256 == 0 else 128    # output-pixel tile (multiple of 128)
    NP = HWp // PT
    eps = 1e-5

    ks = jax.random.split(key, 14)
    nrm = lambda k, shape, s=0.2: (s * jax.random.normal(k, shape)).astype(jnp.float32)

    # distribution_head parameters (Conv2d(dim, NC*4, 1) / BN / ReLU / grouped Conv2d)
    w1 = nrm(ks[0], (NC4, C))
    b1 = nrm(ks[1], (NC4,), 0.1)
    g1 = 1.0 + nrm(ks[2], (NC4,), 0.1)
    be1 = nrm(ks[3], (NC4,), 0.1)
    rm1 = nrm(ks[4], (NC4,), 0.1)
    rv1 = jnp.abs(nrm(ks[5], (NC4,), 0.3)) + 0.8
    w2 = nrm(ks[6], (NC, 4))                # grouped conv weight [NC, 4, 1, 1]
    b2 = nrm(ks[7], (NC,), 0.1)
    # deformation_head parameters (AvgPool / BN(dim) / ReLU / Conv2d(dim, 8, 1))
    g2 = 1.0 + nrm(ks[8], (C,), 0.1)
    be2 = nrm(ks[9], (C,), 0.1)
    rm2 = nrm(ks[10], (C,), 0.1)
    rv2 = jnp.abs(nrm(ks[11], (C,), 0.3)) + 0.8
    w3 = nrm(ks[12], (8, C))
    b3 = nrm(ks[13], (8,), 0.1)

    # Fold eval-mode BatchNorm into the conv weight (scale) and a shift.
    s1 = g1 / jnp.sqrt(rv1 + eps)
    t1 = (b1 - rm1) * s1 + be1
    w1s = w1 * s1[:, None]                  # scale folded host-side (no per-HW mul)
    s2 = g2 / jnp.sqrt(rv2 + eps)
    t2 = be2 - rm2 * s2
    s2p = s2 / float(ws * ws)               # AvgPool 1/25 folded into BN scale

    # Block-diagonal weight for the grouped 1x1 conv (groups=NC, 4 inputs each).
    w2bd = np.zeros((NC, NC4), np.float32)
    w2np = np.asarray(w2)
    for o in range(NC):
        w2bd[o, 4 * o:4 * (o + 1)] = w2np[o]
    w2bd = jnp.asarray(w2bd)

    # Pixel <-> window membership constants (lane-padded to HWp).
    p = np.arange(HW)
    py, px = p // W, p % W
    win = (py // ws) * Wn + (px // ws)
    pool01 = np.zeros((HWp, HnWn), np.float32)      # AvgPool as 0/1 matmul
    pool01[p, win] = 1.0
    expand = np.zeros((HnWn, HWp), np.float32)      # window -> pixel broadcast
    expand[win, p] = 1.0

    # Base window coordinates (same construction as the torch window_coords).
    base_h = np.arange(ws, dtype=np.float64) * 2.0 / (H - 1)
    base_h = base_h - base_h.mean()
    base_w = np.arange(ws, dtype=np.float64) * 2.0 / (W - 1)
    base_w = base_w - base_w.mean()
    wxc = np.zeros((1, HWp), np.float32)
    wyc = np.zeros((1, HWp), np.float32)
    wxc[0, :HW] = base_w[px % ws]
    wyc[0, :HW] = base_h[py % ws]

    # Per-input-pixel integer coordinates for the hat weights; padded rows are
    # pushed far away so they contribute zero weight.
    xq = np.full((HWp, 1), -1e4, np.float32)
    yq = np.full((HWp, 1), -1e4, np.float32)
    xq[:HW, 0] = px
    yq[:HW, 0] = py

    # point_mask rectangle mask (data-independent, see header notes).
    maskp = np.zeros((1, HWp), np.float32)
    maskp[0, :HW] = compute_point_mask_np(H, W).reshape(-1)

    pool01, expand = jnp.asarray(pool01), jnp.asarray(expand)
    wxc, wyc, xq, yq, maskp = map(jnp.asarray, (wxc, wyc, xq, yq, maskp))

    col = lambda v: jnp.asarray(v, jnp.float32).reshape(-1, 1)
    t1c, b2c, s2c, t2c, b3c = col(t1), col(b2), col(s2p), col(t2), col(b3)

    kern = partial(fused_kernel, H=H, W=W)

    def forward(feats):
        B = feats.shape[0]
        xf = feats.reshape(B, C, HW).astype(jnp.float32)
        xf = jnp.pad(xf, ((0, 0), (0, 0), (0, HWp - HW)))

        y_flat, out_flat = pl.pallas_call(
            kern,
            grid=(B, NP),
            in_specs=[
                pl.BlockSpec((1, C, HWp), lambda b, j: (b, 0, 0)),   # feats (fetched once per b)
                pl.BlockSpec((1, HWp), lambda b, j: (0, 0)),         # point mask
                pl.BlockSpec((NC4, C), lambda b, j: (0, 0)),         # w1 (BN-scaled)
                pl.BlockSpec((NC4, 1), lambda b, j: (0, 0)),         # t1
                pl.BlockSpec((NC, NC4), lambda b, j: (0, 0)),        # grouped conv (block-diag)
                pl.BlockSpec((NC, 1), lambda b, j: (0, 0)),          # b2
                pl.BlockSpec((HWp, HnWn), lambda b, j: (0, 0)),      # 0/1 pool membership
                pl.BlockSpec((C, 1), lambda b, j: (0, 0)),           # s2/25
                pl.BlockSpec((C, 1), lambda b, j: (0, 0)),           # t2
                pl.BlockSpec((8, C), lambda b, j: (0, 0)),           # w3
                pl.BlockSpec((8, 1), lambda b, j: (0, 0)),           # b3
                pl.BlockSpec((HnWn, PT), lambda b, j: (0, j)),       # window->pixel expand tile
                pl.BlockSpec((1, PT), lambda b, j: (0, j)),          # base window x coord tile
                pl.BlockSpec((1, PT), lambda b, j: (0, j)),          # base window y coord tile
                pl.BlockSpec((HWp, 1), lambda b, j: (0, 0)),         # input pixel x coord
                pl.BlockSpec((HWp, 1), lambda b, j: (0, 0)),         # input pixel y coord
            ],
            out_specs=[
                pl.BlockSpec((1, NC, HWp), lambda b, j: (b, 0, 0)),  # distribution head out
                pl.BlockSpec((1, C, PT), lambda b, j: (b, 0, j)),    # grid-sampled out (lane-dense)
            ],
            out_shape=[
                jax.ShapeDtypeStruct((B, NC, HWp), jnp.float32),
                jax.ShapeDtypeStruct((B, C, HWp), jnp.float32),
            ],
            scratch_shapes=[
                pltpu.VMEM((C, HWp), jnp.float32),    # masked feats, carried across tiles
                pltpu.VMEM((8, HnWn), jnp.float32),   # derived window coeffs [a,b,t0,t1,pad]
            ],
            compiler_params=pltpu.CompilerParams(
                dimension_semantics=("parallel", "arbitrary")),
        )(xf, maskp, w1s, t1c, w2bd, b2c, pool01, s2c, t2c, w3, b3c,
          expand, wxc, wyc, xq, yq)

        feats_y = y_flat[:, :, :HW].reshape(B, NC, H, W)
        out = out_flat[:, :, :HW].reshape(B, C, H, W)

        # point_distribution (kept for fidelity; its downstream use in
        # point_mask is data-independent -> the constant rectangle mask above).
        pr = jax.nn.sigmoid(feats_y[0])
        hm = 1.0 - jnp.max(pr, axis=0, keepdims=True)
        # epsilon guard only affects the (degenerate) all-zero case, where the
        # resulting pointmap (all False) matches the NaN-propagating reference.
        hm = (hm * (255.0 / jnp.maximum(jnp.max(hm), 1e-20)))[0]
        pointmap = (hm > (9.0 / 11.0 * 255.0)).astype(jnp.float32)

        return out, feats_y, pointmap

    return forward


if __name__ == "__main__":
    B, C, H, W = 2, 8, 20, 20              # H, W multiples of window_size=5 (and 4)
    num_classes = 12
    key = jax.random.PRNGKey(0)
    k_x, k_p = jax.random.split(key)
    feats = jax.random.normal(k_x, (B, C, H, W), dtype=jnp.float32)

    forward = jax.jit(build_distribution_et(dim=C, imgsz=(H, W),
                                            num_classes=num_classes, key=k_p))
    out, feats_y, pointmap = forward(feats)
    out = jax.block_until_ready(out)

    assert out.shape == (B, C, H, W)
    assert feats_y.shape == (B, num_classes, H, W)
    assert pointmap.shape == (H, W)
    assert bool(jnp.all(jnp.isfinite(out)))
    assert bool(jnp.all(jnp.isfinite(feats_y)))
    print("KERNEL_OK")
</pallas_src>

<mosaic_0001>
module attributes {stable_mosaic.version = 11 : i64} {
  func.func @fused_kernel(%arg0: i32, %arg1: i32, %arg2: memref<1x8x512xf32, #tpu.memory_space<vmem>>, %arg3: memref<1x512xf32, #tpu.memory_space<vmem>>, %arg4: memref<48x8xf32, #tpu.memory_space<vmem>>, %arg5: memref<48x1xf32, #tpu.memory_space<vmem>>, %arg6: memref<12x48xf32, #tpu.memory_space<vmem>>, %arg7: memref<12x1xf32, #tpu.memory_space<vmem>>, %arg8: memref<512x16xf32, #tpu.memory_space<vmem>>, %arg9: memref<8x1xf32, #tpu.memory_space<vmem>>, %arg10: memref<8x1xf32, #tpu.memory_space<vmem>>, %arg11: memref<8x8xf32, #tpu.memory_space<vmem>>, %arg12: memref<8x1xf32, #tpu.memory_space<vmem>>, %arg13: memref<16x256xf32, #tpu.memory_space<vmem>>, %arg14: memref<1x256xf32, #tpu.memory_space<vmem>>, %arg15: memref<1x256xf32, #tpu.memory_space<vmem>>, %arg16: memref<512x1xf32, #tpu.memory_space<vmem>>, %arg17: memref<512x1xf32, #tpu.memory_space<vmem>>, %arg18: memref<1x12x512xf32, #tpu.memory_space<vmem>>, %arg19: memref<1x8x256xf32, #tpu.memory_space<vmem>>, %arg20: memref<8x512xf32, #tpu.memory_space<vmem>>, %arg21: memref<8x16xf32, #tpu.memory_space<vmem>>) attributes {dimension_semantics = [#tpu.dimension_semantics<parallel>, #tpu.dimension_semantics<arbitrary>], iteration_bounds = array<i64: 2, 2>, scalar_prefetch = 0 : i64, scratch_operands = 2 : i64, tpu.core_type = #tpu.core_type<tc>, window_params = [{transform_indices = @transform_0, window_bounds = array<i64: 1, 8, 512>}, {pipeline_mode = #tpu.pipeline_mode<synchronous>, transform_indices = @transform_1, window_bounds = array<i64: 1, 512>}, {pipeline_mode = #tpu.pipeline_mode<synchronous>, transform_indices = @transform_2, window_bounds = array<i64: 48, 8>}, {pipeline_mode = #tpu.pipeline_mode<synchronous>, transform_indices = @transform_3, window_bounds = array<i64: 48, 1>}, {pipeline_mode = #tpu.pipeline_mode<synchronous>, transform_indices = @transform_4, window_bounds = array<i64: 12, 48>}, {pipeline_mode = #tpu.pipeline_mode<synchronous>, transform_indices = @transform_5, window_bounds = array<i64: 12, 1>}, {pipeline_mode = #tpu.pipeline_mode<synchronous>, transform_indices = @transform_6, window_bounds = array<i64: 512, 16>}, {pipeline_mode = #tpu.pipeline_mode<synchronous>, transform_indices = @transform_7, window_bounds = array<i64: 8, 1>}, {pipeline_mode = #tpu.pipeline_mode<synchronous>, transform_indices = @transform_8, window_bounds = array<i64: 8, 1>}, {pipeline_mode = #tpu.pipeline_mode<synchronous>, transform_indices = @transform_9, window_bounds = array<i64: 8, 8>}, {pipeline_mode = #tpu.pipeline_mode<synchronous>, transform_indices = @transform_10, window_bounds = array<i64: 8, 1>}, {transform_indices = @transform_11, window_bounds = array<i64: 16, 256>}, {transform_indices = @transform_12, window_bounds = array<i64: 1, 256>}, {transform_indices = @transform_13, window_bounds = array<i64: 1, 256>}, {pipeline_mode = #tpu.pipeline_mode<synchronous>, transform_indices = @transform_14, window_bounds = array<i64: 512, 1>}, {pipeline_mode = #tpu.pipeline_mode<synchronous>, transform_indices = @transform_15, window_bounds = array<i64: 512, 1>}, {transform_indices = @transform_16, window_bounds = array<i64: 1, 12, 512>}, {transform_indices = @transform_17, window_bounds = array<i64: 1, 8, 256>}]} {
    %c0_i32 = arith.constant 0 : i32
    %0 = arith.cmpi eq, %arg1, %c0_i32 : i32
    %1 = arith.extui %0 : i1 to i32
    %c0_i32_0 = arith.constant 0 : i32
    %2 = arith.cmpi ne, %1, %c0_i32_0 : i32
    scf.if %2 {
      %c0_27 = arith.constant 0 : index
      %c0_28 = arith.constant 0 : index
      %c0_29 = arith.constant 0 : index
      %54 = vector.load %arg2[%c0_27, %c0_28, %c0_29] : memref<1x8x512xf32, #tpu.memory_space<vmem>>, vector<1x8x512xf32>
      %55 = vector.shape_cast %54 : vector<1x8x512xf32> to vector<8x512xf32>
      %c0_30 = arith.constant 0 : index
      %c0_31 = arith.constant 0 : index
      %56 = vector.load %arg3[%c0_30, %c0_31] : memref<1x512xf32, #tpu.memory_space<vmem>>, vector<1x512xf32>
      %c0_32 = arith.constant 0 : index
      %c0_33 = arith.constant 0 : index
      %57 = vector.load %arg4[%c0_32, %c0_33] : memref<48x8xf32, #tpu.memory_space<vmem>>, vector<48x8xf32>
      %cst_34 = arith.constant dense<0.000000e+00> : vector<48x512xf32>
      %58 = tpu.matmul %57, %55, %cst_34 {dimension_numbers = #tpu.dot_dimension_numbers<[1], [0], [0], [1], [0, 0, 1, 1], [], []>} : vector<48x8xf32>, vector<8x512xf32>, vector<48x512xf32> -> vector<48x512xf32>
      %c0_35 = arith.constant 0 : index
      %c0_36 = arith.constant 0 : index
      %59 = vector.load %arg5[%c0_35, %c0_36] : memref<48x1xf32, #tpu.memory_space<vmem>>, vector<48x1xf32>
      %60 = vector.broadcast %59 : vector<48x1xf32> to vector<48x512xf32>
      %61 = arith.addf %58, %60 : vector<48x512xf32>
      %cst_37 = arith.constant 0.000000e+00 : f32
      %62 = vector.broadcast %cst_37 : f32 to vector<48x512xf32>
      %63 = arith.maximumf %61, %62 : vector<48x512xf32>
      %c0_38 = arith.constant 0 : index
      %c0_39 = arith.constant 0 : index
      %64 = vector.load %arg6[%c0_38, %c0_39] : memref<12x48xf32, #tpu.memory_space<vmem>>, vector<12x48xf32>
      %cst_40 = arith.constant dense<0.000000e+00> : vector<12x512xf32>
      %65 = tpu.matmul %64, %63, %cst_40 {dimension_numbers = #tpu.dot_dimension_numbers<[1], [0], [0], [1], [0, 0, 1, 1], [], []>} : vector<12x48xf32>, vector<48x512xf32>, vector<12x512xf32> -> vector<12x512xf32>
      %c0_41 = arith.constant 0 : index
      %c0_42 = arith.constant 0 : index
      %66 = vector.load %arg7[%c0_41, %c0_42] : memref<12x1xf32, #tpu.memory_space<vmem>>, vector<12x1xf32>
      %67 = vector.broadcast %66 : vector<12x1xf32> to vector<12x512xf32>
      %68 = arith.addf %65, %67 : vector<12x512xf32>
      %c0_43 = arith.constant 0 : index
      %c0_44 = arith.constant 0 : index
      %c0_45 = arith.constant 0 : index
      %69 = vector.load %arg18[%c0_43, %c0_44, %c0_45] : memref<1x12x512xf32, #tpu.memory_space<vmem>>, vector<1x12x512xf32>
      %70 = vector.shape_cast %69 : vector<1x12x512xf32> to vector<12x512xf32>
      %71 = vector.shape_cast %68 : vector<12x512xf32> to vector<1x12x512xf32>
      tpu.vector_store %arg18[%c0_43, %c0_44, %c0_45], %71 {strides = array<i32>} : memref<1x12x512xf32, #tpu.memory_space<vmem>>, vector<1x12x512xf32>,
      %72 = vector.broadcast %56 : vector<1x512xf32> to vector<8x512xf32>
      %73 = arith.mulf %55, %72 : vector<8x512xf32>
      %cst_46 = arith.constant 1.000000e+00 : f32
      %74 = vector.broadcast %cst_46 : f32 to vector<1x512xf32>
      %75 = arith.subf %74, %56 : vector<1x512xf32>
      %cst_47 = arith.constant 9.99999974E-6 : f32
      %76 = vector.broadcast %cst_47 : f32 to vector<1x512xf32>
      %77 = arith.mulf %75, %76 : vector<1x512xf32>
      %78 = vector.broadcast %77 : vector<1x512xf32> to vector<8x512xf32>
      %79 = arith.addf %73, %78 : vector<8x512xf32>
      %cst_48 = arith.constant 2.000000e+00 : f32
      %80 = vector.broadcast %cst_48 : f32 to vector<8x512xf32>
      %81 = arith.mulf %80, %79 : vector<8x512xf32>
      %c0_49 = arith.constant 0 : index
      %c0_50 = arith.constant 0 : index
      %82 = vector.load %arg20[%c0_49, %c0_50] : memref<8x512xf32, #tpu.memory_space<vmem>>, vector<8x512xf32>
      tpu.vector_store %arg20[%c0_49, %c0_50], %81 {strides = array<i32>} : memref<8x512xf32, #tpu.memory_space<vmem>>, vector<8x512xf32>,
      %c0_51 = arith.constant 0 : index
      %c0_52 = arith.constant 0 : index
      %83 = vector.load %arg8[%c0_51, %c0_52] : memref<512x16xf32, #tpu.memory_space<vmem>>, vector<512x16xf32>
      %cst_53 = arith.constant dense<0.000000e+00> : vector<8x16xf32>
      %84 = tpu.matmul %81, %83, %cst_53 {dimension_numbers = #tpu.dot_dimension_numbers<[1], [0], [0], [1], [0, 0, 1, 1], [], []>} : vector<8x512xf32>, vector<512x16xf32>, vector<8x16xf32> -> vector<8x16xf32>
      %c0_54 = arith.constant 0 : index
      %c0_55 = arith.constant 0 : index
      %85 = vector.load %arg9[%c0_54, %c0_55] : memref<8x1xf32, #tpu.memory_space<vmem>>, vector<8x1xf32>
      %86 = vector.broadcast %85 : vector<8x1xf32> to vector<8x16xf32>
      %87 = arith.mulf %84, %86 : vector<8x16xf32>
      %c0_56 = arith.constant 0 : index
      %c0_57 = arith.constant 0 : index
      %88 = vector.load %arg10[%c0_56, %c0_57] : memref<8x1xf32, #tpu.memory_space<vmem>>, vector<8x1xf32>
      %89 = vector.broadcast %88 : vector<8x1xf32> to vector<8x16xf32>
      %90 = arith.addf %87, %89 : vector<8x16xf32>
      %cst_58 = arith.constant 0.000000e+00 : f32
      %91 = vector.broadcast %cst_58 : f32 to vector<8x16xf32>
      %92 = arith.maximumf %90, %91 : vector<8x16xf32>
      %c0_59 = arith.constant 0 : index
      %c0_60 = arith.constant 0 : index
      %93 = vector.load %arg11[%c0_59, %c0_60] : memref<8x8xf32, #tpu.memory_space<vmem>>, vector<8x8xf32>
      %cst_61 = arith.constant dense<0.000000e+00> : vector<8x16xf32>
      %94 = tpu.matmul %93, %92, %cst_61 {dimension_numbers = #tpu.dot_dimension_numbers<[1], [0], [0], [1], [0, 0, 1, 1], [], []>} : vector<8x8xf32>, vector<8x16xf32>, vector<8x16xf32> -> vector<8x16xf32>
      %c0_62 = arith.constant 0 : index
      %c0_63 = arith.constant 0 : index
      %95 = vector.load %arg12[%c0_62, %c0_63] : memref<8x1xf32, #tpu.memory_space<vmem>>, vector<8x1xf32>
      %96 = vector.broadcast %95 : vector<8x1xf32> to vector<8x16xf32>
      %97 = arith.addf %94, %96 : vector<8x16xf32>
      %98 = vector.extract_strided_slice %97 {offsets = [0, 0], sizes = [1, 16], strides = [1, 1]} : vector<8x16xf32> to vector<1x16xf32>
      %99 = vector.extract_strided_slice %97 {offsets = [1, 0], sizes = [1, 16], strides = [1, 1]} : vector<8x16xf32> to vector<1x16xf32>
      %100 = vector.extract_strided_slice %97 {offsets = [2, 0], sizes = [1, 16], strides = [1, 1]} : vector<8x16xf32> to vector<1x16xf32>
      %101 = vector.extract_strided_slice %97 {offsets = [3, 0], sizes = [1, 16], strides = [1, 1]} : vector<8x16xf32> to vector<1x16xf32>
      %102 = arith.mulf %100, %101 : vector<1x16xf32>
      %103 = arith.addf %98, %99 : vector<1x16xf32>
      %104 = math.cos %103 : vector<1x16xf32>
      %105 = arith.addf %98, %99 : vector<1x16xf32>
      %106 = math.sin %105 : vector<1x16xf32>
      %107 = math.cos %98 : vector<1x16xf32>
      %108 = math.sin %98 : vector<1x16xf32>
      %109 = arith.mulf %102, %104 : vector<1x16xf32>
      %110 = arith.mulf %102, %106 : vector<1x16xf32>
      %111 = vector.extract_strided_slice %97 {offsets = [6, 0], sizes = [1, 16], strides = [1, 1]} : vector<8x16xf32> to vector<1x16xf32>
      %112 = arith.mulf %107, %111 : vector<1x16xf32>
      %113 = vector.extract_strided_slice %97 {offsets = [7, 0], sizes = [1, 16], strides = [1, 1]} : vector<8x16xf32> to vector<1x16xf32>
      %114 = arith.mulf %108, %113 : vector<1x16xf32>
      %115 = arith.addf %112, %114 : vector<1x16xf32>
      %116 = arith.mulf %100, %115 : vector<1x16xf32>
      %117 = vector.extract_strided_slice %97 {offsets = [4, 0], sizes = [1, 16], strides = [1, 1]} : vector<8x16xf32> to vector<1x16xf32>
      %118 = arith.addf %116, %117 : vector<1x16xf32>
      %cst_64 = arith.constant 0.000000e+00 : f32
      %119 = vector.broadcast %cst_64 : f32 to vector<1x16xf32>
      %120 = arith.subf %119, %108 : vector<1x16xf32>
      %121 = vector.extract_strided_slice %97 {offsets = [6, 0], sizes = [1, 16], strides = [1, 1]} : vector<8x16xf32> to vector<1x16xf32>
      %122 = arith.mulf %120, %121 : vector<1x16xf32>
      %123 = vector.extract_strided_slice %97 {offsets = [7, 0], sizes = [1, 16], strides = [1, 1]} : vector<8x16xf32> to vector<1x16xf32>
      %124 = arith.mulf %107, %123 : vector<1x16xf32>
      %125 = arith.addf %122, %124 : vector<1x16xf32>
      %126 = arith.mulf %100, %125 : vector<1x16xf32>
      %127 = vector.extract_strided_slice %97 {offsets = [5, 0], sizes = [1, 16], strides = [1, 1]} : vector<8x16xf32> to vector<1x16xf32>
      %128 = arith.addf %126, %127 : vector<1x16xf32>
      %cst_65 = arith.constant 0.000000e+00 : f32
      %129 = vector.broadcast %cst_65 : f32 to vector<4x16xf32>
      %130 = tpu.concatenate %109, %110, %118, %128, %129 in 0 : vector<1x16xf32>, vector<1x16xf32>, vector<1x16xf32>, vector<1x16xf32>, vector<4x16xf32> -> vector<8x16xf32>
      %c0_66 = arith.constant 0 : index
      %c0_67 = arith.constant 0 : index
      %131 = vector.load %arg21[%c0_66, %c0_67] : memref<8x16xf32, #tpu.memory_space<vmem>>, vector<8x16xf32>
      tpu.vector_store %arg21[%c0_66, %c0_67], %130 {strides = array<i32>} : memref<8x16xf32, #tpu.memory_space<vmem>>, vector<8x16xf32>,
    } else {
    }
    %c0 = arith.constant 0 : index
    %c0_1 = arith.constant 0 : index
    %3 = vector.load %arg21[%c0, %c0_1] : memref<8x16xf32, #tpu.memory_space<vmem>>, vector<8x16xf32>
    %c0_2 = arith.constant 0 : index
    %c0_3 = arith.constant 0 : index
    %4 = vector.load %arg13[%c0_2, %c0_3] : memref<16x256xf32, #tpu.memory_space<vmem>>, vector<16x256xf32>
    %cst = arith.constant dense<0.000000e+00> : vector<8x256xf32>
    %5 = tpu.matmul %3, %4, %cst {dimension_numbers = #tpu.dot_dimension_numbers<[1], [0], [0], [1], [0, 0, 1, 1], [], []>} : vector<8x16xf32>, vector<16x256xf32>, vector<8x256xf32> -> vector<8x256xf32>
    %6 = vector.extract_strided_slice %5 {offsets = [0, 0], sizes = [1, 256], strides = [1, 1]} : vector<8x256xf32> to vector<1x256xf32>
    %7 = vector.extract_strided_slice %5 {offsets = [1, 0], sizes = [1, 256], strides = [1, 1]} : vector<8x256xf32> to vector<1x256xf32>
    %8 = vector.extract_strided_slice %5 {offsets = [2, 0], sizes = [1, 256], strides = [1, 1]} : vector<8x256xf32> to vector<1x256xf32>
    %9 = vector.extract_strided_slice %5 {offsets = [3, 0], sizes = [1, 256], strides = [1, 1]} : vector<8x256xf32> to vector<1x256xf32>
    %c0_4 = arith.constant 0 : index
    %c0_5 = arith.constant 0 : index
    %10 = vector.load %arg14[%c0_4, %c0_5] : memref<1x256xf32, #tpu.memory_space<vmem>>, vector<1x256xf32>
    %c0_6 = arith.constant 0 : index
    %c0_7 = arith.constant 0 : index
    %11 = vector.load %arg15[%c0_6, %c0_7] : memref<1x256xf32, #tpu.memory_space<vmem>>, vector<1x256xf32>
    %12 = arith.mulf %6, %10 : vector<1x256xf32>
    %13 = arith.mulf %7, %11 : vector<1x256xf32>
    %14 = arith.addf %12, %13 : vector<1x256xf32>
    %15 = arith.addf %14, %8 : vector<1x256xf32>
    %cst_8 = arith.constant 0.000000e+00 : f32
    %16 = vector.broadcast %cst_8 : f32 to vector<1x256xf32>
    %17 = arith.subf %16, %7 : vector<1x256xf32>
    %18 = arith.mulf %17, %10 : vector<1x256xf32>
    %19 = arith.mulf %6, %11 : vector<1x256xf32>
    %20 = arith.addf %18, %19 : vector<1x256xf32>
    %21 = arith.addf %20, %9 : vector<1x256xf32>
    %cst_9 = arith.constant 1.000000e+00 : f32
    %22 = vector.broadcast %cst_9 : f32 to vector<1x256xf32>
    %23 = arith.addf %15, %22 : vector<1x256xf32>
    %cst_10 = arith.constant 9.500000e+00 : f32
    %24 = vector.broadcast %cst_10 : f32 to vector<1x256xf32>
    %25 = arith.mulf %23, %24 : vector<1x256xf32>
    %cst_11 = arith.constant 1.000000e+00 : f32
    %26 = vector.broadcast %cst_11 : f32 to vector<1x256xf32>
    %27 = arith.addf %21, %26 : vector<1x256xf32>
    %cst_12 = arith.constant 9.500000e+00 : f32
    %28 = vector.broadcast %cst_12 : f32 to vector<1x256xf32>
    %29 = arith.mulf %27, %28 : vector<1x256xf32>
    %c0_13 = arith.constant 0 : index
    %c0_14 = arith.constant 0 : index
    %30 = vector.load %arg16[%c0_13, %c0_14] : memref<512x1xf32, #tpu.memory_space<vmem>>, vector<512x1xf32>
    %31 = vector.broadcast %30 : vector<512x1xf32> to vector<512x256xf32>
    %32 = vector.broadcast %25 : vector<1x256xf32> to vector<512x256xf32>
    %33 = arith.subf %31, %32 : vector<512x256xf32>
    %34 = math.absf %33 : vector<512x256xf32>
    %cst_15 = arith.constant 1.000000e+00 : f32
    %35 = vector.broadcast %cst_15 : f32 to vector<512x256xf32>
    %36 = arith.subf %35, %34 : vector<512x256xf32>
    %cst_16 = arith.constant 0.000000e+00 : f32
    %37 = vector.broadcast %cst_16 : f32 to vector<512x256xf32>
    %38 = arith.maximumf %36, %37 : vector<512x256xf32>
    %c0_17 = arith.constant 0 : index
    %c0_18 = arith.constant 0 : index
    %39 = vector.load %arg17[%c0_17, %c0_18] : memref<512x1xf32, #tpu.memory_space<vmem>>, vector<512x1xf32>
    %40 = vector.broadcast %39 : vector<512x1xf32> to vector<512x256xf32>
    %41 = vector.broadcast %29 : vector<1x256xf32> to vector<512x256xf32>
    %42 = arith.subf %40, %41 : vector<512x256xf32>
    %43 = math.absf %42 : vector<512x256xf32>
    %cst_19 = arith.constant 1.000000e+00 : f32
    %44 = vector.broadcast %cst_19 : f32 to vector<512x256xf32>
    %45 = arith.subf %44, %43 : vector<512x256xf32>
    %cst_20 = arith.constant 0.000000e+00 : f32
    %46 = vector.broadcast %cst_20 : f32 to vector<512x256xf32>
    %47 = arith.maximumf %45, %46 : vector<512x256xf32>
    %48 = arith.mulf %38, %47 : vector<512x256xf32>
    %c0_21 = arith.constant 0 : index
    %c0_22 = arith.constant 0 : index
    %49 = vector.load %arg20[%c0_21, %c0_22] : memref<8x512xf32, #tpu.memory_space<vmem>>, vector<8x512xf32>
    %cst_23 = arith.constant dense<0.000000e+00> : vector<8x256xf32>
    %50 = tpu.matmul %49, %48, %cst_23 {dimension_numbers = #tpu.dot_dimension_numbers<[1], [0], [0], [1], [0, 0, 1, 1], [], []>} : vector<8x512xf32>, vector<512x256xf32>, vector<8x256xf32> -> vector<8x256xf32>
    %c0_24 = arith.constant 0 : index
    %c0_25 = arith.constant 0 : index
    %c0_26 = arith.constant 0 : index
    %51 = vector.load %arg19[%c0_24, %c0_25, %c0_26] : memref<1x8x256xf32, #tpu.memory_space<vmem>>, vector<1x8x256xf32>
    %52 = vector.shape_cast %51 : vector<1x8x256xf32> to vector<8x256xf32>
    %53 = vector.shape_cast %50 : vector<8x256xf32> to vector<1x8x256xf32>
    tpu.vector_store %arg19[%c0_24, %c0_25, %c0_26], %53 {strides = array<i32>} : memref<1x8x256xf32, #tpu.memory_space<vmem>>, vector<1x8x256xf32>,
    return
  }
  func.func @transform_0(%arg0: i32, %arg1: i32) -> (i32, i32, i32) {
    %c0_i32 = arith.constant 0 : i32
    %c0_i32_0 = arith.constant 0 : i32
    %c0_i32_1 = arith.constant 0 : i32
    return %arg0, %c0_i32, %c0_i32_0 : i32, i32, i32
  }
  func.func @transform_1(%arg0: i32, %arg1: i32) -> (i32, i32) {
    %c0_i32 = arith.constant 0 : i32
    %c0_i32_0 = arith.constant 0 : i32
    %c0_i32_1 = arith.constant 0 : i32
    return %c0_i32, %c0_i32_0 : i32, i32
  }
  func.func @transform_2(%arg0: i32, %arg1: i32) -> (i32, i32) {
    %c0_i32 = arith.constant 0 : i32
    %c0_i32_0 = arith.constant 0 : i32
    %c0_i32_1 = arith.constant 0 : i32
    return %c0_i32, %c0_i32_0 : i32, i32
  }
  func.func @transform_3(%arg0: i32, %arg1: i32) -> (i32, i32) {
    %c0_i32 = arith.constant 0 : i32
    %c0_i32_0 = arith.constant 0 : i32
    %c0_i32_1 = arith.constant 0 : i32
    return %c0_i32, %c0_i32_0 : i32, i32
  }
  func.func @transform_4(%arg0: i32, %arg1: i32) -> (i32, i32) {
    %c0_i32 = arith.constant 0 : i32
    %c0_i32_0 = arith.constant 0 : i32
    %c0_i32_1 = arith.constant 0 : i32
    return %c0_i32, %c0_i32_0 : i32, i32
  }
  func.func @transform_5(%arg0: i32, %arg1: i32) -> (i32, i32) {
    %c0_i32 = arith.constant 0 : i32
    %c0_i32_0 = arith.constant 0 : i32
    %c0_i32_1 = arith.constant 0 : i32
    return %c0_i32, %c0_i32_0 : i32, i32
  }
  func.func @transform_6(%arg0: i32, %arg1: i32) -> (i32, i32) {
    %c0_i32 = arith.constant 0 : i32
    %c0_i32_0 = arith.constant 0 : i32
    %c0_i32_1 = arith.constant 0 : i32
    return %c0_i32, %c0_i32_0 : i32, i32
  }
  func.func @transform_7(%arg0: i32, %arg1: i32) -> (i32, i32) {
    %c0_i32 = arith.constant 0 : i32
    %c0_i32_0 = arith.constant 0 : i32
    %c0_i32_1 = arith.constant 0 : i32
    return %c0_i32, %c0_i32_0 : i32, i32
  }
  func.func @transform_8(%arg0: i32, %arg1: i32) -> (i32, i32) {
    %c0_i32 = arith.constant 0 : i32
    %c0_i32_0 = arith.constant 0 : i32
    %c0_i32_1 = arith.constant 0 : i32
    return %c0_i32, %c0_i32_0 : i32, i32
  }
  func.func @transform_9(%arg0: i32, %arg1: i32) -> (i32, i32) {
    %c0_i32 = arith.constant 0 : i32
    %c0_i32_0 = arith.constant 0 : i32
    %c0_i32_1 = arith.constant 0 : i32
    return %c0_i32, %c0_i32_0 : i32, i32
  }
  func.func @transform_10(%arg0: i32, %arg1: i32) -> (i32, i32) {
    %c0_i32 = arith.constant 0 : i32
    %c0_i32_0 = arith.constant 0 : i32
    %c0_i32_1 = arith.constant 0 : i32
    return %c0_i32, %c0_i32_0 : i32, i32
  }
  func.func @transform_11(%arg0: i32, %arg1: i32) -> (i32, i32) {
    %c0_i32 = arith.constant 0 : i32
    %c0_i32_0 = arith.constant 0 : i32
    return %c0_i32, %arg1 : i32, i32
  }
  func.func @transform_12(%arg0: i32, %arg1: i32) -> (i32, i32) {
    %c0_i32 = arith.constant 0 : i32
    %c0_i32_0 = arith.constant 0 : i32
    return %c0_i32, %arg1 : i32, i32
  }
  func.func @transform_13(%arg0: i32, %arg1: i32) -> (i32, i32) {
    %c0_i32 = arith.constant 0 : i32
    %c0_i32_0 = arith.constant 0 : i32
    return %c0_i32, %arg1 : i32, i32
  }
  func.func @transform_14(%arg0: i32, %arg1: i32) -> (i32, i32) {
    %c0_i32 = arith.constant 0 : i32
    %c0_i32_0 = arith.constant 0 : i32
    %c0_i32_1 = arith.constant 0 : i32
    return %c0_i32, %c0_i32_0 : i32, i32
  }
  func.func @transform_15(%arg0: i32, %arg1: i32) -> (i32, i32) {
    %c0_i32 = arith.constant 0 : i32
    %c0_i32_0 = arith.constant 0 : i32
    %c0_i32_1 = arith.constant 0 : i32
    return %c0_i32, %c0_i32_0 : i32, i32
  }
  func.func @transform_16(%arg0: i32, %arg1: i32) -> (i32, i32, i32) {
    %c0_i32 = arith.constant 0 : i32
    %c0_i32_0 = arith.constant 0 : i32
    %c0_i32_1 = arith.constant 0 : i32
    return %arg0, %c0_i32, %c0_i32_0 : i32, i32, i32
  }
  func.func @transform_17(%arg0: i32, %arg1: i32) -> (i32, i32, i32) {
    %c0_i32 = arith.constant 0 : i32
    %c0_i32_0 = arith.constant 0 : i32
    return %arg0, %c0_i32, %arg1 : i32, i32, i32
  }
}

</mosaic_0001>

<bundles_post_ra>
// kernel: forward.1
= control target key start
LH: loop header
LB: loop body
LE: loop exit
PB: predicated region body
PF: predicated region fallthrough
CT: control target
= control target key end

     0   :  { %s7041_s0 = inlined_call_operand.vmem [shape: f32[2,8,512], index: 0, kind: input, shape index: {}]   ;;  %s7042_s1 = inlined_call_operand.vmem [shape: f32[1,512], index: 1, kind: input, shape index: {}]   ;;  %s7043_s2 = inlined_call_operand.vmem [shape: f32[48,8], index: 2, kind: input, shape index: {}]   ;;  %s7044_s3 = inlined_call_operand.vmem [shape: f32[48,1], index: 3, kind: input, shape index: {}]   ;;  %s7045_s4 = inlined_call_operand.vmem [shape: f32[12,48], index: 4, kind: input, shape index: {}]   ;;  %s7046_s5 = inlined_call_operand.vmem [shape: f32[12,1], index: 5, kind: input, shape index: {}]   ;;  %s7047_s6 = inlined_call_operand.vmem [shape: f32[512,16], index: 6, kind: input, shape index: {}]   ;;  %s7048_s7 = inlined_call_operand.vmem [shape: f32[8,1], index: 7, kind: input, shape index: {}]   ;;  %s7049_s8 = inlined_call_operand.vmem [shape: f32[8,1], index: 8, kind: input, shape index: {}]   ;;  %s7050_s9 = inlined_call_operand.vmem [shape: f32[8,8], index: 9, kind: input, shape index: {}]   ;;  %s7051_s10 = inlined_call_operand.vmem [shape: f32[8,1], index: 10, kind: input, shape index: {}]   ;;  %s7052_s11 = inlined_call_operand.vmem [shape: f32[16,512], index: 11, kind: input, shape index: {}]   ;;  %s7053_s12 = inlined_call_operand.vmem [shape: f32[1,512], index: 12, kind: input, shape index: {}]   ;;  %s7054_s13 = inlined_call_operand.vmem [shape: f32[1,512], index: 13, kind: input, shape index: {}]   ;;  %s7055_s14 = inlined_call_operand.vmem [shape: f32[512,1], index: 14, kind: input, shape index: {}]   ;;  %s7056_s15 = inlined_call_operand.hbm [shape: f32[512,1], index: 15, kind: input, shape index: {}]   ;;  %s7057_s16 = inlined_call_operand.vmem [shape: f32[2,12,512], index: 16, kind: output, shape index: {0}]   ;;  %s7058_s17 = inlined_call_operand.vmem [shape: f32[2,8,512], index: 17, kind: output, shape index: {1}]  }
   0x1   :  { %7138 = sst [smem:[#allocation97_spill]] %s7041_s0 }
   0x2   :  { %7139 = sst [smem:[#allocation98_spill]] %s7042_s1 }
   0x3   :  { %7140 = sst [smem:[#allocation99_spill]] %s7045_s4 }
   0x4   :  { %7141 = sst [smem:[#allocation100_spill]] %s7046_s5 }
   0x5   :  { %7142 = sst [smem:[#allocation101_spill]] %s7047_s6 }
   0x6   :  { %7143 = sst [smem:[#allocation102_spill]] %s7050_s9 }
   0x7   :  { %7144 = sst [smem:[#allocation103_spill]] %s7051_s10 }
   0x8   :  { %7145 = sst [smem:[#allocation104_spill]] %s7052_s11 }
   0x9   :  { %7146 = sst [smem:[#allocation105_spill]] %s7055_s14 }
   0xa   :  { %7147 = sst [smem:[#allocation106_spill]] %s7056_s15 }
   0xb   :  { %23 = vsyncpa [#allocation6], 0  ;;  %s4814_s24 = smov 0   ;;  %s4816_s25 = smov 0  }
   0xc   :  { %s4818_s26 = smov 0   ;;  %s4820_s27 = smov 0  }
   0xd   :  { %s4822_s28 = smov 0   ;;  %s4824_s29 = smov 0  }
   0xe   :  { %s4826_s0 = smov 0  }
   0xf LB: > { %7148 = sst [smem:[#allocation8_spill]] %s4688_s25  ;;  %s4387_s30 = sadd.s32 4294967295, %s4708_s0   ;;  %s4708_s0 = sphi %s4826_s0, %s29_s0   ;;  %s4704_s29 = sphi %s4824_s29, %s7516_s29   ;;  %s4700_s28 = sphi %s4822_s28, %s7515_s28   ;;  %s4696_s27 = sphi %s4820_s27, %s7514_s27   ;;  %s4692_s26 = sphi %s4818_s26, %s7513_s26   ;;  %s4688_s25 = sphi %s4816_s25, %s7512_s25   ;;  %s4684_s24 = sphi %s4814_s24, %s7511_s24  }
  0x10   : > { %7149 = sst [smem:[#allocation9_spill]] %s4700_s28  ;;  %s38_s18 = sadd.s32 1, %s4700_s28 }
  0x11   : > { %7150 = sst [smem:[#allocation10_spill]] %s4704_s29  ;;  %p39_p0 = scmp.ge.s32.totalorder %s38_s18, 2 }
  0x12   : > { %7151 = sst [smem:[#allocation11_spill]] %s4708_s0  ;;  %s41_s19 = sadd.s32 1, %s4704_s29 }
  0x13   : > { %s284_s1 = sadd.s32 1, %s4688_s25  ;;  %p291_p1 = scmp.ne.s32.totalorder %s4688_s25, %s4684_s24 }
  0x14   : > { %s7518_s18 = smov (%p39_p0, %s38_s18), 0  ;;  %s7520_s19 = smov (!%p39_p0, %s41_s19), %s4704_s29 }
  0x15   : > { %7152 = sst [smem:[#allocation12_spill]] %s7518_s18  ;;  %s281_s20 = ssub.s32 %s4700_s28, %s7518_s18 }
  0x16   : > { %p292_p2 = scmp.eq.s32.totalorder %s4708_s0, 0  ;;  %p43_p3 = scmp.ge.s32.totalorder %s7520_s19, 2 }
  0x17   : > { %p282_p4 = scmp.eq.s32.totalorder %s281_s20, 0  ;;  %p4389_p6 = scmp.ge.s32.totalorder %s4708_s0, 1 }
  0x18   : > { %p4861_p5 = por %p292_p2, %p291_p1  ;;  %s7522_s19 = smov (%p43_p3, %s7520_s19), 0 }
  0x19   : > { %7154 = sst [smem:[#allocation13_spill]] %s7522_s19  ;;  %p456_p7 = scmp.lt.s32.totalorder %s4708_s0, 5 }
  0x1a   : > { %s4869_s22 = scalar_select %p282_p4, %s4688_s25, %s284_s1  }
  0x1b   : > { %p4872_p8 = scmp.eq.s32.totalorder %s4387_s30, 0  ;;  %p4876_p9 = pnand %p4389_p6, %p456_p7 }
  0x1c   : > { %7155 = sst [smem:[#allocation14_spill]] %s4869_s22  ;;  %s4710_s20 = smov [#allocation5]  }
  0x1d   : > { %s501_s29 = sshll.u32 %s4710_s20, 4  ;;  %p4536_p10 = pneg %p4876_p9  ;;  %s502_s29 = int_to_ptr.vmem [resolvable:$true] %s501_s29 }
  0x1e   : > { %s4635_s1 = scalar_lea.vmem %s502_s29, 8192  ;;  %p4643_p2 = scmp.lt.s32.totalorder %s502_s29, %s502_s29 }
  0x1f   : > { %p4537_p11 = pnand %p4872_p8, %p4536_p10  ;;  %p4636_p13 = scmp.ne.s32.totalorder %s502_s29, %s4635_s1 }
  0x20   : > { %p4644_p3 = scmp.lt.s32.totalorder %s4635_s1, %s4635_s1 }
  0x21   : > { %p4626_p12 = pneg %p4537_p11 }
  0x22   : > { %p4645_p4 = por %p4644_p3, %p4643_p2 }
  0x23   : > { %p4638_p0 = pnand %p4636_p13, %p4626_p12 }
  0x25   : > { %p4639_p1 = pneg %p4638_p0 }
  0x27   : > { %p4646_p6 = pnand %p4645_p4, %p4639_p1 }
  0x29   : > { %4649 = shalt.err (!%p4646_p6)
}
  0x2a   : > { %s4711_s30 = smov 128   ;;  %s4712_s19 = smov 8  }
  0x2b   : > { %s7158_s15 = sld [smem:[#allocation106_spill]]  ;;  %p4391_p7 = scmp.ge.s32.totalorder %s4708_s0, 4 }
  0x2d   : > { %511 = sbr.rel (%p4391_p7) target bundleno = 62 (0x3e), region = 64 }
  0x31   : > { %4539 = dma.hbm_to_vmem [thread:$0]  (!%p4537_p11), %s7158_s15, 8192, %s502_s29, [#allocation6], %s4711_s30, %s4711_s30, %s4712_s19  }
  0x32   : > { %522 = sbr.rel (!%p4861_p5) target bundleno = 62 (0x3e), region = 72  ;;  %s524_s20 = sand.u32 (%p4861_p5), 1, %s4688_s25  }
  0x33   : > { %s4444_s9 = sshll.u32 (%p4861_p5), %s4700_s28, 4  ;;  %s4392_s1 = sshll.u32 (%p4861_p5), %s524_s20, 5 }
  0x34   : > { %s7159_s11 = sld [smem:[#allocation104_spill]] (%p4861_p5)  ;;  %s526_s14 = scalar_lea.vmem (%p4861_p5), [#allocation4], %s4392_s1 }
  0x3a   : > { %s529_s10 = scalar_lea.vmem %s7159_s11, %s4444_s9 }
  0x3b   : > { %v542_v0 = vld [vmem:[%s529_s10] sm:$0xff]  ;;  %v544_v1 = vld [vmem:[%s529_s10 + $0x8] sm:$0xff] }
  0x3c   : > { %v546_v2 = vld [vmem:[%s529_s10 + $0x20] sm:$0xff]  ;;  %543 = vst [vmem:[%s526_s14] sm:$0xff] %v542_v0  ;;  %545 = vst [vmem:[%s526_s14 + $0x8] sm:$0xff] %v544_v1  ;;  %v548_v3 = vld [vmem:[%s529_s10 + $0x28] sm:$0xff] }
  0x3d   : > { %547 = vst [vmem:[%s526_s14 + $0x10] sm:$0xff] %v546_v2  ;;  %549 = vst [vmem:[%s526_s14 + $0x18] sm:$0xff] %v548_v3 }
  0x3e PF: > { %574 = sbr.rel (%p4876_p9) target bundleno = 1585 (0x631), region = 103 }
  0x43   : > { %s577_s29 = sand.u32 1, %s4684_s24  }
  0x44   : > { %s4396_s19 = sshll.u32 %s577_s29, 5 }
  0x45   : > { %s4898_s4 = scalar_lea.vmem [#allocation4], %s4396_s19 }
  0x46   : > { %7160 = sst [smem:[#allocation15_spill]] %s4898_s4 }
  0x47   : > { %4679 = dma.done.wait (%p4872_p8), [#allocation6], 8192  }
  0x48   : > { %4681 = vsyncadd (%p4872_p8), [#allocation6], 4294959104  ;;  %p654_p5 = scmp.lt.s32.totalorder %s4696_s27, 1  ;;  %s4400_s6 = sshll.u32 %s4692_s26, 1 }
  0x49   : > { %p661_p10 = scmp.lt.s32.totalorder %s4400_s6, 3  ;;  %s7161_s21 = sld [smem:[#allocation97_spill]] }
  0x4a   : > { %s7524_s27 = smov (!%p654_p5, %s4696_s27), 1  ;;  %p4407_p8 = scmp.ne.s32.totalorder %s4692_s26, 0 }
  0x4b   : > { %s7526_s6 = smov (!%p661_p10, %s4400_s6), 3  ;;  %s4445_s9 = sshll.u32 %s7524_s27, 5 }
  0x4c   : > { %s4446_s10 = sshll.u32 %s7524_s27, 6  ;;  %s663_s20 = scalar_lea.vmem %s7053_s12, %s7526_s6 }
  0x4d   : > { %s668_s29 = scalar_lea.vmem %s7054_s13, %s7526_s6  ;;  %s4923_s15 = scalar_lea.vmem %s7057_s16, %s4446_s10 }
  0x4e   : > { %s4405_s28 = sshll.u32 %s7524_s27, 2  ;;  %688 = sbr.rel (%p4407_p8) target bundleno = 866 (0x362), region = 115 }
  0x4f   : > { %s658_s22 = scalar_lea.vmem %s7161_s21, %s4445_s9  ;;  %s681_s25 = sadd.s32 %s4405_s28, %s7526_s6 }
  0x50   : > { %s4406_s0 = sshll.u32 %s681_s25, 3  ;;  %s7162_s21 = sld [smem:[#allocation98_spill]] (!%p4407_p8) }
  0x51   : > { %s4929_s9 = scalar_lea.vmem %s7058_s17, %s4406_s0  ;;  %s7163_s23 = sld [smem:[#allocation100_spill]] (!%p4407_p8) }
  0x52   : > { %s7164_s24 = sld [smem:[#allocation103_spill]] (!%p4407_p8) }
  0x53   : > { %v690_v4 = vld [vmem:[%s658_s22 + $0x8] sm:$0xff]  ;;  %v1165_v6 = vlaneseq  ;;  %v692_v7 = vld [vmem:[%s658_s22 + $0x18] sm:$0xff]  ;;  %v689_v9 = vld [vmem:[%s658_s22] sm:$0xff]  ;;  %vm736_vm0 = vcmask 64512   ;;  %v4713_v13 = vmov 0.0   ;;  %v4714_v25 = vmov 0  }
  0x54   : > { %785 = vmatprep.subr.mxu0 %v690_v4  ;;  %886 = vmatprep.subr.mxu1 %v692_v7  ;;  %v691_v10 = vld [vmem:[%s658_s22 + $0x10] sm:$0xff]  ;;  %v694_v11 = vld [vmem:[%s7043_s2] sm:$0xff]  ;;  %v703_v19 = vld [vmem:[%s7044_s3 + $0x18] sm:$0xff]  ;;  %s7165_s5 = sld [smem:[#allocation99_spill]]  ;;  %vm995_vm1 = vcmask 392192   ;;  %vm4715_vm2 = vmmov 0  }
  0x55   : > { %v1166_v12 = vshrl.u32 %v1165_v6, 7  ;;  %786 = vmatpush1.msra.mxu0 %v689_v9  ;;  %819 = vmatprep.mubr.f32.mxu0 %v4713_v13  ;;  %v695_v20 = vld [vmem:[%s7043_s2 + $0x8] sm:$0xff]  ;;  %v702_v33 = vld [vmem:[%s7044_s3 + $0x10] sm:$0xff]  ;;  %v704_v41 = vld [vmem:[%s7044_s3 + $0x20] sm:$0xff]  ;;  %s7166_s28 = sld [smem:[#allocation101_spill]] }
  0x56   : > { %v693_v5 = vld [vmem:[%s7162_s21] sm:$0xf]  ;;  %887 = vmatpush1.msra.mxu1 %v691_v10  ;;  %920 = vmatprep.mubr.f32.mxu1 %v4713_v13  ;;  %v705_v32 = vld [vmem:[%s7044_s3 + $0x28] sm:$0xff]  ;;  %v696_v36 = vld [vmem:[%s7043_s2 + $0x10] sm:$0xff]  ;;  %s7168_s11 = sld [smem:[#allocation102_spill]] }
  0x57   : > { %v1189_v8 = vsub.f32 1.0, %v693_v5  ;;  %v1171_v15 = vsub.s32 1, %v1166_v12  ;;  %v1179_v16 = vsub.s32 3, %v1166_v12  ;;  %v1167_v17 = vsub.s32 0, %v1166_v12  ;;  %4408 = vmatmul.mubr.msk.f32.vlgmr.msra.gmra.mxu0 %vm736_vm0, %v694_v11  ;;  %4414 = vmatmul.mubr.msk.f32.vlgmr.msra.gmra.mxu1 %vm736_vm0, %v694_v11  ;;  %v700_v42 = vld [vmem:[%s7044_s3] sm:$0xff]  ;;  %v697_v45 = vld [vmem:[%s7043_s2 + $0x18] sm:$0xff] }
  0x58   : > { %v1175_v18 = vsub.s32 2, %v1166_v12  ;;  %825 = vmatprep.mubr.f32.mxu0 %v4713_v13  ;;  %926 = vmatprep.mubr.f32.mxu1 %v4713_v13  ;;  %v701_v46 = vld [vmem:[%s7044_s3 + $0x8] sm:$0xff]  ;;  %v1435_v47 = vld [vmem:[%s7049_s8] sm:$0xff] }
  0x59   : > { %v1190_v14 = vmul.f32 1e-05, %v1189_v8  ;;  %v1172_v21 = vrot.slane %v693_v5, %v1171_v15  ;;  %v1180_v23 = vrot.slane %v693_v5, %v1179_v16  ;;  %4613 = vset.pattern.permute.xlu1 %v4714_v25  ;;  %v1168_v26 = vrot.slane %v693_v5, %v1167_v17  ;;  %4612 = vset.pattern.permute.xlu0 %v4714_v25  ;;  %v698_v48 = vld [vmem:[%s7043_s2 + $0x20] sm:$0xff]  ;;  %v699_v51 = vld [vmem:[%s7043_s2 + $0x28] sm:$0xff] }
  0x5a   : > { %v1176_v28 = vrot.slane %v693_v5, %v1175_v18  ;;  %723 = vperm.xlu1 %4613, %v703_v19   ;;  %733 = vperm.xlu0 %4612, %v705_v32   ;;  %v1428_v49 = vld [vmem:[%s7048_s7] sm:$0xff]  ;;  %v984_v53 = vld [vmem:[%s7163_s23 + $0x8] sm:$0xf] }
  0x5b   : > { %v1199_v22 = vrot.slane %v1190_v14, %v1171_v15  ;;  %v1207_v24 = vrot.slane %v1190_v14, %v1179_v16  ;;  %v1195_v27 = vrot.slane %v1190_v14, %v1167_v17  ;;  %v1203_v29 = vrot.slane %v1190_v14, %v1175_v18  ;;  %4409 = vmatmul.mubr.msk.f32.gmra.mxu0 %vm736_vm0, %v695_v20  ;;  %v983_v50 = vld [vmem:[%s7163_s23] sm:$0xff]  ;;  %s7167_s4 = smov %s7166_s28 }
  0x5c   : > { %v1186_v30 = vmul.f32 %v1172_v21, %v690_v4  ;;  %v1188_v31 = vmul.f32 %v1180_v23, %v692_v7  ;;  %4415 = vmatmul.mubr.msk.f32.gmra.mxu1 %vm736_vm0, %v695_v20  ;;  %v1185_v34 = vmul.f32 %v1168_v26, %v689_v9  ;;  %v1187_v35 = vmul.f32 %v1176_v28, %v691_v10  ;;  %v1444_v52 = vld [vmem:[%s7164_s24] sm:$0xff] }
  0x5d   : > { %831 = vmatprep.mubr.f32.mxu0 %v4713_v13  ;;  %932 = vmatprep.mubr.f32.mxu1 %v4713_v13 }
  0x5e   : > { %v1213_v37 = vadd.f32 %v1199_v22, %v1186_v30  ;;  %v1215_v38 = vadd.f32 %v1207_v24, %v1188_v31  ;;  %v1212_v39 = vadd.f32 %v1195_v27, %v1185_v34  ;;  %v1214_v40 = vadd.f32 %v1203_v29, %v1187_v35  ;;  %718 = vperm.xlu1 %4613, %v702_v33  }
  0x5f   : > { %4410 = vmatmul.mubr.msk.f32.gmra.mxu0 %vm736_vm0, %v696_v36  ;;  %728 = vperm.xlu0 %4612, %v704_v41  }
  0x60   : > { %4416 = vmatmul.mubr.msk.f32.gmra.mxu1 %vm736_vm0, %v696_v36  ;;  %v4971_v43 = vmul.f32 2.0, %v1212_v39  ;;  %v4973_v44 = vmul.f32 2.0, %v1214_v40  ;;  %837 = vmatprep.mubr.f32.mxu0 %v4713_v13  ;;  %v5018_v54 = vmul.f32 2.0, %v1213_v37  ;;  %v5020_v55 = vmul.f32 2.0, %v1215_v38 }
  0x61   : > { %938 = vmatprep.mubr.f32.mxu1 %v4713_v13 }
  0x62   : > { %1220 = vst [vmem:[#allocation2 + $0x10] sm:$0xff] %v4971_v43  ;;  %1222 = vst [vmem:[#allocation2 + $0x18] sm:$0xff] %v4973_v44  ;;  %708 = vperm.xlu1 %4613, %v700_v42  }
  0x63   : > { %4411 = vmatmul.mubr.msk.f32.gmra.mxu0 %vm736_vm0, %v697_v45  ;;  %713 = vperm.xlu0 %4612, %v701_v46   ;;  %1221 = vst [vmem:[#allocation2] sm:$0xff] %v5018_v54  ;;  %1223 = vst [vmem:[#allocation2 + $0x8] sm:$0xff] %v5020_v55 }
  0x64   : > { %4417 = vmatmul.mubr.msk.f32.gmra.mxu1 %vm736_vm0, %v697_v45  ;;  %843 = vmatprep.mubr.f32.mxu0 %v4713_v13 }
  0x65   : > { %944 = vmatprep.mubr.f32.mxu1 %v4713_v13 }
  0x66   : > { %1438 = vperm.xlu1 %4613, %v1435_v47  }
  0x67   : > { %4412 = vmatmul.mubr.msk.f32.gmra.mxu0 %vm736_vm0, %v698_v48  ;;  %1431 = vperm.xlu0 %4612, %v1428_v49  }
  0x68   : > { %4418 = vmatmul.mubr.msk.f32.gmra.mxu1 %vm736_vm0, %v698_v48  ;;  %849 = vmatprep.mubr.f32.mxu0 %v4713_v13 }
  0x69   : > { %950 = vmatprep.mubr.f32.mxu1 %v4713_v13 }
  0x6a   : > { %987 = vperm.xlu1 %4613, %v983_v50  }
  0x6b   : > { %4413 = vmatmul.mubr.msk.f32.gmra.mxu0 %vm736_vm0, %v699_v51  ;;  %1447 = vperm.xlu0 %4612, %v1444_v52  }
  0x6c   : > { %4419 = vmatmul.mubr.msk.f32.gmra.mxu1 %vm736_vm0, %v699_v51  ;;  %1066 = vmatprep.mubr.f32.mxu0 %v4713_v13 }
  0x6d   : > { %1143 = vmatprep.mubr.f32.mxu1 %v4713_v13 }
  0x6f   : > { %992 = vperm.xlu0 %4612, %v984_v53  }
  0xd5   : > { %v734_v8 = vpop.permute.xlu0 %733  ;;  %v724_v11 = vpop.permute.xlu1 %723 }
  0xd9   : > { %v719_v22 = vpop.permute.xlu1 %718 }
  0xda   : > { %v729_v17 = vpop.permute.xlu0 %728 }
  0xdd   : > { %v709_v48 = vpop.permute.xlu1 %708 }
  0xde   : > { %v714_v37 = vpop.permute.xlu0 %713 }
 0x117   : > { %v5024_v56 = vpop.f32.mrf.mxu0  ;;  %v5026_v57 = vpop.f32.mrf.mxu1 }
 0x119   : > { %v5028_v58 = vpop.f32.mrf.mxu0  ;;  %v5030_v59 = vpop.f32.mrf.mxu1 }
 0x11b   : > { %v827_v60 = vpop.f32.mrf.mxu0 }
 0x11c   : > { %v928_v61 = vpop.f32.mrf.mxu1  ;;  %v828_v53 = vadd.f32 %v827_v60, %v714_v37 }
 0x11d   : > { %v829_v62 = vpop.f32.mrf.mxu0 }
 0x11e   : > { %v930_v63 = vpop.f32.mrf.mxu1  ;;  %v830_v49 = vadd.f32 %v829_v62, %v714_v37  ;;  %v822_v62 = vadd.f32 %v5024_v56, %v709_v48 }
 0x11f   : > { %v833_v0 = vpop.f32.mrf.mxu0  ;;  %v931_v50 = vadd.f32 %v930_v63, %v714_v37  ;;  %v923_v63 = vadd.f32 %v5026_v57, %v709_v48  ;;  %v981_v57 = vld [vmem:[%s7165_s5] sm:$0xff] }
 0x120   : > { %v934_v1 = vpop.f32.mrf.mxu1  ;;  %v834_v42 = vadd.f32 %v833_v0, %v719_v22  ;;  %v824_v0 = vadd.f32 %v5028_v58, %v709_v48  ;;  %v962_v60 = vmax.f32 %v830_v49, 0.0  ;;  %v1279_v49 = vld [vmem:[%s7167_s4 + $0x1b8] sm:$0xff] }
 0x121   : > { %v835_v2 = vpop.f32.mrf.mxu0  ;;  %v935_v45 = vadd.f32 %v934_v1, %v719_v22  ;;  %v925_v1 = vadd.f32 %v5030_v59, %v709_v48  ;;  %v959_v56 = vmax.f32 %v923_v63, 0.0  ;;  %v1247_v48 = vld [vmem:[%s7167_s4 + $0xb8] sm:$0xff]  ;;  %v1228_v63 = vld [vmem:[%s7167_s4 + $0x20] sm:$0xff] }
 0x122   : > { %v936_v3 = vpop.f32.mrf.mxu1  ;;  %v836_v38 = vadd.f32 %v835_v2, %v719_v22  ;;  %v929_v2 = vadd.f32 %v928_v61, %v714_v37  ;;  %v964_v61 = vmax.f32 %v931_v50, 0.0  ;;  %v958_v59 = vmax.f32 %v824_v0, 0.0  ;;  %v1266_v37 = vld [vmem:[%s7167_s4 + $0x150] sm:$0xff]  ;;  %v1231_v50 = vld [vmem:[%s7167_s4 + $0x38] sm:$0xff]  ;;  %v1277_v0 = vld [vmem:[%s7167_s4 + $0x1a8] sm:$0xff] }
 0x123   : > { %v839_v4 = vpop.f32.mrf.mxu0  ;;  %v937_v39 = vadd.f32 %v936_v3, %v719_v22  ;;  %v1253_v22 = vld [vmem:[%s7167_s4 + $0xe8] sm:$0xff] }
 0x124   : > { %v940_v5 = vpop.f32.mrf.mxu1  ;;  %v840_v33 = vadd.f32 %v839_v4, %v724_v11  ;;  %v963_v58 = vmax.f32 %v929_v2, 0.0  ;;  %v1230_v2 = vld [vmem:[%s7167_s4 + $0x30] sm:$0xff] }
 0x125   : > { %v841_v6 = vpop.f32.mrf.mxu0  ;;  %v941_v34 = vadd.f32 %v940_v5, %v724_v11  ;;  %v966_v5 = vmax.f32 %v836_v38, 0.0  ;;  %v1249_v38 = vld [vmem:[%s7167_s4 + $0xc8] sm:$0xff] }
 0x126   : > { %v942_v7 = vpop.f32.mrf.mxu1  ;;  %v842_v29 = vadd.f32 %v841_v6, %v724_v11  ;;  %v969_v3 = vmax.f32 %v840_v33, 0.0  ;;  %v968_v6 = vmax.f32 %v937_v39, 0.0  ;;  %v1267_v33 = vld [vmem:[%s7167_s4 + $0x158] sm:$0xff]  ;;  %v1281_v39 = vld [vmem:[%s7167_s4 + $0x1c8] sm:$0xff] }
 0x127   : > { %v845_v9 = vpop.f32.mrf.mxu0  ;;  %v943_v30 = vadd.f32 %v942_v7, %v724_v11  ;;  %v971_v4 = vmax.f32 %v941_v34, 0.0  ;;  %v965_v7 = vmax.f32 %v834_v42, 0.0  ;;  %v957_v11 = vmax.f32 %v822_v62, 0.0  ;;  %v1250_v34 = vld [vmem:[%s7167_s4 + $0xd0] sm:$0xff]  ;;  %v1248_v42 = vld [vmem:[%s7167_s4 + $0xc0] sm:$0xff] }
 0x128   : > { %v946_v10 = vpop.f32.mrf.mxu1  ;;  %v846_v27 = vadd.f32 %v845_v9, %v729_v17  ;;  %v970_v51 = vmax.f32 %v842_v29, 0.0  ;;  %v961_v9 = vmax.f32 %v828_v53, 0.0  ;;  %v1268_v29 = vld [vmem:[%s7167_s4 + $0x160] sm:$0xff]  ;;  %v1278_v53 = vld [vmem:[%s7167_s4 + $0x1b0] sm:$0xff] }
 0x129   : > { %v847_v12 = vpop.f32.mrf.mxu0  ;;  %v947_v28 = vadd.f32 %v946_v10, %v729_v17  ;;  %v972_v52 = vmax.f32 %v943_v30, 0.0  ;;  %v960_v10 = vmax.f32 %v925_v1, 0.0  ;;  %v1251_v30 = vld [vmem:[%s7167_s4 + $0xd8] sm:$0xff]  ;;  %v1229_v1 = vld [vmem:[%s7167_s4 + $0x28] sm:$0xff]  ;;  %v1276_v62 = vld [vmem:[%s7167_s4 + $0x1a0] sm:$0xff] }
 0x12a   : > { %v948_v14 = vpop.f32.mrf.mxu1  ;;  %v848_v23 = vadd.f32 %v847_v12, %v729_v17  ;;  %v973_v46 = vmax.f32 %v846_v27, 0.0  ;;  %v1255_v12 = vld [vmem:[%s7166_s28 + $0xf8] sm:$0xff]  ;;  %v1284_v27 = vld [vmem:[%s7167_s4 + $0x1e0] sm:$0xff] }
 0x12b   : > { %v851_v15 = vpop.f32.mrf.mxu0  ;;  %v949_v24 = vadd.f32 %v948_v14, %v729_v17  ;;  %v975_v47 = vmax.f32 %v947_v28, 0.0  ;;  %v1287_v14 = vld [vmem:[%s7167_s4 + $0x1f8] sm:$0xff]  ;;  %v1254_v17 = vld [vmem:[%s7167_s4 + $0xf0] sm:$0xff]  ;;  %v1236_v28 = vld [vmem:[%s7167_s4 + $0x60] sm:$0xff] }
 0x12c   : > { %v952_v16 = vpop.f32.mrf.mxu1  ;;  %v852_v18 = vadd.f32 %v851_v15, %v734_v8  ;;  %v974_v40 = vmax.f32 %v848_v23, 0.0  ;;  %v1239_v15 = vld [vmem:[%s7167_s4 + $0x78] sm:$0xff]  ;;  %v1285_v23 = vld [vmem:[%s7167_s4 + $0x1e8] sm:$0xff] }
 0x12d   : > { %v953_v19 = vadd.f32 %v952_v16, %v734_v8  ;;  %v853_v20 = vpop.f32.mrf.mxu0  ;;  %v976_v41 = vmax.f32 %v949_v24, 0.0  ;;  %v1271_v16 = vld [vmem:[%s7167_s4 + $0x178] sm:$0xff]  ;;  %v1237_v24 = vld [vmem:[%s7167_s4 + $0x68] sm:$0xff] }
 0x12e   : > { %v954_v21 = vpop.f32.mrf.mxu1  ;;  %v854_v25 = vadd.f32 %v853_v20, %v734_v8  ;;  %v977_v35 = vmax.f32 %v852_v18, 0.0  ;;  %v1286_v18 = vld [vmem:[%s7167_s4 + $0x1f0] sm:$0xff] }
 0x12f   : > { %v955_v26 = vadd.f32 %v954_v21, %v734_v8  ;;  %v979_v36 = vmax.f32 %v953_v19, 0.0  ;;  %v967_v8 = vmax.f32 %v935_v45, 0.0  ;;  %v1238_v19 = vld [vmem:[%s7167_s4 + $0x70] sm:$0xff]  ;;  %v982_v21 = vld [vmem:[%s7165_s5 + $0x8] sm:$0xf]  ;;  %v1280_v45 = vld [vmem:[%s7167_s4 + $0x1c0] sm:$0xff] }
 0x130   : > { %v978_v31 = vmax.f32 %v854_v25, 0.0  ;;  %v1270_v20 = vld [vmem:[%s7167_s4 + $0x170] sm:$0xff]  ;;  %v1269_v25 = vld [vmem:[%s7167_s4 + $0x168] sm:$0xff] }
 0x131   : > { %v980_v32 = vmax.f32 %v955_v26, 0.0  ;;  %v1252_v26 = vld [vmem:[%s7167_s4 + $0xe0] sm:$0xff] }
 0x132   : > { %1022 = vmatprep.subr.mxu0 %v978_v31  ;;  %v1283_v31 = vld [vmem:[%s7167_s4 + $0x1d8] sm:$0xff] }
 0x133   : > { %1099 = vmatprep.subr.mxu1 %v980_v32  ;;  %1023 = vmatpush1.msra.mxu0 %v977_v35  ;;  %v1235_v32 = vld [vmem:[%s7167_s4 + $0x58] sm:$0xff]  ;;  %v1282_v35 = vld [vmem:[%s7167_s4 + $0x1d0] sm:$0xff] }
 0x134   : > { %1100 = vmatpush1.msra.mxu1 %v979_v36  ;;  %1024 = vmatprep.subr.mxu0 %v974_v40  ;;  %v1234_v36 = vld [vmem:[%s7167_s4 + $0x50] sm:$0xff]  ;;  %v1233_v40 = vld [vmem:[%s7167_s4 + $0x48] sm:$0xff] }
 0x135   : > { %1101 = vmatprep.subr.mxu1 %v976_v41  ;;  %1025 = vmatpush1.msra.mxu0 %v973_v46  ;;  %v1265_v41 = vld [vmem:[%s7167_s4 + $0x148] sm:$0xff]  ;;  %v1232_v46 = vld [vmem:[%s7167_s4 + $0x40] sm:$0xff] }
 0x136   : > { %1102 = vmatpush1.msra.mxu1 %v975_v47  ;;  %1026 = vmatprep.subr.mxu0 %v970_v51  ;;  %v1264_v47 = vld [vmem:[%s7167_s4 + $0x140] sm:$0xff]  ;;  %v1263_v51 = vld [vmem:[%s7167_s4 + $0x138] sm:$0xff] }
 0x137   : > { %1103 = vmatprep.subr.mxu1 %v972_v52  ;;  %1027 = vmatpush1.msra.mxu0 %v969_v3  ;;  %v1246_v52 = vld [vmem:[%s7167_s4 + $0xb0] sm:$0xff] }
 0x138   : > { %1104 = vmatpush1.msra.mxu1 %v971_v4  ;;  %1028 = vmatprep.subr.mxu0 %v966_v5  ;;  %v1262_v3 = vld [vmem:[%s7167_s4 + $0x130] sm:$0xff]  ;;  %v1245_v4 = vld [vmem:[%s7167_s4 + $0xa8] sm:$0xff] }
 0x139   : > { %1105 = vmatprep.subr.mxu1 %v968_v6  ;;  %1029 = vmatpush1.msra.mxu0 %v965_v7  ;;  %v1261_v5 = vld [vmem:[%s7167_s4 + $0x128] sm:$0xff]  ;;  %v1244_v6 = vld [vmem:[%s7167_s4 + $0xa0] sm:$0xff] }
 0x13a   : > { %1106 = vmatpush1.msra.mxu1 %v967_v8  ;;  %1030 = vmatprep.subr.mxu0 %v962_v60  ;;  %v1260_v7 = vld [vmem:[%s7167_s4 + $0x120] sm:$0xff]  ;;  %v1243_v8 = vld [vmem:[%s7167_s4 + $0x98] sm:$0xff] }
 0x13b   : > { %1107 = vmatprep.subr.mxu1 %v964_v61  ;;  %1031 = vmatpush1.msra.mxu0 %v961_v9  ;;  %v1275_v60 = vld [vmem:[%s7167_s4 + $0x198] sm:$0xff] }
 0x13c   : > { %1108 = vmatpush1.msra.mxu1 %v963_v58  ;;  %1032 = vmatprep.subr.mxu0 %v958_v59  ;;  %v1227_v61 = vld [vmem:[%s7167_s4 + $0x18] sm:$0xff]  ;;  %v1242_v58 = vld [vmem:[%s7167_s4 + $0x90] sm:$0xff] }
 0x13d   : > { %1109 = vmatprep.subr.mxu1 %v960_v10  ;;  %1033 = vmatpush1.msra.mxu0 %v957_v11  ;;  %v1259_v9 = vld [vmem:[%s7167_s4 + $0x118] sm:$0xff]  ;;  %v1274_v59 = vld [vmem:[%s7167_s4 + $0x190] sm:$0xff] }
 0x13e   : > { %1110 = vmatpush1.msra.mxu1 %v959_v56  ;;  %4420 = vmatmul.mubr.msk.f32.vlgmr.msra.gmra.mxu0 %vm995_vm1, %v981_v57  ;;  %v1226_v10 = vld [vmem:[%s7167_s4 + $0x10] sm:$0xff]  ;;  %v1241_v56 = vld [vmem:[%s7167_s4 + $0x88] sm:$0xff] }
 0x13f   : > { %4422 = vmatmul.mubr.msk.f32.vlgmr.msra.gmra.mxu1 %vm995_vm1, %v981_v57  ;;  %4447 = vmatprep.subr.mxu0 %v1255_v12  ;;  %v1258_v11 = vld [vmem:[%s7167_s4 + $0x110] sm:$0xff]  ;;  %v1273_v57 = vld [vmem:[%s7167_s4 + $0x188] sm:$0xff] }
 0x140   : > { %4482 = vmatprep.subr.mxu1 %v1287_v14  ;;  %4448 = vmatpush3.msra.mxu0 %v1239_v15  ;;  %v1225_v12 = vld [vmem:[%s7167_s4 + $0x8] sm:$0xff]  ;;  %v1240_v15 = vld [vmem:[%s7167_s4 + $0x80] sm:$0xff] }
 0x141   : > { %4483 = vmatpush3.msra.mxu1 %v1271_v16  ;;  %4449 = vmatprep.subr.mxu0 %v1254_v17  ;;  %v1257_v14 = vld [vmem:[%s7167_s4 + $0x108] sm:$0xff]  ;;  %v1272_v16 = vld [vmem:[%s7167_s4 + $0x180] sm:$0xff] }
 0x142   : > { %4484 = vmatprep.subr.mxu1 %v1286_v18  ;;  %1072 = vmatprep.mubr.f32.mxu0 %v4713_v13  ;;  %v1224_v17 = vld [vmem:[%s7167_s4] sm:$0xff] }
 0x143   : > { %1149 = vmatprep.mubr.f32.mxu1 %v4713_v13  ;;  %4450 = vmatpush3.msra.mxu0 %v1238_v19  ;;  %v1256_v18 = vld [vmem:[%s7167_s4 + $0x100] sm:$0xff]  ;;  %v1432_v19 = vpop.permute.xlu0 %1431 }
 0x144   : > { %4485 = vmatpush3.msra.mxu1 %v1270_v20  ;;  %4421 = vmatmul.mubr.msk.f32.gmra.mxu0 %vm995_vm1, %v982_v21  ;;  %v1439_v20 = vpop.permute.xlu1 %1438 }
 0x145   : > { %4423 = vmatmul.mubr.msk.f32.gmra.mxu1 %vm995_vm1, %v982_v21  ;;  %4451 = vmatprep.subr.mxu0 %v1253_v22 }
 0x146   : > { %4486 = vmatprep.subr.mxu1 %v1285_v23  ;;  %4452 = vmatpush3.msra.mxu0 %v1237_v24 }
 0x147   : > { %4487 = vmatpush3.msra.mxu1 %v1269_v25  ;;  %4453 = vmatprep.subr.mxu0 %v1252_v26  ;;  %v1448_v21 = vpop.permute.xlu0 %1447 }
 0x148   : > { %4488 = vmatprep.subr.mxu1 %v1284_v27  ;;  %4454 = vmatpush3.msra.mxu0 %v1236_v28 }
 0x149   : > { %4489 = vmatpush3.msra.mxu1 %v1268_v29  ;;  %4455 = vmatprep.subr.mxu0 %v1251_v30 }
 0x14a   : > { %4490 = vmatprep.subr.mxu1 %v1283_v31  ;;  %4456 = vmatpush3.msra.mxu0 %v1235_v32 }
 0x14b   : > { %4491 = vmatpush3.msra.mxu1 %v1267_v33  ;;  %4457 = vmatprep.subr.mxu0 %v1250_v34  ;;  %v993_v26 = vpop.permute.xlu0 %992 }
 0x14c   : > { %4492 = vmatprep.subr.mxu1 %v1282_v35  ;;  %4458 = vmatpush3.msra.mxu0 %v1234_v36 }
 0x14d   : > { %4493 = vmatpush3.msra.mxu1 %v1266_v37  ;;  %4459 = vmatprep.subr.mxu0 %v1249_v38 }
 0x14e   : > { %4494 = vmatprep.subr.mxu1 %v1281_v39  ;;  %4460 = vmatpush3.msra.mxu0 %v1233_v40 }
 0x14f   : > { %4495 = vmatpush3.msra.mxu1 %v1265_v41  ;;  %4461 = vmatprep.subr.mxu0 %v1248_v42 }
 0x150   : > { %4496 = vmatprep.subr.mxu1 %v1280_v45  ;;  %4462 = vmatpush3.msra.mxu0 %v1232_v46 }
 0x151   : > { %4497 = vmatpush3.msra.mxu1 %v1264_v47  ;;  %4463 = vmatprep.subr.mxu0 %v1247_v48  ;;  %v1443_v47 = vld [vmem:[%s7168_s11] sm:$0xff] }
 0x152   : > { %4498 = vmatprep.subr.mxu1 %v1279_v49  ;;  %4464 = vmatpush3.msra.mxu0 %v1231_v50 }
 0x153   : > { %4499 = vmatpush3.msra.mxu1 %v1263_v51  ;;  %4465 = vmatprep.subr.mxu0 %v1246_v52 }
 0x154   : > { %4500 = vmatprep.subr.mxu1 %v1278_v53  ;;  %4466 = vmatpush3.msra.mxu0 %v1230_v2 }
 0x155   : > { %4501 = vmatpush3.msra.mxu1 %v1262_v3  ;;  %4467 = vmatprep.subr.mxu0 %v1245_v4 }
 0x156   : > { %4502 = vmatprep.subr.mxu1 %v1277_v0  ;;  %4468 = vmatpush3.msra.mxu0 %v1229_v1 }
 0x157   : > { %4503 = vmatpush3.msra.mxu1 %v1261_v5  ;;  %4469 = vmatprep.subr.mxu0 %v1244_v6 }
 0x158   : > { %4504 = vmatprep.subr.mxu1 %v1276_v62  ;;  %4470 = vmatpush3.msra.mxu0 %v1228_v63 }
 0x159   : > { %4505 = vmatpush3.msra.mxu1 %v1260_v7  ;;  %4471 = vmatprep.subr.mxu0 %v1243_v8 }
 0x15a   : > { %4506 = vmatprep.subr.mxu1 %v1275_v60  ;;  %4472 = vmatpush3.msra.mxu0 %v1227_v61 }
 0x15b   : > { %4507 = vmatpush3.msra.mxu1 %v1259_v9  ;;  %4473 = vmatprep.subr.mxu0 %v1242_v58 }
 0x15c   : > { %4508 = vmatprep.subr.mxu1 %v1274_v59  ;;  %4474 = vmatpush3.msra.mxu0 %v1226_v10 }
 0x15d   : > { %4509 = vmatpush3.msra.mxu1 %v1258_v11  ;;  %4475 = vmatprep.subr.mxu0 %v1241_v56 }
 0x15e   : > { %4510 = vmatprep.subr.mxu1 %v1273_v57  ;;  %4476 = vmatpush3.msra.mxu0 %v1225_v12 }
 0x15f   : > { %4511 = vmatpush3.msra.mxu1 %v1257_v14  ;;  %4477 = vmatprep.subr.mxu0 %v1240_v15  ;;  %v4716_v14 = vmov 683565275  }
 0x160   : > { %4512 = vmatprep.subr.mxu1 %v1272_v16  ;;  %4478 = vmatpush3.msra.mxu0 %v1224_v17  ;;  %v4717_v16 = vmov 2475754826  }
 0x161   : > { %1352 = vmatprep.mubr.f32.mxu0 %v5018_v54  ;;  %4513 = vmatpush3.msra.mxu1 %v1256_v18  ;;  %v988_v54 = vpop.permute.xlu1 %987 }
 0x162   : > { %1422 = vmatprep.mubr.f32.mxu1 %v5020_v55  ;;  %1353 = vmatmul.mubr.f32.vlgmr.msra.gmra.mxu0 %v4971_v43 }
 0x163   : > { %1423 = vmatmul.mubr.f32.vlgmr.msra.gmra.mxu1 %v4973_v44  ;;  %4519 = vmatprep.subr.mxu0 %v4713_v13 }
 0x164   : > { %4521 = vmatprep.mubr.msk.f32.mxu0 %vm4715_vm2, %v4713_v13 }
 0x1fe   : > { %v1068_v22 = vpop.f32.mrf.mxu0 }
 0x1ff   : > { %v1145_v23 = vpop.f32.mrf.mxu1  ;;  %v1069_v55 = vadd.f32 %v1068_v22, %v988_v54 }
 0x200   : > { %v1146_v24 = vadd.f32 %v1145_v23, %v988_v54  ;;  %v1070_v43 = vpop.f32.mrf.mxu0 }
 0x201   : > { %v1147_v25 = vpop.f32.mrf.mxu1  ;;  %1156 = vst [vmem:[%s4923_s15] sm:$0xff] %v1069_v55  ;;  %v1071_v44 = vadd.f32 %v1070_v43, %v988_v54 }
 0x202   : > { %1158 = vst [vmem:[%s4923_s15 + $0x10] sm:$0xff] %v1146_v24  ;;  %v1148_v13 = vadd.f32 %v1147_v25, %v988_v54 }
 0x203   : > { %1157 = vst [vmem:[%s4923_s15 + $0x8] sm:$0xff] %v1071_v44 }
 0x204   : > { %1159 = vst [vmem:[%s4923_s15 + $0x18] sm:$0xff] %v1148_v13  ;;  %v1074_v27 = vpop.f32.mrf.mxu0  ;;  %v4720_v13 = vmov 920167782  }
 0x205   : > { %v1151_v28 = vpop.f32.mrf.mxu1  ;;  %v1075_v29 = vadd.f32 %v1074_v27, %v993_v26 }
 0x206   : > { %v1152_v30 = vadd.f32 %v1151_v28, %v993_v26  ;;  %v1076_v31 = vpop.f32.mrf.mxu0 }
 0x207   : > { %v1153_v32 = vpop.f32.mrf.mxu1  ;;  %1160 = vst [vmem:[%s4923_s15 + $0x20] sm:$0xf] %v1075_v29  ;;  %v1077_v33 = vadd.f32 %v1076_v31, %v993_v26 }
 0x208   : > { %1162 = vst [vmem:[%s4923_s15 + $0x30] sm:$0xf] %v1152_v30  ;;  %v1154_v34 = vadd.f32 %v1153_v32, %v993_v26  ;;  %v4721_v32 = vmov 1326507024  }
 0x209   : > { %1161 = vst [vmem:[%s4923_s15 + $0x28] sm:$0xf] %v1077_v33 }
 0x20a   : > { %1163 = vst [vmem:[%s4923_s15 + $0x38] sm:$0xf] %v1154_v34 }
 0x222   : > { %v4479_v35 = vpop.f32.mrf.mxu0 }
 0x223   : > { %v4514_v36 = vpop.f32.mrf.mxu1 }
 0x224   : > { %v4480_v37 = vpop.f32.mrf.mxu0 }
 0x225   : > { %v4515_v38 = vpop.f32.mrf.mxu1  ;;  %v4481_v39 = vadd.f32 %v4480_v37, %v4479_v35 }
 0x226   : > { %v4516_v40 = vadd.f32 %v4515_v38, %v4514_v36 }
 0x228   : > { %v1425_v41 = vadd.f32 %v4516_v40, %v4481_v39 }
 0x22a   : > { %v1434_v42 = vmul.f32 %v1432_v19, %v1425_v41  ;;  %v4718_v19 = vmov 2131351028  }
 0x22c   : > { %v1441_v45 = vadd.f32 %v1439_v20, %v1434_v42 }
 0x22e   : > { %v1442_v46 = vmax.f32 %v1441_v45, 0.0 }
 0x230   : > { %4520 = vmatpush3.msra.mxu0 %v1442_v46 }
 0x231   : > { %4522 = vmatmul.mubr.msk.f32.vlgmr.msra.gmra.mxu0 %vm736_vm0, %v1443_v47 }
 0x2f1   : > { %v1519_v48 = vpop.f32.mrf.mxu0 }
 0x2f2   : > { %v5258_v49 = vadd.f32 %v1519_v48, %v1448_v21  ;;  %v4719_v21 = vmov 2102212464  }
 0x2f3   : > { %v4523_v50 = vpop.f32.mrf.mxu0 }
 0x2f4   : > { %v1524_v51 = vrot.slane %v5258_v49, 1  ;;  %v1738_v52 = vand.u32 2139095040, %v5258_v49  ;;  %v1735_v0 = vand.u32 2147483647, %v5258_v49 }
 0x2f6   : > { %v5265_v53 = vadd.f32 %v1524_v51, %v5258_v49  ;;  %v1739_v2 = vshrl.u32 %v1738_v52, 23  ;;  %v5274_v8 = vand.u32 8388607, %v1735_v0 }
 0x2f8   : > { %v1528_v3 = vand.u32 2147483647, %v5265_v53  ;;  %v1531_v4 = vand.u32 2139095040, %v5265_v53  ;;  %v4433_v1 = vadd.s32 4294967169, %v1739_v2  ;;  %v1743_v10 = vor.u32 8388608, %v5274_v8 }
 0x2f9   : > { %vm1530_vm1 = vcmp.lt.s32.totalorder %v5265_v53, 0 }
 0x2fa   : > { %v1532_v5 = vshrl.u32 %v1531_v4, 23  ;;  %v1535_v6 = vand.u32 8388607, %v1528_v3  ;;  %v1745_v62 = vadd.s32 1, %v4433_v1  ;;  %vm1529_vm2 = vcmp.le.f32.partialorder %v1528_v3, 0.7853982 }
 0x2fc   : > { %v4425_v63 = vadd.s32 4294967169, %v1532_v5  ;;  %v1536_v7 = vor.u32 8388608, %v1535_v6  ;;  %vm1746_vm3 = vcmp.gt.s32.totalorder %v1745_v62, 0 }
 0x2fd   : > { %v1747_v61 = vsel %vm1746_vm3, %v1745_v62, 0  ;;  %vm1737_vm3 = vcmp.lt.s32.totalorder %v5258_v49, 0 }
 0x2fe   : > { %v1538_v60 = vadd.s32 1, %v4425_v63  ;;  %v1749_v9 = vand.u32 31, %v1747_v61  ;;  %v5276_v59 = vshll.u32 %v1536_v7, 8  ;;  %v5281_v12 = vshrl.u32 %v1747_v61, 5 }
 0x300   : > { %vm1539_vm4 = vcmp.gt.s32.totalorder %v1538_v60, 0  ;;  %v5279_v11 = vsub.s32 32, %v1749_v9  ;;  %v1752_v15 = vshll.u32 %v4716_v14, %v1749_v9  ;;  %v1755_v18 = vshll.u32 %v4717_v16, %v1749_v9 }
 0x301   : > { %v1540_v58 = vsel %vm1539_vm4, %v1538_v60, 0  ;;  %v1758_v20 = vshll.u32 %v4718_v19, %v1749_v9  ;;  %v1761_v54 = vshll.u32 %v4719_v21, %v1749_v9  ;;  %vm1767_vm9 = vcmp.lt.s32.totalorder %v5281_v12, 1 }
 0x302   : > { %v1541_v56 = vshrl.u32 %v1540_v58, 5  ;;  %v1542_v57 = vand.u32 31, %v1540_v58  ;;  %v1753_v17 = vshrl.u32 %v4717_v16, %v5279_v11  ;;  %v1756_v55 = vshrl.u32 %v4718_v19, %v5279_v11 }
 0x303   : > { %v1759_v24 = vshrl.u32 %v4719_v21, %v5279_v11  ;;  %v1762_v50 = vshrl.u32 %v4720_v13, %v5279_v11  ;;  %v1764_v58 = vshll.u32 %v4720_v13, %v1749_v9  ;;  %vm1770_vm10 = vcmp.lt.s32.totalorder %v5281_v12, 4 }
 0x304   : > { %v1543_v22 = vsub.s32 32, %v1542_v57  ;;  %v1545_v23 = vshll.u32 %v4716_v14, %v1542_v57  ;;  %v1548_v43 = vshll.u32 %v4717_v16, %v1542_v57  ;;  %v1551_v25 = vshll.u32 %v4718_v19, %v1542_v57 }
 0x305   : > { %v1554_v44 = vshll.u32 %v4719_v21, %v1542_v57  ;;  %v1557_v26 = vshll.u32 %v4720_v13, %v1542_v57  ;;  %vm1560_vm5 = vcmp.lt.s32.totalorder %v1541_v56, 1  ;;  %vm1561_vm6 = vcmp.lt.s32.totalorder %v1541_v56, 2 }
 0x306   : > { %v1546_v27 = vshrl.u32 %v4717_v16, %v1543_v22  ;;  %v1549_v28 = vshrl.u32 %v4718_v19, %v1543_v22  ;;  %v1552_v29 = vshrl.u32 %v4719_v21, %v1543_v22  ;;  %v1544_v30 = vshrl.u32 %v4716_v14, %v1543_v22 }
 0x307   : > { %v1555_v31 = vshrl.u32 %v4720_v13, %v1543_v22  ;;  %v1558_v33 = vshrl.u32 %v4721_v32, %v1543_v22  ;;  %vm1562_vm7 = vcmp.lt.s32.totalorder %v1541_v56, 3  ;;  %vm1563_vm8 = vcmp.lt.s32.totalorder %v1541_v56, 4 }
 0x308   : > { %v1547_v34 = vor.u32 %v1546_v27, %v1545_v23  ;;  %v1550_v35 = vor.u32 %v1549_v28, %v1548_v43  ;;  %v1553_v36 = vor.u32 %v1552_v29, %v1551_v25  ;;  %v1754_v39 = vor.u32 %v1753_v17, %v1752_v15 }
 0x309   : > { %v1556_v37 = vor.u32 %v1555_v31, %v1554_v44  ;;  %v1559_v38 = vor.u32 %v1558_v33, %v1557_v26  ;;  %v1757_v4 = vor.u32 %v1756_v55, %v1755_v18  ;;  %v1760_v1 = vor.u32 %v1759_v24, %v1758_v20 }
 0x30a   : > { %v1564_v40 = vsel %vm1560_vm5, %v1544_v30, %v1547_v34  ;;  %v1565_v41 = vsel %vm1563_vm8, %v1553_v36, 2102212464  ;;  %v1568_v42 = vsel %vm1560_vm5, %v1547_v34, %v1550_v35  ;;  %v1572_v45 = vsel %vm1560_vm5, %v1550_v35, %v1553_v36 }
 0x30b   : > { %v1566_v46 = vsel %vm1562_vm7, %v1550_v35, %v1565_v41  ;;  %v1569_v47 = vsel %vm1563_vm8, %v1556_v37, 920167782  ;;  %v1573_v48 = vsel %vm1563_vm8, %v1559_v38, 1326507024  ;;  %v1763_v63 = vor.u32 %v1762_v50, %v1761_v54 }
 0x30c   : > { %v1570_v52 = vsel %vm1562_vm7, %v1553_v36, %v1569_v47  ;;  %v1574_v2 = vsel %vm1562_vm7, %v1556_v37, %v1573_v48  ;;  %v1567_v5 = vsel %vm1561_vm6, %v1564_v40, %v1566_v46  ;;  %v1765_v57 = vshrl.u32 %v4721_v32, %v5279_v11 }
 0x30d   : > { %v1571_v6 = vsel %vm1561_vm6, %v1568_v42, %v1570_v52  ;;  %v1575_v62 = vsel %vm1561_vm6, %v1572_v45, %v1574_v2  ;;  %v1783_v15 = vshll.u32 %v1743_v10, 8  ;;  %v1583_v16 = vmul.u32 %v5276_v59, %v1567_v5 }
 0x30e   : > { %v5294_v7 = vmul.u32.u64.low %v5276_v59, %v1575_v62  ;;  %v5295_v8 = vmul.u32.u64.high %v5276_v59, %v1575_v62, %v5294_v7  ;;  %v5298_v60 = vmul.u32.u64.low %v5276_v59, %v1571_v6  ;;  %v5299_v61 = vmul.u32.u64.high %v5276_v59, %v1571_v6, %v5298_v60 }
 0x30f   : > { %v1751_v17 = vshrl.u32 %v4716_v14, %v5279_v11  ;;  %v1766_v56 = vor.u32 %v1765_v57, %v1764_v58  ;;  %v1772_v18 = vsel %vm1770_vm10, %v1760_v1, 2102212464  ;;  %v1775_v19 = vsel %vm1767_vm9, %v1754_v39, %v1757_v4 }
 0x310   : > { %v1776_v20 = vsel %vm1770_vm10, %v1763_v63, 920167782  ;;  %vm1585_vm11 = vc.u32 %v5295_v8, %v5298_v60  ;;  %v1586_v21 = vadd.s32 1, %v5299_v61  ;;  %vm1769_vm12 = vcmp.lt.s32.totalorder %v5281_v12, 3 }
 0x311   : > { %v1779_v9 = vsel %vm1767_vm9, %v1757_v4, %v1760_v1  ;;  %vm1768_vm13 = vcmp.lt.s32.totalorder %v5281_v12, 2  ;;  %v1771_v59 = vsel %vm1767_vm9, %v1751_v17, %v1754_v39  ;;  %v1777_v10 = vsel %vm1769_vm12, %v1760_v1, %v1776_v20 }
 0x312   : > { %v1780_v11 = vsel %vm1770_vm10, %v1766_v56, 1326507024  ;;  %v1587_v14 = vsel %vm1585_vm11, %v1586_v21, %v5299_v61  ;;  %v1773_v54 = vsel %vm1769_vm12, %v1757_v4, %v1772_v18  ;;  %v1778_v22 = vsel %vm1768_vm13, %v1775_v19, %v1777_v10 }
 0x313   : > { %v1781_v23 = vsel %vm1769_vm12, %v1763_v63, %v1780_v11  ;;  %v1588_v55 = vadd.s32 %v1587_v14, %v1583_v16  ;;  %v5311_v43 = vmul.u32.u64.low %v1783_v15, %v1778_v22  ;;  %v5312_v25 = vmul.u32.u64.high %v1783_v15, %v1778_v22, %v5311_v43 }
 0x314   : > { %v1782_v24 = vsel %vm1768_vm13, %v1779_v9, %v1781_v23  ;;  %v1774_v27 = vsel %vm1768_vm13, %v1771_v59, %v1773_v54  ;;  %v1584_v47 = vadd.s32 %v5298_v60, %v5295_v8  ;;  %vm1736_vm4 = vcmp.le.f32.partialorder %v1735_v0, 0.7853982 }
 0x315   : > { %v5314_v44 = vmul.u32.u64.low %v1783_v15, %v1782_v24  ;;  %v5315_v13 = vmul.u32.u64.high %v1783_v15, %v1782_v24, %v5314_v44  ;;  %v1589_v26 = vadd.s32 536870912, %v1588_v55  ;;  %v1793_v12 = vadd.s32 1, %v5312_v25 }
 0x316   : > { %v1790_v29 = vmul.u32 %v1783_v15, %v1774_v27  ;;  %vm1620_vm11 = vweird.f32 %v5265_v53  ;;  %vm1984_vm12 = vcmask 1040384   ;;  %vm1827_vm13 = vweird.f32 %v5258_v49 }
 0x317   : > { %v1590_v28 = vshrl.u32 %v1589_v26, 30  ;;  %vm1792_vm14 = vc.u32 %v5315_v13, %v5311_v43  ;;  %v1791_v61 = vadd.s32 %v5311_v43, %v5315_v13 }
 0x318   : > { %v1794_v31 = vsel %vm1792_vm14, %v1793_v12, %v5312_v25 }
 0x319   : > { %v1591_v30 = vshll.u32 %v1590_v28, 30  ;;  %v1795_v32 = vadd.s32 %v1794_v31, %v1790_v29  ;;  %v1614_v21 = vsub.s32 4, %v1590_v28 }
 0x31b   : > { %v1592_v33 = vsub.s32 %v1588_v55, %v1591_v30  ;;  %v1796_v34 = vadd.s32 536870912, %v1795_v32  ;;  %v1615_v54 = vsel %vm1530_vm1, %v1614_v21, %v1590_v28 }
 0x31c   : > { %v1617_v55 = vsel %vm1529_vm2, 0, %v1615_v54 }
 0x31d   : > { %v1594_v35 = vsub.s32 0, %v1592_v33  ;;  %v1797_v36 = vshrl.u32 %v1796_v34, 30  ;;  %v1724_v25 = vadd.s32 3, %v1617_v55  ;;  %v1621_v13 = vand.u32 3, %v1617_v55 }
 0x31f   : > { %v4426_v37 = vmin.u32 %v1594_v35, %v1592_v33  ;;  %v1798_v38 = vshll.u32 %v1797_v36, 30  ;;  %v1821_v24 = vsub.s32 4, %v1797_v36  ;;  %v1725_v26 = vand.u32 3, %v1724_v25 }
 0x320   : > { %vm1622_vm5 = vcmp.lt.s32.totalorder %v1621_v13, 2  ;;  %vm1626_vm6 = vcmp.eq.s32.totalorder %v1621_v13, 2  ;;  %vm1623_vm8 = vcmp.eq.s32.totalorder %v1621_v13, 0 }
 0x321   : > { %v1596_v39 = vclz %v4426_v37  ;;  %v1799_v40 = vsub.s32 %v1795_v32, %v1798_v38  ;;  %v1822_v44 = vsel %vm1737_vm3, %v1821_v24, %v1797_v36  ;;  %vm1730_vm7 = vcmp.eq.s32.totalorder %v1725_v26, 2 }
 0x322   : > { %v1824_v27 = vsel %vm1736_vm4, 0, %v1822_v44  ;;  %vm1727_vm9 = vcmp.eq.s32.totalorder %v1725_v26, 0  ;;  %vm1726_vm10 = vcmp.lt.s32.totalorder %v1725_v26, 2 }
 0x323   : > { %v4427_v41 = vadd.s32 4294967294, %v1596_v39  ;;  %v1801_v42 = vsub.s32 0, %v1799_v40  ;;  %v1931_v30 = vadd.s32 3, %v1824_v27  ;;  %v1828_v35 = vand.u32 3, %v1824_v27 }
 0x325   : > { %vm4428_vm15 = vcmp.lt.s32.totalorder %v4427_v41, 0  ;;  %v4434_v46 = vmin.u32 %v1801_v42, %v1799_v40  ;;  %v1932_v38 = vand.u32 3, %v1931_v30  ;;  %v1526_v42 = vmul.f32 %v1524_v51, %v5258_v49 }
 0x326   : > { %v1599_v45 = vsel %vm4428_vm15, 0, %v4427_v41  ;;  %vm1829_vm14 = vcmp.lt.s32.totalorder %v1828_v35, 2  ;;  %vm1830_vm15 = vcmp.eq.s32.totalorder %v1828_v35, 0 }
 0x327   : > { %v1600_v48 = vsub.s32 32, %v1599_v45  ;;  %v1604_v50 = vsub.s32 4294967266, %v1599_v45  ;;  %v1803_v52 = vclz %v4434_v46  ;;  %v1601_v2 = vshll.u32 %v1592_v33, %v1599_v45 }
 0x329   : > { %v1602_v4 = vshrl.u32 %v1584_v47, %v1600_v48  ;;  %v1605_v1 = vadd.s32 127, %v1604_v50  ;;  %v4435_v5 = vadd.s32 4294967294, %v1803_v52 }
 0x32b   : > { %v1603_v6 = vor.u32 %v1602_v4, %v1601_v2  ;;  %v1606_v62 = vshll.u32 %v1605_v1, 23  ;;  %vm4436_vm0 = vcmp.lt.s32.totalorder %v4435_v5, 0 }
 0x32c   : > { %v1806_v7 = vsel %vm4436_vm0, 0, %v4435_v5  ;;  %vm1833_vm0 = vcmp.eq.s32.totalorder %v1828_v35, 2 }
 0x32d   : > { %v1607_v63 = vor.u32 4788187, %v1606_v62  ;;  %v1807_v58 = vsub.s32 32, %v1806_v7  ;;  %v1811_v57 = vsub.s32 4294967266, %v1806_v7  ;;  %v1610_v16 = vcvt.s32.f32 %v1603_v6 }
 0x32e   : > { %v1808_v17 = vshll.u32 %v1799_v40, %v1806_v7  ;;  %v1950_v7 = vrot.slane %v5258_v49, 6 }
 0x32f   : > { %v1608_v15 = vand.u32 2147483647, %v1607_v63  ;;  %v1809_v8 = vshrl.u32 %v1791_v61, %v1807_v58  ;;  %v1812_v60 = vadd.s32 127, %v1811_v57  ;;  %v1953_v61 = vrot.slane %v5258_v49, 7 }
 0x331   : > { %v1611_v56 = vmul.f32 %v1610_v16, %v1608_v15  ;;  %v1810_v18 = vor.u32 %v1809_v8, %v1808_v17  ;;  %v1813_v19 = vshll.u32 %v1812_v60, 23 }
 0x333   : > { %v1612_v20 = vxor.u32 2147483648, %v1611_v56  ;;  %v1814_v9 = vor.u32 4788187, %v1813_v19  ;;  %v1817_v14 = vcvt.s32.f32 %v1810_v18 }
 0x335   : > { %v1613_v59 = vsel %vm1530_vm1, %v1612_v20, %v1611_v56  ;;  %v1815_v11 = vand.u32 2147483647, %v1814_v9  ;;  %vm1937_vm1 = vcmp.eq.s32.totalorder %v1932_v38, 2 }
 0x336   : > { %v1616_v10 = vsel %vm1529_vm2, %v5265_v53, %v1613_v59  ;;  %vm1933_vm2 = vcmp.lt.s32.totalorder %v1932_v38, 2  ;;  %v1961_v59 = vrot.slane %v5258_v49, 2 }
 0x337   : > { %4614 = vcosq.f32 %v1616_v10  ;;  %v1818_v22 = vmul.f32 %v1817_v14, %v1815_v11  ;;  %v1972_v11 = vrot.slane %v5258_v49, 3 }
 0x338   : > { %4616 = vsinq.f32 %v1616_v10 }
 0x339   : > { %v1819_v23 = vxor.u32 2147483648, %v1818_v22 }
 0x33b   : > { %v1820_v43 = vsel %vm1737_vm3, %v1819_v23, %v1818_v22  ;;  %vm1934_vm3 = vcmp.eq.s32.totalorder %v1932_v38, 0 }
 0x33c   : > { %v1823_v3 = vsel %vm1736_vm4, %v5258_v49, %v1820_v43  ;;  %vm1986_vm4 = vcmask 1041408  }
 0x33d   : > { %4618 = vcosq.f32 %v1823_v3 }
 0x33e   : > { %4620 = vsinq.f32 %v1823_v3 }
 0x344   : > { %v4615_v28 = vpop.eup %4614 }
 0x345   : > { %v4617_v12 = vpop.eup %4616  ;;  %v1627_v29 = vxor.u32 2147483648, %v4615_v28 }
 0x346   : > { %v1624_v31 = vxor.u32 2147483648, %v4617_v12 }
 0x347   : > { %v1628_v0 = vsel %vm1626_vm6, %v1627_v29, %v4617_v12  ;;  %v1732_v32 = vsel %vm1730_vm7, %v1627_v29, %v4617_v12  ;;  %vm1990_vm6 = vcmask 1043456   ;;  %vm1992_vm7 = vcmask 130048  }
 0x348   : > { %v1625_v33 = vsel %vm1623_vm8, %v4615_v28, %v1624_v31  ;;  %v1729_v34 = vsel %vm1727_vm9, %v4615_v28, %v1624_v31 }
 0x349   : > { %v1629_v36 = vsel %vm1622_vm5, %v1625_v33, %v1628_v0  ;;  %v1733_v37 = vsel %vm1726_vm10, %v1729_v34, %v1732_v32  ;;  %vm1988_vm5 = vcmask 1042432  }
 0x34a   : > { %v1630_v39 = vsel %vm1620_vm11, nan, %v1629_v36  ;;  %v1734_v40 = vsel %vm1620_vm11, nan, %v1733_v37  ;;  %v4619_v41 = vpop.eup %4618 }
 0x34b   : > { %v1943_v45 = vrot.slane %v1630_v39, 6  ;;  %v1947_v46 = vrot.slane %v1734_v40, 6  ;;  %v4621_v47 = vpop.eup %4620  ;;  %v1834_v53 = vxor.u32 2147483648, %v4619_v41 }
 0x34c   : > { %v1831_v48 = vxor.u32 2147483648, %v4621_v47 }
 0x34d   : > { %v1945_v50 = vmul.f32 %v1943_v45, %v1526_v42  ;;  %v1949_v52 = vmul.f32 %v1947_v46, %v1526_v42  ;;  %v1835_v2 = vsel %vm1833_vm0, %v1834_v53, %v4621_v47  ;;  %v1939_v4 = vsel %vm1937_vm1, %v1834_v53, %v4621_v47 }
 0x34e   : > { %v1832_v1 = vsel %vm1830_vm15, %v4619_v41, %v1831_v48  ;;  %v1936_v5 = vsel %vm1934_vm3, %v4619_v41, %v1831_v48 }
 0x34f   : > { %v1976_v51 = vrot.slane %v1945_v50, 2  ;;  %v1979_v6 = vrot.slane %v1949_v52, 1  ;;  %v1836_v62 = vsel %vm1829_vm14, %v1832_v1, %v1835_v2  ;;  %v1940_v63 = vsel %vm1933_vm2, %v1936_v5, %v1939_v4 }
 0x350   : > { %v1837_v58 = vsel %vm1827_vm13, nan, %v1836_v62  ;;  %v1941_v57 = vsel %vm1827_vm13, nan, %v1940_v63 }
 0x351   : > { %v1985_v15 = vsel %vm1984_vm12, %v1976_v51, %v1979_v6  ;;  %v1952_v16 = vmul.f32 %v1950_v7, %v1837_v58  ;;  %v1955_v17 = vmul.f32 %v1953_v61, %v1941_v57  ;;  %v1964_v8 = vsub.f32 0.0, %v1941_v57 }
 0x352   : > { %v1966_v18 = vmul.f32 %v1953_v61, %v1837_v58 }
 0x353   : > { %v1956_v60 = vadd.f32 %v1955_v17, %v1952_v16  ;;  %v1965_v56 = vmul.f32 %v1964_v8, %v1950_v7 }
 0x355   : > { %v1958_v19 = vrot.slane %v1956_v60, 6  ;;  %v1967_v20 = vadd.f32 %v1966_v18, %v1965_v56 }
 0x357   : > { %v1960_v21 = vmul.f32 %v1958_v19, %v5258_v49  ;;  %v1969_v9 = vrot.slane %v1967_v20, 6 }
 0x359   : > { %v1971_v10 = vmul.f32 %v1969_v9, %v5258_v49  ;;  %v1963_v14 = vadd.f32 %v1961_v59, %v1960_v21 }
 0x35b   : > { %v1974_v54 = vadd.f32 %v1972_v11, %v1971_v10  ;;  %v1987_v23 = vsel %vm1986_vm4, %v1985_v15, %v1963_v14 }
 0x35d   : > { %v1982_v22 = vrot.slane %v1974_v54, 7 }
 0x35f   : > { %v1989_v55 = vsel %vm1988_vm5, %v1987_v23, %v1982_v22 }
 0x360   : > { %v1991_v24 = vsel %vm1990_vm6, %v1989_v55, 0.0 }
 0x361   : > { %1993 = vst.msk [vmem:[#allocation3] sm:$0xff] %vm1992_vm7, %v1991_v24 }
 0x362 PF: > { %s7169_s15 = sld [smem:[#allocation15_spill]]  ;;  %v4722_v25 = vmov 0   ;;  %vm1999_vm8 = vcmask 130048   ;;  %v4723_v12 = vmov 0.0   ;;  %v3089_v21 = vld [vmem:[#allocation5 + $0x178] sm:$0xff]  ;;  %v3056_v59 = vld [vmem:[#allocation5 + $0x70] sm:$0xff] }
 0x363   : > { %s7170_s27 = sld [smem:[#allocation105_spill]]  ;;  %4623 = vset.pattern.permute.xlu1 %v4722_v25  ;;  %4622 = vset.pattern.permute.xlu0 %v4722_v25  ;;  %v3057_v9 = vld [vmem:[#allocation5 + $0x78] sm:$0xff]  ;;  %v3088_v14 = vld [vmem:[#allocation5 + $0x170] sm:$0xff]  ;;  %v3087_v54 = vld [vmem:[#allocation5 + $0x168] sm:$0xff] }
 0x364   : > { %2067 = vmatprep.mubr.f32.mxu0 %v4723_v12  ;;  %v3055_v22 = vld [vmem:[#allocation5 + $0x68] sm:$0xff]  ;;  %v3086_v23 = vld [vmem:[#allocation5 + $0x160] sm:$0xff]  ;;  %v3085_v24 = vld [vmem:[#allocation5 + $0x158] sm:$0xff] }
 0x365   : > { %v3054_v55 = vld [vmem:[#allocation5 + $0x60] sm:$0xff]  ;;  %v3083_v25 = vld [vmem:[#allocation5 + $0x148] sm:$0xff]  ;;  %v3081_v12 = vld [vmem:[#allocation5 + $0x138] sm:$0xff] }
 0x368   : > { %v1998_v43 = vld [vmem:[%s7169_s15 + $0x18] sm:$0xff]  ;;  %v1997_v44 = vld [vmem:[%s7169_s15 + $0x10] sm:$0xff]  ;;  %v1996_v13 = vld [vmem:[%s7169_s15 + $0x8] sm:$0xff] }
 0x369   : > { %s7171_s10 = smov %s7170_s27  ;;  %v2140_v49 = vld [vmem:[%s7170_s27 + $0x10] sm:$0xff]  ;;  %2031 = vmatprep.subr.mxu0 %v1998_v43  ;;  %v1995_v26 = vld [vmem:[%s7169_s15] sm:$0xff] }
 0x36a   : > { %v2138_v3 = vld [vmem:[%s7171_s10] sm:$0xff]  ;;  %2214 = vperm.xlu1 %4623, %v2140_v49   ;;  %2032 = vmatpush1.msra.mxu0 %v1997_v44  ;;  %v2141_v28 = vld [vmem:[%s7171_s10 + $0x18] sm:$0xff]  ;;  %v2139_v29 = vld [vmem:[%s7171_s10 + $0x8] sm:$0xff] }
 0x36b   : > { %2204 = vperm.xlu0 %4622, %v2138_v3   ;;  %v1994_v27 = vld [vmem:[#allocation3] sm:$0xff]  ;;  %2033 = vmatprep.subr.mxu0 %v1996_v13  ;;  %v2143_v30 = vld [vmem:[%s7171_s10 + $0x28] sm:$0xff]  ;;  %v2145_v0 = vld [vmem:[%s7171_s10 + $0x38] sm:$0xff] }
 0x36c   : > { %2034 = vmatpush1.msra.mxu0 %v1995_v26  ;;  %v2142_v31 = vld [vmem:[%s7171_s10 + $0x20] sm:$0xff]  ;;  %v2144_v32 = vld [vmem:[%s7171_s10 + $0x30] sm:$0xff]  ;;  %v2147_v33 = vld [vmem:[%s7171_s10 + $0x48] sm:$0xff] }
 0x36d   : > { %4441 = vmatmul.mubr.msk.f32.vlgmr.msra.gmra.mxu0 %vm1999_vm8, %v1994_v27  ;;  %v2146_v34 = vld [vmem:[%s7171_s10 + $0x40] sm:$0xff]  ;;  %v2149_v35 = vld [vmem:[%s7171_s10 + $0x58] sm:$0xff]  ;;  %v2148_v36 = vld [vmem:[%s7171_s10 + $0x50] sm:$0xff] }
 0x36e   : > { %2219 = vperm.xlu1 %4623, %v2141_v28   ;;  %v2151_v37 = vld [vmem:[%s7171_s10 + $0x68] sm:$0xff]  ;;  %v2150_v38 = vld [vmem:[%s7171_s10 + $0x60] sm:$0xff]  ;;  %v2153_v39 = vld [vmem:[%s7171_s10 + $0x78] sm:$0xff] }
 0x36f   : > { %2209 = vperm.xlu0 %4622, %v2139_v29   ;;  %v2152_v40 = vld [vmem:[%s7171_s10 + $0x70] sm:$0xff]  ;;  %v2155_v41 = vld [vmem:[%s7171_s10 + $0x88] sm:$0xff]  ;;  %v2154_v42 = vld [vmem:[%s7171_s10 + $0x80] sm:$0xff] }
 0x370   : > { %v2157_v45 = vld [vmem:[%s7171_s10 + $0x98] sm:$0xff]  ;;  %v2156_v46 = vld [vmem:[%s7171_s10 + $0x90] sm:$0xff]  ;;  %v2159_v47 = vld [vmem:[%s7171_s10 + $0xa8] sm:$0xff] }
 0x371   : > { %v2158_v53 = vld [vmem:[%s7171_s10 + $0xa0] sm:$0xff]  ;;  %v2161_v48 = vld [vmem:[%s7171_s10 + $0xb8] sm:$0xff]  ;;  %v2160_v50 = vld [vmem:[%s7171_s10 + $0xb0] sm:$0xff] }
 0x372   : > { %2229 = vperm.xlu1 %4623, %v2143_v30   ;;  %v2163_v52 = vld [vmem:[%s7171_s10 + $0xc8] sm:$0xff]  ;;  %v2162_v2 = vld [vmem:[%s7171_s10 + $0xc0] sm:$0xff]  ;;  %v2165_v4 = vld [vmem:[%s7171_s10 + $0xd8] sm:$0xff] }
 0x373   : > { %2224 = vperm.xlu0 %4622, %v2142_v31   ;;  %v2164_v1 = vld [vmem:[%s7171_s10 + $0xd0] sm:$0xff]  ;;  %v2167_v5 = vld [vmem:[%s7171_s10 + $0xe8] sm:$0xff]  ;;  %v2166_v51 = vld [vmem:[%s7171_s10 + $0xe0] sm:$0xff] }
 0x374   : > { %v2169_v6 = vld [vmem:[%s7171_s10 + $0xf8] sm:$0xff]  ;;  %v2168_v62 = vld [vmem:[%s7171_s10 + $0xf0] sm:$0xff]  ;;  %v2171_v63 = vld [vmem:[%s7171_s10 + $0x108] sm:$0xff] }
 0x375   : > { %v2170_v7 = vld [vmem:[%s7171_s10 + $0x100] sm:$0xff]  ;;  %v2173_v61 = vld [vmem:[%s7171_s10 + $0x118] sm:$0xff]  ;;  %v2172_v58 = vld [vmem:[%s7171_s10 + $0x110] sm:$0xff] }
 0x376   : > { %2239 = vperm.xlu1 %4623, %v2145_v0   ;;  %v2175_v57 = vld [vmem:[%s7171_s10 + $0x128] sm:$0xff]  ;;  %v2174_v15 = vld [vmem:[%s7171_s10 + $0x120] sm:$0xff]  ;;  %v2177_v16 = vld [vmem:[%s7171_s10 + $0x138] sm:$0xff] }
 0x377   : > { %2234 = vperm.xlu0 %4622, %v2144_v32   ;;  %v2176_v17 = vld [vmem:[%s7171_s10 + $0x130] sm:$0xff]  ;;  %v2179_v8 = vld [vmem:[%s7171_s10 + $0x148] sm:$0xff]  ;;  %v2178_v60 = vld [vmem:[%s7171_s10 + $0x140] sm:$0xff] }
 0x378   : > { %v2181_v56 = vld [vmem:[%s7171_s10 + $0x158] sm:$0xff]  ;;  %v2180_v18 = vld [vmem:[%s7171_s10 + $0x150] sm:$0xff]  ;;  %v2182_v20 = vld [vmem:[%s7171_s10 + $0x160] sm:$0xff] }
 0x379   : > { %v2185_v19 = vld [vmem:[%s7171_s10 + $0x178] sm:$0xff]  ;;  %v2184_v10 = vld [vmem:[%s7171_s10 + $0x170] sm:$0xff]  ;;  %v2183_v11 = vld [vmem:[%s7171_s10 + $0x168] sm:$0xff] }
 0x37a   : > { %2249 = vperm.xlu1 %4623, %v2147_v33   ;;  %v3053_v43 = vld [vmem:[#allocation5 + $0x58] sm:$0xff]  ;;  %v3084_v49 = vld [vmem:[#allocation5 + $0x150] sm:$0xff]  ;;  %v3051_v44 = vld [vmem:[#allocation5 + $0x48] sm:$0xff] }
 0x37b   : > { %2244 = vperm.xlu0 %4622, %v2146_v34   ;;  %v3052_v3 = vld [vmem:[#allocation5 + $0x50] sm:$0xff]  ;;  %v3082_v13 = vld [vmem:[#allocation5 + $0x140] sm:$0xff]  ;;  %v3049_v29 = vld [vmem:[#allocation5 + $0x38] sm:$0xff] }
 0x37c   : > { %v3050_v26 = vld [vmem:[#allocation5 + $0x40] sm:$0xff]  ;;  %v3080_v0 = vld [vmem:[#allocation5 + $0x130] sm:$0xff] }
 0x37d   : > { %v3048_v32 = vld [vmem:[#allocation5 + $0x30] sm:$0xff] }
 0x37e   : > { %2259 = vperm.xlu1 %4623, %v2149_v35   ;;  %v3079_v35 = vld [vmem:[#allocation5 + $0x128] sm:$0xff] }
 0x37f   : > { %2254 = vperm.xlu0 %4622, %v2148_v36   ;;  %v3047_v36 = vld [vmem:[#allocation5 + $0x28] sm:$0xff] }
 0x382   : > { %2269 = vperm.xlu1 %4623, %v2151_v37  }
 0x383   : > { %2264 = vperm.xlu0 %4622, %v2150_v38  }
 0x386   : > { %2279 = vperm.xlu1 %4623, %v2153_v39   ;;  %v3078_v39 = vld [vmem:[#allocation5 + $0x120] sm:$0xff] }
 0x387   : > { %2274 = vperm.xlu0 %4622, %v2152_v40   ;;  %v3046_v40 = vld [vmem:[#allocation5 + $0x20] sm:$0xff] }
 0x38a   : > { %2289 = vperm.xlu1 %4623, %v2155_v41  }
 0x38b   : > { %2284 = vperm.xlu0 %4622, %v2154_v42  }
 0x38e   : > { %2299 = vperm.xlu1 %4623, %v2157_v45   ;;  %v3077_v45 = vld [vmem:[#allocation5 + $0x118] sm:$0xff] }
 0x38f   : > { %2294 = vperm.xlu0 %4622, %v2156_v46   ;;  %v3045_v46 = vld [vmem:[#allocation5 + $0x18] sm:$0xff] }
 0x392   : > { %2309 = vperm.xlu1 %4623, %v2159_v47  }
 0x393   : > { %2304 = vperm.xlu0 %4622, %v2158_v53  }
 0x396   : > { %2319 = vperm.xlu1 %4623, %v2161_v48   ;;  %v3076_v48 = vld [vmem:[#allocation5 + $0x110] sm:$0xff] }
 0x397   : > { %2314 = vperm.xlu0 %4622, %v2160_v50   ;;  %v3044_v50 = vld [vmem:[#allocation5 + $0x10] sm:$0xff] }
 0x39a   : > { %2329 = vperm.xlu1 %4623, %v2163_v52  }
 0x39b   : > { %2324 = vperm.xlu0 %4622, %v2162_v2  }
 0x39e   : > { %2339 = vperm.xlu1 %4623, %v2165_v4   ;;  %v3075_v4 = vld [vmem:[#allocation5 + $0x108] sm:$0xff] }
 0x39f   : > { %2334 = vperm.xlu0 %4622, %v2164_v1   ;;  %v3043_v1 = vld [vmem:[#allocation5 + $0x8] sm:$0xff] }
 0x3a2   : > { %2349 = vperm.xlu1 %4623, %v2167_v5  }
 0x3a3   : > { %2344 = vperm.xlu0 %4622, %v2166_v51  }
 0x3a6   : > { %2359 = vperm.xlu1 %4623, %v2169_v6   ;;  %v3074_v6 = vld [vmem:[#allocation5 + $0x100] sm:$0xff] }
 0x3a7   : > { %2354 = vperm.xlu0 %4622, %v2168_v62   ;;  %v3042_v62 = vld [vmem:[#allocation5] sm:$0xff] }
 0x3aa   : > { %2369 = vperm.xlu1 %4623, %v2171_v63   ;;  %v3073_v63 = vld [vmem:[#allocation5 + $0xf8] sm:$0xff] }
 0x3ab   : > { %2364 = vperm.xlu0 %4622, %v2170_v7  }
 0x3ae   : > { %2379 = vperm.xlu1 %4623, %v2173_v61   ;;  %v2201_v61 = vld [vmem:[%s7171_s10 + $0x1f8] sm:$0xff] }
 0x3af   : > { %2374 = vperm.xlu0 %4622, %v2172_v58  }
 0x3b2   : > { %2389 = vperm.xlu1 %4623, %v2175_v57   ;;  %v2200_v57 = vld [vmem:[%s7171_s10 + $0x1f0] sm:$0xff] }
 0x3b3   : > { %2384 = vperm.xlu0 %4622, %v2174_v15   ;;  %v3105_v15 = vld [vmem:[#allocation5 + $0x1f8] sm:$0xff] }
 0x3b6   : > { %2399 = vperm.xlu1 %4623, %v2177_v16  }
 0x3b7   : > { %2394 = vperm.xlu0 %4622, %v2176_v17  }
 0x3ba   : > { %2409 = vperm.xlu1 %4623, %v2179_v8   ;;  %v3104_v8 = vld [vmem:[#allocation5 + $0x1f0] sm:$0xff] }
 0x3bb   : > { %2404 = vperm.xlu0 %4622, %v2178_v60   ;;  %v3072_v60 = vld [vmem:[#allocation5 + $0xf0] sm:$0xff] }
 0x3be   : > { %2419 = vperm.xlu1 %4623, %v2181_v56   ;;  %v3071_v56 = vld [vmem:[#allocation5 + $0xe8] sm:$0xff] }
 0x3bf   : > { %2414 = vperm.xlu0 %4622, %v2180_v18  }
 0x3c2   : > { %2439 = vperm.xlu1 %4623, %v2185_v19   ;;  %v2199_v19 = vld [vmem:[%s7171_s10 + $0x1e8] sm:$0xff] }
 0x3c3   : > { %2424 = vperm.xlu0 %4622, %v2182_v20  }
 0x3c6   : > { %3343 = vperm.xlu1 %4623, %v3089_v21   ;;  %v2198_v21 = vld [vmem:[%s7171_s10 + $0x1e0] sm:$0xff] }
 0x3c7   : > { %3183 = vperm.xlu0 %4622, %v3057_v9   ;;  %v3103_v9 = vld [vmem:[#allocation5 + $0x1e8] sm:$0xff] }
 0x3ca   : > { %3178 = vperm.xlu1 %4623, %v3056_v59  }
 0x3cb   : > { %2434 = vperm.xlu0 %4622, %v2184_v10  }
 0x3ce   : > { %2429 = vperm.xlu1 %4623, %v2183_v11   ;;  %v3102_v11 = vld [vmem:[#allocation5 + $0x1e0] sm:$0xff] }
 0x3cf   : > { %3338 = vperm.xlu0 %4622, %v3088_v14   ;;  %v3070_v14 = vld [vmem:[#allocation5 + $0xe0] sm:$0xff] }
 0x3d2   : > { %3333 = vperm.xlu1 %4623, %v3087_v54   ;;  %v3069_v54 = vld [vmem:[#allocation5 + $0xd8] sm:$0xff] }
 0x3d3   : > { %3173 = vperm.xlu0 %4622, %v3055_v22   ;;  %v2077_v22 = vlaneseq }
 0x3d6   : > { %3328 = vperm.xlu1 %4623, %v3086_v23  }
 0x3d7   : > { %3168 = vperm.xlu0 %4622, %v3054_v55   ;;  %v2197_v55 = vld [vmem:[%s7171_s10 + $0x1d8] sm:$0xff] }
 0x3da   : > { %3323 = vperm.xlu1 %4623, %v3085_v24  }
 0x3db   : > { %3163 = vperm.xlu0 %4622, %v3053_v43   ;;  %v2196_v43 = vld [vmem:[%s7171_s10 + $0x1d0] sm:$0xff] }
 0x3de   : > { %3318 = vperm.xlu1 %4623, %v3084_v49   ;;  %v2078_v49 = vshrl.u32 %v2077_v22, 7 }
 0x3df   : > { %3158 = vperm.xlu0 %4622, %v3052_v3   ;;  %v3101_v3 = vld [vmem:[#allocation5 + $0x1d8] sm:$0xff] }
 0x3e2   : > { %3313 = vperm.xlu1 %4623, %v3083_v25  }
 0x3e3   : > { %3153 = vperm.xlu0 %4622, %v3051_v44  }
 0x3e5   : > { %v5495_v27 = vpop.permute.xlu1 %2214 }
 0x3e6   : > { %v5497_v28 = vpop.permute.xlu0 %2204  ;;  %3308 = vperm.xlu1 %4623, %v3082_v13   ;;  %v3100_v13 = vld [vmem:[#allocation5 + $0x1d0] sm:$0xff] }
 0x3e7   : > { %3148 = vperm.xlu0 %4622, %v3050_v26   ;;  %v5569_v26 = vsub.s32 0, %v2078_v49 }
 0x3e9   : > { %v5499_v30 = vpop.permute.xlu1 %2219 }
 0x3ea   : > { %v5501_v31 = vpop.permute.xlu0 %2209  ;;  %3303 = vperm.xlu1 %4623, %v3081_v12   ;;  %v3068_v12 = vld [vmem:[#allocation5 + $0xd0] sm:$0xff] }
 0x3eb   : > { %3143 = vperm.xlu0 %4622, %v3049_v29   ;;  %v2074_v29 = vld [vmem:[%s663_s20] sm:$0x3] }
 0x3ed   : > { %v5503_v33 = vpop.permute.xlu1 %2229 }
 0x3ee   : > { %7172 = vst [vmem:[#allocation16_spill] sm:$0xff] %v5503_v33  ;;  %v5505_v34 = vpop.permute.xlu0 %2224  ;;  %3298 = vperm.xlu1 %4623, %v3080_v0   ;;  %v2075_v0 = vld [vmem:[%s668_s29] sm:$0x3] }
 0x3ef   : > { %7173 = vst [vmem:[#allocation17_spill] sm:$0xff] %v5505_v34  ;;  %3138 = vperm.xlu0 %4622, %v3048_v32   ;;  %v5581_v32 = vsub.s32 1, %v2078_v49 }
 0x3f1   : > { %v5507_v37 = vpop.permute.xlu1 %2239 }
 0x3f2   : > { %7174 = vst [vmem:[#allocation18_spill] sm:$0xff] %v5507_v37  ;;  %v5509_v38 = vpop.permute.xlu0 %2234  ;;  %3293 = vperm.xlu1 %4623, %v3079_v35   ;;  %v2080_v35 = vrot.slane %v2074_v29, %v5569_v26 }
 0x3f3   : > { %7175 = vst [vmem:[#allocation19_spill] sm:$0xff] %v5509_v38  ;;  %3133 = vperm.xlu0 %4622, %v3047_v36   ;;  %v2093_v36 = vrot.slane %v2075_v0, %v5569_v26 }
 0x3f5   : > { %v5511_v41 = vpop.permute.xlu1 %2249 }
 0x3f6   : > { %7176 = vst [vmem:[#allocation20_spill] sm:$0xff] %v5511_v41  ;;  %v5513_v42 = vpop.permute.xlu0 %2244  ;;  %3288 = vperm.xlu1 %4623, %v3078_v39   ;;  %v3067_v39 = vld [vmem:[#allocation5 + $0xc8] sm:$0xff] }
 0x3f7   : > { %7177 = vst [vmem:[#allocation21_spill] sm:$0xff] %v5513_v42  ;;  %3128 = vperm.xlu0 %4622, %v3046_v40  }
 0x3f9   : > { %v5515_v47 = vpop.permute.xlu1 %2259 }
 0x3fa   : > { %7178 = vst [vmem:[#allocation22_spill] sm:$0xff] %v5515_v47  ;;  %v5517_v53 = vpop.permute.xlu0 %2254  ;;  %3283 = vperm.xlu1 %4623, %v3077_v45   ;;  %v2195_v45 = vld [vmem:[%s7171_s10 + $0x1c8] sm:$0xff] }
 0x3fb   : > { %7179 = vst [vmem:[#allocation23_spill] sm:$0xff] %v5517_v53  ;;  %3123 = vperm.xlu0 %4622, %v3045_v46  }
 0x3fd   : > { %v5519_v52 = vpop.permute.xlu1 %2269 }
 0x3fe   : > { %7180 = vst [vmem:[#allocation24_spill] sm:$0xff] %v5519_v52  ;;  %v5521_v2 = vpop.permute.xlu0 %2264  ;;  %3278 = vperm.xlu1 %4623, %v3076_v48  }
 0x3ff   : > { %7181 = vst [vmem:[#allocation25_spill] sm:$0xff] %v5521_v2  ;;  %3118 = vperm.xlu0 %4622, %v3044_v50   ;;  %v2084_v50 = vrot.slane %v2074_v29, %v5581_v32 }
 0x401   : > { %v5523_v5 = vpop.permute.xlu1 %2279 }
 0x402   : > { %7182 = vst [vmem:[#allocation26_spill] sm:$0xff] %v5523_v5  ;;  %3273 = vperm.xlu1 %4623, %v3075_v4   ;;  %v5525_v51 = vpop.permute.xlu0 %2274  ;;  %v2097_v4 = vrot.slane %v2075_v0, %v5581_v32 }
 0x403   : > { %7183 = vst [vmem:[#allocation27_spill] sm:$0xff] %v5525_v51  ;;  %3113 = vperm.xlu0 %4622, %v3043_v1  }
 0x405   : > { %v5527_v7 = vpop.permute.xlu1 %2289 }
 0x406   : > { %3268 = vperm.xlu1 %4623, %v3074_v6   ;;  %7184 = vst [vmem:[#allocation28_spill] sm:$0xff] %v5527_v7  ;;  %v5532_v58 = vpop.permute.xlu0 %2284 }
 0x407   : > { %3108 = vperm.xlu0 %4622, %v3042_v62   ;;  %7185 = vst [vmem:[#allocation29_spill] sm:$0xff] %v5532_v58 }
 0x409   : > { %v5537_v16 = vpop.permute.xlu1 %2299 }
 0x40a   : > { %3263 = vperm.xlu1 %4623, %v3073_v63   ;;  %7186 = vst [vmem:[#allocation30_spill] sm:$0xff] %v5537_v16  ;;  %v5539_v17 = vpop.permute.xlu0 %2294  ;;  %v2194_v63 = vld [vmem:[%s7171_s10 + $0x1c0] sm:$0xff] }
 0x40b   : > { %2519 = vperm.xlu0 %4622, %v2201_v61   ;;  %7187 = vst [vmem:[#allocation31_spill] sm:$0xff] %v5539_v17 }
 0x40d   : > { %v5541_v18 = vpop.permute.xlu1 %2309 }
 0x40e   : > { %2514 = vperm.xlu1 %4623, %v2200_v57   ;;  %7188 = vst [vmem:[#allocation32_spill] sm:$0xff] %v5541_v18  ;;  %v5546_v20 = vpop.permute.xlu0 %2304  ;;  %v3099_v57 = vld [vmem:[#allocation5 + $0x1c8] sm:$0xff] }
 0x40f   : > { %3423 = vperm.xlu0 %4622, %v3105_v15   ;;  %7189 = vst [vmem:[#allocation33_spill] sm:$0xff] %v5546_v20 }
 0x411   : > { %v5551_v59 = vpop.permute.xlu1 %2319 }
 0x412   : > { %3418 = vperm.xlu1 %4623, %v3104_v8   ;;  %7190 = vst [vmem:[#allocation34_spill] sm:$0xff] %v5551_v59  ;;  %v5553_v10 = vpop.permute.xlu0 %2314 }
 0x413   : > { %3258 = vperm.xlu0 %4622, %v3072_v60   ;;  %7191 = vst [vmem:[#allocation35_spill] sm:$0xff] %v5553_v10 }
 0x415   : > { %v5555_v23 = vpop.permute.xlu1 %2329 }
 0x416   : > { %3253 = vperm.xlu1 %4623, %v3071_v56   ;;  %7192 = vst [vmem:[#allocation36_spill] sm:$0xff] %v5555_v23  ;;  %v5560_v24 = vpop.permute.xlu0 %2324 }
 0x417   : > { %2509 = vperm.xlu0 %4622, %v2199_v19   ;;  %7193 = vst [vmem:[#allocation37_spill] sm:$0xff] %v5560_v24 }
 0x419   : > { %v5565_v25 = vpop.permute.xlu1 %2339 }
 0x41a   : > { %2504 = vperm.xlu1 %4623, %v2198_v21   ;;  %7194 = vst [vmem:[#allocation38_spill] sm:$0xff] %v5565_v25  ;;  %v5567_v44 = vpop.permute.xlu0 %2334 }
 0x41b   : > { %3413 = vperm.xlu0 %4622, %v3103_v9   ;;  %7195 = vst [vmem:[#allocation39_spill] sm:$0xff] %v5567_v44 }
 0x41d   : > { %v5585_v40 = vpop.permute.xlu1 %2349 }
 0x41e   : > { %3408 = vperm.xlu1 %4623, %v3102_v11   ;;  %7196 = vst [vmem:[#allocation40_spill] sm:$0xff] %v5585_v40  ;;  %v5590_v46 = vpop.permute.xlu0 %2344 }
 0x41f   : > { %3248 = vperm.xlu0 %4622, %v3070_v14   ;;  %7197 = vst [vmem:[#allocation41_spill] sm:$0xff] %v5590_v46 }
 0x421   : > { %v5597_v19 = vpop.permute.xlu1 %2359 }
 0x422   : > { %3243 = vperm.xlu1 %4623, %v3069_v54   ;;  %7198 = vst [vmem:[#allocation42_spill] sm:$0xff] %v5597_v19  ;;  %v5599_v14 = vpop.permute.xlu0 %2354 }
 0x423   : > { %2499 = vperm.xlu0 %4622, %v2197_v55   ;;  %7199 = vst [vmem:[#allocation43_spill] sm:$0xff] %v5599_v14  ;;  %v3098_v55 = vld [vmem:[#allocation5 + $0x1c0] sm:$0xff] }
 0x426   : > { %2494 = vperm.xlu1 %4623, %v2196_v43  }
 0x427   : > { %3403 = vperm.xlu0 %4622, %v3101_v3  }
 0x42a   : > { %3398 = vperm.xlu1 %4623, %v3100_v13  }
 0x42b   : > { %3238 = vperm.xlu0 %4622, %v3068_v12   ;;  %v3066_v12 = vld [vmem:[#allocation5 + $0xc0] sm:$0xff] }
 0x42d   : > { %v2069_v48 = vpop.f32.mrf.mxu0 }
 0x42e   : > { %3233 = vperm.xlu1 %4623, %v3067_v39   ;;  %v2087_v1 = vmul.f32 %v2080_v35, %v2069_v48  ;;  %v2100_v6 = vmul.f32 %v2093_v36, %v2069_v48  ;;  %v2118_v62 = vsub.f32 0.0, %v2069_v48  ;;  %v2112_v8 = vrot.slane %v2069_v48, 2  ;;  %v3065_v48 = vld [vmem:[#allocation5 + $0xb8] sm:$0xff] }
 0x42f   : > { %2489 = vperm.xlu0 %4622, %v2195_v45   ;;  %v2071_v61 = vpop.f32.mrf.mxu0 }
 0x430   : > { %v2104_v15 = vrot.slane %v2100_v6, 1  ;;  %v2120_v60 = vmul.f32 %v2118_v62, %v2080_v35  ;;  %v2122_v56 = vrot.slane %v2100_v6, 7  ;;  %v2088_v21 = vmul.f32 %v2084_v50, %v2071_v61  ;;  %v2193_v62 = vld [vmem:[%s7171_s10 + $0x1b8] sm:$0xff] }
 0x431   : > { %v2101_v9 = vmul.f32 %v2097_v4, %v2071_v61  ;;  %v2119_v11 = vsub.f32 0.0, %v2071_v61  ;;  %v2113_v49 = vrot.slane %v2071_v61, 2  ;;  %v5601_v4 = vpop.permute.xlu1 %2369 }
 0x432   : > { %2484 = vperm.xlu1 %4623, %v2194_v63   ;;  %v2108_v54 = vadd.f32 %v2104_v15, %v2087_v1  ;;  %v2126_v22 = vadd.f32 %v2122_v56, %v2120_v60  ;;  %v2192_v60 = vld [vmem:[%s7171_s10 + $0x1b0] sm:$0xff]  ;;  %v3097_v56 = vld [vmem:[#allocation5 + $0x1b8] sm:$0xff] }
 0x433   : > { %3393 = vperm.xlu0 %4622, %v3099_v57   ;;  %v2105_v43 = vrot.slane %v2101_v9, 1  ;;  %v2121_v3 = vmul.f32 %v2119_v11, %v2084_v50  ;;  %v2123_v13 = vrot.slane %v2101_v9, 7  ;;  %v5606_v50 = vpop.permute.xlu0 %2364 }
 0x434   : > { %v2116_v29 = vadd.f32 %v2112_v8, %v2108_v54  ;;  %v2128_v0 = vadd.f32 %v2126_v22, %v2112_v8 }
 0x435   : > { %v2109_v35 = vadd.f32 %v2105_v43, %v2088_v21  ;;  %v2127_v36 = vadd.f32 %v2123_v13, %v2121_v3  ;;  %v5619_v54 = vpop.permute.xlu1 %2379 }
 0x436   : > { %3388 = vperm.xlu1 %4623, %v3098_v55   ;;  %v2130_v39 = vadd.f32 1.0, %v2116_v29  ;;  %v2134_v45 = vadd.f32 1.0, %v2128_v0 }
 0x437   : > { %3228 = vperm.xlu0 %4622, %v3066_v12   ;;  %v2117_v1 = vadd.f32 %v2113_v49, %v2109_v35  ;;  %v2129_v6 = vadd.f32 %v2127_v36, %v2113_v49  ;;  %v5629_v3 = vpop.permute.xlu0 %2374  ;;  %v3096_v35 = vld [vmem:[#allocation5 + $0x1b0] sm:$0xff] }
 0x438   : > { %v2132_v63 = vmul.f32 9.5, %v2130_v39  ;;  %v2136_v61 = vmul.f32 9.5, %v2134_v45  ;;  %7202 = vst [vmem:[#allocation46_spill] sm:$0xff] %v5629_v3 }
 0x439   : > { %v2131_v57 = vadd.f32 1.0, %v2117_v1  ;;  %v2135_v15 = vadd.f32 1.0, %v2129_v6  ;;  %v3064_v1 = vld [vmem:[#allocation5 + $0xb0] sm:$0xff] }
 0x43a   : > { %3223 = vperm.xlu1 %4623, %v3065_v48   ;;  %v5609_v8 = vrot.slane %v2132_v63, %v5569_v26  ;;  %v5615_v21 = vrot.slane %v2136_v61, %v5581_v32 }
 0x43b   : > { %2479 = vperm.xlu0 %4622, %v2193_v62   ;;  %v2133_v9 = vmul.f32 9.5, %v2131_v57  ;;  %v5617_v11 = vmul.f32 9.5, %v2135_v15 }
 0x43c   : > { %7200 = vst [vmem:[#allocation44_spill] sm:$0xff] %v5609_v8  ;;  %7201 = vst [vmem:[#allocation45_spill] sm:$0xff] %v5615_v21  ;;  %v2530_v22 = vsub.f32 %v5497_v28, %v5609_v8  ;;  %v2532_v55 = vsub.f32 %v5501_v31, %v5609_v8  ;;  %v2534_v43 = vsub.f32 %v5495_v27, %v5609_v8 }
 0x43d   : > { %v2536_v49 = vsub.f32 %v5499_v30, %v5609_v8  ;;  %v2538_v13 = vsub.f32 %v5505_v34, %v5609_v8  ;;  %v2540_v12 = vsub.f32 %v5503_v33, %v5609_v8  ;;  %v2542_v29 = vsub.f32 %v5509_v38, %v5609_v8  ;;  %v7237_v33 = vld [vmem:[#allocation41_spill] sm:$0xff] }
 0x43e   : > { %2474 = vperm.xlu1 %4623, %v2192_v60   ;;  %v2544_v0 = vsub.f32 %v5507_v37, %v5609_v8  ;;  %v2546_v36 = vsub.f32 %v5513_v42, %v5609_v8  ;;  %v2548_v39 = vsub.f32 %v5511_v41, %v5609_v8  ;;  %v2550_v45 = vsub.f32 %v5517_v53, %v5609_v8  ;;  %v3093_v42 = vld [vmem:[#allocation5 + $0x198] sm:$0xff] }
 0x43f   : > { %3383 = vperm.xlu0 %4622, %v3097_v56   ;;  %v2552_v48 = vsub.f32 %v5515_v47, %v5609_v8  ;;  %v2554_v6 = vsub.f32 %v5521_v2, %v5609_v8  ;;  %v2556_v62 = vsub.f32 %v5519_v52, %v5609_v8  ;;  %v2558_v63 = vsub.f32 %v5525_v51, %v5609_v8  ;;  %v5671_v52 = vpop.permute.xlu1 %2389  ;;  %v3095_v2 = vld [vmem:[#allocation5 + $0x1a8] sm:$0xff] }
 0x440   : > { %v2560_v61 = vsub.f32 %v5523_v5, %v5609_v8  ;;  %v2562_v57 = vsub.f32 %v5532_v58, %v5609_v8  ;;  %v2564_v15 = vsub.f32 %v5527_v7, %v5609_v8  ;;  %v2566_v60 = vsub.f32 %v5539_v17, %v5609_v8  ;;  %v3063_v7 = vld [vmem:[#allocation5 + $0xa8] sm:$0xff]  ;;  %7203 = vst [vmem:[#allocation47_spill] sm:$0xff] %v5671_v52  ;;  %v2190_v17 = vld [vmem:[%s7171_s10 + $0x1a0] sm:$0xff] }
 0x441   : > { %v2568_v56 = vsub.f32 %v5537_v16, %v5609_v8  ;;  %v2570_v21 = vsub.f32 %v5546_v20, %v5609_v8  ;;  %v2572_v51 = vsub.f32 %v5541_v18, %v5609_v8  ;;  %v2574_v5 = vsub.f32 %v5553_v10, %v5609_v8 }
 0x442   : > { %3378 = vperm.xlu1 %4623, %v3096_v35   ;;  %v2576_v58 = vsub.f32 %v5551_v59, %v5609_v8  ;;  %v2578_v16 = vsub.f32 %v5560_v24, %v5609_v8  ;;  %v2580_v35 = vsub.f32 %v5555_v23, %v5609_v8  ;;  %v2582_v20 = vsub.f32 %v5567_v44, %v5609_v8  ;;  %v2191_v59 = vld [vmem:[%s7171_s10 + $0x1a8] sm:$0xff] }
 0x443   : > { %3218 = vperm.xlu0 %4622, %v3064_v1   ;;  %v2584_v18 = vsub.f32 %v5565_v25, %v5609_v8  ;;  %v5684_v1 = vpop.permute.xlu0 %2384  ;;  %v2586_v10 = vsub.f32 %v5590_v46, %v5609_v8  ;;  %v2588_v24 = vsub.f32 %v5585_v40, %v5609_v8  ;;  %v2590_v23 = vsub.f32 %v5599_v14, %v5609_v8 }
 0x444   : > { %v2592_v44 = vsub.f32 %v5597_v19, %v5609_v8  ;;  %v5704_v14 = vand.u32 2147483647, %v2530_v22  ;;  %v5706_v47 = vand.u32 2147483647, %v2532_v55  ;;  %v5709_v19 = vrot.slane %v2133_v9, %v5569_v26  ;;  %v3094_v9 = vld [vmem:[#allocation5 + $0x1a0] sm:$0xff] }
 0x445   : > { %v2604_v46 = vsub.f32 %v5671_v52, %v5609_v8  ;;  %v5718_v25 = vand.u32 2147483647, %v2536_v49  ;;  %v5720_v22 = vand.u32 2147483647, %v2538_v13  ;;  %v5722_v55 = vand.u32 2147483647, %v2540_v12  ;;  %v5740_v13 = vpop.permute.xlu1 %2399 }
 0x446   : > { %3213 = vperm.xlu1 %4623, %v3063_v7   ;;  %7204 = vst [vmem:[#allocation48_spill] sm:$0xff] %v5709_v19  ;;  %v5716_v7 = vand.u32 2147483647, %v2534_v43  ;;  %v5724_v40 = vand.u32 2147483647, %v2542_v29  ;;  %v3062_v12 = vld [vmem:[#allocation5 + $0xa0] sm:$0xff] }
 0x447   : > { %2469 = vperm.xlu0 %4622, %v2191_v59   ;;  %v5726_v26 = vand.u32 2147483647, %v2544_v0  ;;  %v5730_v59 = vrot.slane %v5617_v11, %v5581_v32  ;;  %v5732_v53 = vand.u32 2147483647, %v2546_v36  ;;  %v5734_v52 = vand.u32 2147483647, %v2548_v39  ;;  %v5750_v36 = vpop.permute.xlu0 %2394 }
 0x448   : > { %v5736_v43 = vand.u32 2147483647, %v2550_v45  ;;  %v5742_v29 = vand.u32 2147483647, %v2552_v48  ;;  %v5744_v0 = vand.u32 2147483647, %v2554_v6 }
 0x449   : > { %7205 = vst [vmem:[#allocation49_spill] sm:$0xff] %v5730_v59  ;;  %v5746_v32 = vand.u32 2147483647, %v2556_v62  ;;  %7206 = vst [vmem:[#allocation50_spill] sm:$0xff] %v5750_v36  ;;  %v5752_v39 = vand.u32 2147483647, %v2558_v63 }
 0x44a   : > { %2464 = vperm.xlu1 %4623, %v2190_v17   ;;  %v5754_v45 = vand.u32 2147483647, %v2560_v61  ;;  %v5756_v49 = vand.u32 2147483647, %v2562_v57  ;;  %v5760_v48 = vand.u32 2147483647, %v2564_v15  ;;  %v5795_v17 = vpop.permute.xlu1 %2409 }
 0x44b   : > { %3373 = vperm.xlu0 %4622, %v3095_v2   ;;  %v5762_v6 = vand.u32 2147483647, %v2566_v60  ;;  %v5764_v62 = vand.u32 2147483647, %v2568_v56  ;;  %v3061_v59 = vld [vmem:[#allocation5 + $0x98] sm:$0xff]  ;;  %v2189_v15 = vld [vmem:[%s7171_s10 + $0x198] sm:$0xff] }
 0x44c   : > { %7207 = vst [vmem:[#allocation51_spill] sm:$0xff] %v5754_v45  ;;  %7208 = vst [vmem:[#allocation52_spill] sm:$0xff] %v5756_v49  ;;  %v5768_v2 = vand.u32 2147483647, %v2570_v21  ;;  %v5770_v63 = vand.u32 2147483647, %v2572_v51  ;;  %v7214_v45 = vsub.f32 %v5619_v54, %v5609_v8 }
 0x44d   : > { %v5772_v61 = vand.u32 2147483647, %v2574_v5  ;;  %v5779_v60 = vand.u32 2147483647, %v2576_v58  ;;  %v5781_v56 = vand.u32 2147483647, %v2578_v16 }
 0x44e   : > { %3368 = vperm.xlu1 %4623, %v3094_v9   ;;  %v5783_v11 = vand.u32 2147483647, %v2580_v35  ;;  %v5787_v5 = vand.u32 2147483647, %v2582_v20  ;;  %v5789_v21 = vand.u32 2147483647, %v2584_v18  ;;  %v5805_v20 = vpop.permute.xlu0 %2404  ;;  %v5853_v51 = vpop.permute.xlu1 %2419 }
 0x44f   : > { %3208 = vperm.xlu0 %4622, %v3062_v12   ;;  %v5791_v57 = vand.u32 2147483647, %v2586_v10  ;;  %7209 = vst [vmem:[#allocation53_spill] sm:$0xff] %v5795_v17  ;;  %v5797_v58 = vand.u32 2147483647, %v2588_v24  ;;  %7210 = vst [vmem:[#allocation54_spill] sm:$0xff] %v5805_v20  ;;  %v7211_v10 = vsub.f32 %v5606_v50, %v5609_v8 }
 0x450   : > { %v5799_v16 = vand.u32 2147483647, %v2590_v23  ;;  %v5801_v35 = vand.u32 2147483647, %v2592_v44  ;;  %v2188_v18 = vld [vmem:[%s7171_s10 + $0x190] sm:$0xff]  ;;  %v7212_v23 = vsub.f32 %v5601_v4, %v5609_v8  ;;  %v7213_v44 = vsub.f32 %v5629_v3, %v5609_v8  ;;  %7216 = vst [vmem:[#allocation55_spill] sm:$0xff] %v5853_v51 }
 0x451   : > { %v5813_v9 = vand.u32 2147483647, %v7211_v10  ;;  %v5830_v20 = vand.u32 2147483647, %v7214_v45  ;;  %v7215_v10 = vsub.f32 %v5684_v1, %v5609_v8  ;;  %v3060_v51 = vld [vmem:[#allocation5 + $0x90] sm:$0xff]  ;;  %v2186_v45 = vld [vmem:[%s7171_s10 + $0x180] sm:$0xff] }
 0x452   : > { %v5818_v24 = vand.u32 2147483647, %v7212_v23  ;;  %v5823_v12 = vand.u32 2147483647, %v7213_v44  ;;  %3203 = vperm.xlu1 %4623, %v3061_v59   ;;  %v5837_v23 = vand.u32 2147483647, %v2604_v46  ;;  %v5859_v38 = vpop.permute.xlu0 %2414  ;;  %v5881_v37 = vpop.permute.xlu1 %2439 }
 0x453   : > { %v5835_v17 = vand.u32 2147483647, %v7215_v10  ;;  %2459 = vperm.xlu0 %4622, %v2189_v15   ;;  %7217 = vst [vmem:[#allocation56_spill] sm:$0xff] %v5859_v38  ;;  %v3092_v44 = vld [vmem:[#allocation5 + $0x190] sm:$0xff]  ;;  %v3059_v10 = vld [vmem:[#allocation5 + $0x88] sm:$0xff]  ;;  %7218 = vst [vmem:[#allocation57_spill] sm:$0xff] %v5881_v37 }
 0x454   : > { %v7236_v37 = vld [vmem:[#allocation38_spill] sm:$0xff]  ;;  %v7239_v59 = vld [vmem:[#allocation43_spill] sm:$0xff]  ;;  %v7242_v41 = vsub.f32 1.0, %v5704_v14  ;;  %v7244_v46 = vsub.f32 1.0, %v5706_v47  ;;  %v7248_v38 = vsub.f32 1.0, %v5718_v25  ;;  %v7250_v14 = vsub.f32 1.0, %v5720_v22 }
 0x455   : > { %v7252_v47 = vsub.f32 1.0, %v5722_v55  ;;  %v7260_v22 = vsub.f32 1.0, %v5734_v52  ;;  %v7262_v55 = vsub.f32 1.0, %v5736_v43  ;;  %v7270_v52 = vsub.f32 1.0, %v5752_v39 }
 0x456   : > { %2454 = vperm.xlu1 %4623, %v2188_v18   ;;  %v5893_v49 = vpop.permute.xlu0 %2424  ;;  %v7234_v18 = vld [vmem:[#allocation36_spill] sm:$0xff]  ;;  %v5938_v15 = vpop.permute.xlu1 %3343  ;;  %v5946_v34 = vmax.f32 %v7242_v41, 0.0  ;;  %v5960_v3 = vmax.f32 %v7248_v38, 0.0  ;;  %v5964_v41 = vmax.f32 %v7250_v14, 0.0  ;;  %v7258_v38 = vsub.f32 1.0, %v5732_v53 }
 0x457   : > { %3363 = vperm.xlu0 %4622, %v3093_v42   ;;  %7222 = vst [vmem:[#allocation58_spill] sm:$0xff] %v5893_v49  ;;  %v3091_v49 = vld [vmem:[#allocation5 + $0x188] sm:$0xff]  ;;  %7241 = vst [vmem:[#allocation36_spill] sm:$0xff] %v5938_v15  ;;  %v5950_v42 = vmax.f32 %v7244_v46, 0.0  ;;  %v5968_v46 = vmax.f32 %v7252_v47, 0.0  ;;  %v5984_v14 = vmax.f32 %v7260_v22, 0.0 }
 0x458   : > { %7243 = vst [vmem:[#allocation38_spill] sm:$0xff] %v5946_v34  ;;  %7249 = vst [vmem:[#allocation43_spill] sm:$0xff] %v5960_v3  ;;  %v5980_v25 = vmax.f32 %v7258_v38, 0.0  ;;  %v5988_v47 = vmax.f32 %v7262_v55, 0.0  ;;  %v7268_v53 = vsub.f32 1.0, %v5746_v32  ;;  %v6004_v22 = vmax.f32 %v7270_v52, 0.0 }
 0x459   : > { %7245 = vst [vmem:[#allocation41_spill] sm:$0xff] %v5950_v42  ;;  %7251 = vst [vmem:[#allocation59_spill] sm:$0xff] %v5964_v41  ;;  %v7272_v43 = vsub.f32 1.0, %v5760_v48  ;;  %v7278_v32 = vsub.f32 1.0, %v5768_v2  ;;  %v7280_v39 = vsub.f32 1.0, %v5770_v63  ;;  %v7282_v48 = vsub.f32 1.0, %v5772_v61 }
 0x45a   : > { %3358 = vperm.xlu1 %4623, %v3092_v44   ;;  %v2187_v44 = vld [vmem:[%s7171_s10 + $0x188] sm:$0xff]  ;;  %v5952_v36 = vpop.permute.xlu0 %3183  ;;  %7253 = vst [vmem:[#allocation60_spill] sm:$0xff] %v5968_v46  ;;  %7259 = vst [vmem:[#allocation63_spill] sm:$0xff] %v5980_v25  ;;  %v6000_v38 = vmax.f32 %v7268_v53, 0.0  ;;  %v7288_v2 = vsub.f32 1.0, %v5783_v11  ;;  %v7290_v63 = vsub.f32 1.0, %v5787_v5 }
 0x45b   : > { %3198 = vperm.xlu0 %4622, %v3060_v51   ;;  %v3058_v51 = vld [vmem:[#allocation5 + $0x80] sm:$0xff]  ;;  %7261 = vst [vmem:[#allocation64_spill] sm:$0xff] %v5984_v14  ;;  %7263 = vst [vmem:[#allocation65_spill] sm:$0xff] %v5988_v47  ;;  %v6008_v55 = vmax.f32 %v7272_v43, 0.0  ;;  %v6024_v53 = vmax.f32 %v7280_v39, 0.0  ;;  %v6028_v52 = vmax.f32 %v7282_v48, 0.0 }
 0x45c   : > { %7269 = vst [vmem:[#allocation68_spill] sm:$0xff] %v6000_v38  ;;  %7271 = vst [vmem:[#allocation69_spill] sm:$0xff] %v6004_v22  ;;  %v7292_v61 = vsub.f32 1.0, %v5789_v21  ;;  %v7294_v48 = vsub.f32 1.0, %v5791_v57  ;;  %v7298_v11 = vsub.f32 1.0, %v5799_v16  ;;  %v7300_v5 = vsub.f32 1.0, %v5801_v35 }
 0x45d   : > { %7273 = vst [vmem:[#allocation70_spill] sm:$0xff] %v6008_v55  ;;  %7281 = vst [vmem:[#allocation74_spill] sm:$0xff] %v6024_v53  ;;  %v7302_v21 = vsub.f32 1.0, %v5813_v9  ;;  %v7304_v57 = vsub.f32 1.0, %v5818_v24  ;;  %v7308_v16 = vsub.f32 1.0, %v5830_v20  ;;  %v7310_v35 = vsub.f32 1.0, %v5835_v17 }
 0x45e   : > { %3193 = vperm.xlu1 %4623, %v3059_v10   ;;  %v7238_v10 = vld [vmem:[#allocation40_spill] sm:$0xff]  ;;  %7283 = vst [vmem:[#allocation75_spill] sm:$0xff] %v6028_v52  ;;  %v6050_v39 = vmax.f32 %v7292_v61, 0.0  ;;  %v7312_v9 = vsub.f32 1.0, %v5837_v23  ;;  %v2608_v24 = vsub.f32 %v5740_v13, %v5609_v8  ;;  %v7314_v20 = vsub.f32 %v5497_v28, %v5709_v19  ;;  %v7360_v46 = vld [vmem:[#allocation34_spill] sm:$0xff] }
 0x45f   : > { %2449 = vperm.xlu0 %4622, %v2187_v44   ;;  %v3090_v44 = vld [vmem:[#allocation5 + $0x180] sm:$0xff]  ;;  %v6072_v61 = vmax.f32 %v7302_v21, 0.0  ;;  %v7315_v17 = vsub.f32 %v5501_v31, %v5709_v19  ;;  %v7318_v28 = vsub.f32 %v5499_v30, %v5709_v19  ;;  %v7319_v31 = vld [vmem:[#allocation17_spill] sm:$0xff]  ;;  %v7325_v30 = vld [vmem:[#allocation50_spill] sm:$0xff] }
 0x460   : > { %7293 = vst [vmem:[#allocation80_spill] sm:$0xff] %v6050_v39  ;;  %v6092_v21 = vmax.f32 %v7312_v9, 0.0  ;;  %v2736_v55 = vand.u32 2147483647, %v2608_v24  ;;  %v7332_v39 = vld [vmem:[#allocation23_spill] sm:$0xff] }
 0x461   : > { %7303 = vst [vmem:[#allocation85_spill] sm:$0xff] %v6072_v61  ;;  %v6108_v23 = vand.u32 2147483647, %v7315_v17  ;;  %v7320_v17 = vsub.f32 %v7319_v31, %v5709_v19  ;;  %v7326_v31 = vld [vmem:[#allocation18_spill] sm:$0xff]  ;;  %v7347_v61 = vld [vmem:[#allocation28_spill] sm:$0xff] }
 0x462   : > { %2444 = vperm.xlu1 %4623, %v2186_v45   ;;  %v7246_v45 = vsub.f32 1.0, %v5716_v7  ;;  %v7256_v7 = vsub.f32 1.0, %v5726_v26  ;;  %v7266_v26 = vsub.f32 1.0, %v5744_v0  ;;  %v7276_v0 = vsub.f32 1.0, %v5764_v62  ;;  %v6034_v62 = vpop.permute.xlu1 %3178  ;;  %7313 = vst [vmem:[#allocation90_spill] sm:$0xff] %v6092_v21  ;;  %v7363_v21 = vld [vmem:[#allocation37_spill] sm:$0xff] }
 0x463   : > { %3353 = vperm.xlu0 %4622, %v3091_v49   ;;  %v7254_v49 = vsub.f32 1.0, %v5724_v40  ;;  %v7264_v40 = vsub.f32 1.0, %v5742_v29  ;;  %v7274_v29 = vsub.f32 1.0, %v5762_v6  ;;  %v7284_v6 = vsub.f32 1.0, %v5779_v60  ;;  %v6052_v60 = vpop.permute.xlu0 %2434 }
 0x464   : > { %v5956_v15 = vmax.f32 %v7246_v45, 0.0  ;;  %v5976_v45 = vmax.f32 %v7256_v7, 0.0  ;;  %v5996_v7 = vmax.f32 %v7266_v26, 0.0  ;;  %v6016_v26 = vmax.f32 %v7276_v0, 0.0 }
 0x465   : > { %v5972_v34 = vmax.f32 %v7254_v49, 0.0  ;;  %v5992_v49 = vmax.f32 %v7264_v40, 0.0  ;;  %v6012_v40 = vmax.f32 %v7274_v29, 0.0  ;;  %v6032_v43 = vmax.f32 %v7284_v6, 0.0 }
 0x466   : > { %7247 = vst [vmem:[#allocation40_spill] sm:$0xff] %v5956_v15  ;;  %7257 = vst [vmem:[#allocation62_spill] sm:$0xff] %v5976_v45  ;;  %3348 = vperm.xlu1 %4623, %v3090_v44   ;;  %v6020_v44 = vmax.f32 %v7278_v32, 0.0  ;;  %v6042_v0 = vmax.f32 %v7288_v2, 0.0  ;;  %v6046_v32 = vmax.f32 %v7290_v63, 0.0  ;;  %v6056_v6 = vmax.f32 %v7294_v48, 0.0 }
 0x467   : > { %7255 = vst [vmem:[#allocation61_spill] sm:$0xff] %v5972_v34  ;;  %7265 = vst [vmem:[#allocation66_spill] sm:$0xff] %v5992_v49  ;;  %3188 = vperm.xlu0 %4622, %v3058_v51   ;;  %v7286_v51 = vsub.f32 1.0, %v5781_v56  ;;  %v7296_v56 = vsub.f32 1.0, %v5797_v58  ;;  %v6064_v2 = vmax.f32 %v7298_v11, 0.0  ;;  %v6068_v63 = vmax.f32 %v7300_v5, 0.0  ;;  %v6141_v53 = vpop.permute.xlu0 %3338 }
 0x468   : > { %7267 = vst [vmem:[#allocation67_spill] sm:$0xff] %v5996_v7  ;;  %7275 = vst [vmem:[#allocation71_spill] sm:$0xff] %v6012_v40  ;;  %v6076_v48 = vmax.f32 %v7304_v57, 0.0  ;;  %v7306_v58 = vsub.f32 1.0, %v5823_v12  ;;  %v6084_v11 = vmax.f32 %v7308_v16, 0.0  ;;  %v6088_v5 = vmax.f32 %v7310_v35, 0.0  ;;  %v6122_v40 = vpop.permute.xlu1 %2429 }
 0x469   : > { %7277 = vst [vmem:[#allocation72_spill] sm:$0xff] %v6016_v26  ;;  %7279 = vst [vmem:[#allocation73_spill] sm:$0xff] %v6020_v44  ;;  %v6038_v29 = vmax.f32 %v7286_v51, 0.0  ;;  %v6060_v51 = vmax.f32 %v7296_v56, 0.0  ;;  %v2609_v12 = vsub.f32 %v5740_v13, %v5709_v19  ;;  %v2603_v57 = vsub.f32 %v5684_v1, %v5709_v19  ;;  %v7317_v13 = vld [vmem:[#allocation47_spill] sm:$0xff]  ;;  %v7349_v15 = vld [vmem:[#allocation53_spill] sm:$0xff] }
 0x46a   : > { %7285 = vst [vmem:[#allocation76_spill] sm:$0xff] %v6032_v43  ;;  %7289 = vst [vmem:[#allocation78_spill] sm:$0xff] %v6042_v0  ;;  %v6080_v56 = vmax.f32 %v7306_v58, 0.0  ;;  %v6103_v58 = vand.u32 2147483647, %v7314_v20  ;;  %v7316_v16 = vsub.f32 %v5495_v27, %v5709_v19  ;;  %v2605_v9 = vsub.f32 %v7317_v13, %v5709_v19  ;;  %v7321_v27 = vld [vmem:[#allocation16_spill] sm:$0xff] }
 0x46b   : > { %7287 = vst [vmem:[#allocation77_spill] sm:$0xff] %v6038_v29  ;;  %7291 = vst [vmem:[#allocation79_spill] sm:$0xff] %v6046_v32  ;;  %v2737_v1 = vand.u32 2147483647, %v2609_v12  ;;  %v6120_v20 = vand.u32 2147483647, %v7318_v28  ;;  %v2606_v28 = vsub.f32 %v7325_v30, %v5609_v8  ;;  %v6237_v34 = vpop.permute.xlu0 %3173 }
 0x46c   : > { %7295 = vst [vmem:[#allocation81_spill] sm:$0xff] %v6056_v6  ;;  %7297 = vst [vmem:[#allocation82_spill] sm:$0xff] %v6060_v51  ;;  %v6113_v35 = vand.u32 2147483647, %v7316_v16  ;;  %v6127_v26 = vand.u32 2147483647, %v7320_v17  ;;  %v7322_v16 = vsub.f32 %v7321_v27, %v5709_v19  ;;  %v7327_v17 = vsub.f32 %v7326_v31, %v5709_v19 }
 0x46d   : > { %7299 = vst [vmem:[#allocation83_spill] sm:$0xff] %v6064_v2  ;;  %7301 = vst [vmem:[#allocation84_spill] sm:$0xff] %v6068_v63  ;;  %v7323_v13 = vld [vmem:[#allocation19_spill] sm:$0xff]  ;;  %v2864_v52 = vsub.f32 1.0, %v2736_v55  ;;  %v2865_v43 = vsub.f32 1.0, %v2737_v1  ;;  %v7328_v27 = vld [vmem:[#allocation21_spill] sm:$0xff]  ;;  %v7333_v6 = vsub.f32 %v7332_v39, %v5709_v19 }
 0x46e   : > { %7305 = vst [vmem:[#allocation86_spill] sm:$0xff] %v6076_v48  ;;  %7307 = vst [vmem:[#allocation87_spill] sm:$0xff] %v6080_v56  ;;  %v6132_v44 = vand.u32 2147483647, %v7322_v16  ;;  %v7324_v24 = vsub.f32 %v7323_v13, %v5709_v19  ;;  %v6146_v29 = vand.u32 2147483647, %v7327_v17  ;;  %v7329_v16 = vsub.f32 %v7328_v27, %v5709_v19 }
 0x46f   : > { %7309 = vst [vmem:[#allocation88_spill] sm:$0xff] %v6084_v11  ;;  %7311 = vst [vmem:[#allocation89_spill] sm:$0xff] %v6088_v5  ;;  %v7330_v13 = vld [vmem:[#allocation20_spill] sm:$0xff]  ;;  %v6161_v55 = vand.u32 2147483647, %v7333_v6  ;;  %v7334_v1 = vld [vmem:[#allocation22_spill] sm:$0xff]  ;;  %v2607_v27 = vsub.f32 %v7325_v30, %v5709_v19 }
 0x470   : > { %v6137_v12 = vand.u32 2147483647, %v7324_v24  ;;  %v6151_v0 = vand.u32 2147483647, %v7329_v16  ;;  %v7331_v24 = vsub.f32 %v7330_v13, %v5709_v19  ;;  %v7335_v31 = vsub.f32 %v7334_v1, %v5709_v19  ;;  %v7338_v13 = vld [vmem:[#allocation25_spill] sm:$0xff]  ;;  %v7340_v39 = vld [vmem:[#allocation24_spill] sm:$0xff] }
 0x471   : > { %v6170_v16 = vmax.f32 %v2864_v52, 0.0  ;;  %v6172_v51 = vmax.f32 %v2865_v43, 0.0  ;;  %v7341_v6 = vsub.f32 %v7340_v39, %v5709_v19  ;;  %v7342_v1 = vld [vmem:[#allocation27_spill] sm:$0xff]  ;;  %v7344_v30 = vld [vmem:[#allocation29_spill] sm:$0xff]  ;;  %v7356_v39 = vld [vmem:[#allocation32_spill] sm:$0xff]  ;;  %v2793_v22 = vsub.f32 1.0, %v6120_v20 }
 0x472   : > { %v6156_v32 = vand.u32 2147483647, %v7331_v24  ;;  %v6166_v17 = vand.u32 2147483647, %v7335_v31  ;;  %v7339_v24 = vsub.f32 %v7338_v13, %v5709_v19  ;;  %v7343_v31 = vsub.f32 %v7342_v1, %v5709_v19  ;;  %v7352_v1 = vld [vmem:[#allocation30_spill] sm:$0xff]  ;;  %v7358_v11 = vld [vmem:[#allocation35_spill] sm:$0xff] }
 0x473   : > { %7336 = vst [vmem:[#allocation47_spill] sm:$0xff] %v6170_v16  ;;  %7337 = vst [vmem:[#allocation17_spill] sm:$0xff] %v6172_v51  ;;  %v6182_v63 = vand.u32 2147483647, %v7341_v6  ;;  %v7345_v52 = vsub.f32 %v7344_v30, %v5709_v19  ;;  %v7348_v13 = vsub.f32 %v7347_v61, %v5709_v19  ;;  %v7350_v6 = vld [vmem:[#allocation31_spill] sm:$0xff]  ;;  %v7354_v30 = vld [vmem:[#allocation33_spill] sm:$0xff]  ;;  %v7368_v51 = vsub.f32 %v7236_v37, %v5709_v19 }
 0x474   : > { %v6177_v2 = vand.u32 2147483647, %v7339_v24  ;;  %v6187_v42 = vand.u32 2147483647, %v7343_v31  ;;  %v7351_v48 = vsub.f32 %v7350_v6, %v5709_v19  ;;  %v7353_v31 = vsub.f32 %v7352_v1, %v5709_v19  ;;  %v7362_v5 = vld [vmem:[#allocation54_spill] sm:$0xff]  ;;  %v7366_v45 = vld [vmem:[#allocation39_spill] sm:$0xff] }
 0x475   : > { %v6192_v43 = vand.u32 2147483647, %v7345_v52  ;;  %v6197_v24 = vand.u32 2147483647, %v7348_v13  ;;  %v7355_v52 = vsub.f32 %v7354_v30, %v5709_v19  ;;  %v6218_v13 = vpop.permute.xlu1 %3333  ;;  %v7357_v6 = vsub.f32 %v7356_v39, %v5709_v19  ;;  %v7373_v37 = vld [vmem:[#allocation42_spill] sm:$0xff] }
 0x476   : > { %v6204_v3 = vand.u32 2147483647, %v7351_v48  ;;  %v6209_v56 = vand.u32 2147483647, %v7353_v31  ;;  %v7359_v1 = vsub.f32 %v7358_v11, %v5709_v19  ;;  %v7361_v30 = vsub.f32 %v7360_v46, %v5709_v19 }
 0x477   : > { %7346 = vst [vmem:[#allocation16_spill] sm:$0xff] %v6192_v43  ;;  %v6214_v41 = vand.u32 2147483647, %v7355_v52  ;;  %v6223_v48 = vand.u32 2147483647, %v7357_v6  ;;  %v7364_v39 = vsub.f32 %v7363_v21, %v5709_v19  ;;  %v7365_v11 = vsub.f32 %v7234_v18, %v5709_v19 }
 0x478   : > { %v6228_v31 = vand.u32 2147483647, %v7359_v1  ;;  %v6233_v52 = vand.u32 2147483647, %v7361_v30  ;;  %v7367_v46 = vsub.f32 %v7366_v45, %v5709_v19  ;;  %v6259_v25 = vand.u32 2147483647, %v7368_v51 }
 0x479   : > { %v6242_v6 = vand.u32 2147483647, %v7364_v39  ;;  %v6247_v1 = vand.u32 2147483647, %v7365_v11  ;;  %v7369_v21 = vsub.f32 %v7237_v33, %v5709_v19  ;;  %v7370_v18 = vsub.f32 %v7238_v10, %v5709_v19  ;;  %v7371_v45 = vld [vmem:[#allocation55_spill] sm:$0xff] }
 0x47a   : > { %v6252_v30 = vand.u32 2147483647, %v7367_v46  ;;  %v7372_v61 = vsub.f32 %v7239_v59, %v5709_v19  ;;  %v7374_v51 = vsub.f32 %v7373_v37, %v5709_v19  ;;  %v7375_v33 = vsub.f32 %v5606_v50, %v5709_v19  ;;  %v7377_v59 = vld [vmem:[#allocation46_spill] sm:$0xff]  ;;  %v7380_v50 = vld [vmem:[#allocation56_spill] sm:$0xff] }
 0x47b   : > { %v6264_v39 = vand.u32 2147483647, %v7369_v21  ;;  %v6269_v11 = vand.u32 2147483647, %v7370_v18  ;;  %v7376_v18 = vsub.f32 %v5601_v4, %v5709_v19  ;;  %v7379_v37 = vsub.f32 %v5619_v54, %v5709_v19  ;;  %v7382_v54 = vld [vmem:[#allocation57_spill] sm:$0xff] }
 0x47c   : > { %v6276_v16 = vand.u32 2147483647, %v7372_v61  ;;  %v6281_v14 = vand.u32 2147483647, %v7374_v51  ;;  %v6286_v21 = vand.u32 2147483647, %v7375_v33  ;;  %v7378_v61 = vsub.f32 %v7377_v59, %v5709_v19  ;;  %v6320_v33 = vpop.permute.xlu0 %3168 }
 0x47d   : > { %v6293_v46 = vand.u32 2147483647, %v7376_v18  ;;  %v6303_v51 = vand.u32 2147483647, %v7379_v37  ;;  %v6307_v49 = vand.u32 2147483647, %v2603_v57  ;;  %v6311_v18 = vpop.permute.xlu1 %3328 }
 0x47e   : > { %v6298_v47 = vand.u32 2147483647, %v7378_v61  ;;  %v2734_v10 = vand.u32 2147483647, %v2606_v28  ;;  %v2735_v7 = vand.u32 2147483647, %v2607_v27 }
 0x47f   : > { %7381 = vst [vmem:[#allocation19_spill] sm:$0xff] %v6311_v18  ;;  %v6313_v59 = vand.u32 2147483647, %v2605_v9  ;;  %v2787_v61 = vsub.f32 1.0, %v6103_v58  ;;  %7383 = vst [vmem:[#allocation50_spill] sm:$0xff] %v6320_v33  ;;  %v2789_v27 = vsub.f32 1.0, %v6108_v23 }
 0x480   : > { %v2862_v57 = vsub.f32 1.0, %v2734_v10  ;;  %v2863_v28 = vsub.f32 1.0, %v2735_v7  ;;  %v2791_v4 = vsub.f32 1.0, %v6113_v35  ;;  %v2795_v9 = vsub.f32 1.0, %v6127_v26 }
 0x481   : > { %v2797_v58 = vsub.f32 1.0, %v6132_v44  ;;  %v2799_v18 = vsub.f32 1.0, %v6137_v12  ;;  %v2801_v38 = vsub.f32 1.0, %v6146_v29  ;;  %v2803_v33 = vsub.f32 1.0, %v6151_v0 }
 0x482   : > { %v6328_v37 = vmax.f32 %v2862_v57, 0.0  ;;  %v2805_v7 = vsub.f32 1.0, %v6156_v32  ;;  %v6333_v10 = vmax.f32 %v2863_v28, 0.0  ;;  %v2807_v23 = vsub.f32 1.0, %v6161_v55  ;;  %v6342_v57 = vpop.permute.xlu1 %3323  ;;  %v6348_v28 = vpop.permute.xlu0 %3163 }
 0x483   : > { %v2809_v35 = vsub.f32 1.0, %v6166_v17  ;;  %v2811_v26 = vsub.f32 1.0, %v6177_v2  ;;  %v2813_v44 = vsub.f32 1.0, %v6182_v63  ;;  %v2815_v20 = vsub.f32 1.0, %v6187_v42 }
 0x484   : > { %7384 = vst [vmem:[#allocation18_spill] sm:$0xff] %v6328_v37  ;;  %7385 = vst [vmem:[#allocation21_spill] sm:$0xff] %v6333_v10  ;;  %v2821_v29 = vsub.f32 1.0, %v6197_v24  ;;  %v2823_v0 = vsub.f32 1.0, %v6204_v3  ;;  %v2825_v32 = vsub.f32 1.0, %v6209_v56  ;;  %v2827_v55 = vsub.f32 1.0, %v6214_v41 }
 0x485   : > { %v2829_v17 = vsub.f32 1.0, %v6223_v48  ;;  %v2831_v2 = vsub.f32 1.0, %v6228_v31  ;;  %v2833_v42 = vsub.f32 1.0, %v6233_v52  ;;  %v2835_v63 = vsub.f32 1.0, %v6242_v6  ;;  %v7430_v37 = vld [vmem:[#allocation26_spill] sm:$0xff] }
 0x486   : > { %v2837_v24 = vsub.f32 1.0, %v6247_v1  ;;  %v2839_v12 = vsub.f32 1.0, %v6252_v30  ;;  %v2841_v3 = vsub.f32 1.0, %v6259_v25  ;;  %v2843_v56 = vsub.f32 1.0, %v6264_v39 }
 0x487   : > { %v2845_v41 = vsub.f32 1.0, %v6269_v11  ;;  %v2847_v48 = vsub.f32 1.0, %v6276_v16  ;;  %v2849_v43 = vsub.f32 1.0, %v6281_v14  ;;  %v2851_v31 = vsub.f32 1.0, %v6286_v21  ;;  %v6374_v14 = vpop.permute.xlu1 %3318 }
 0x488   : > { %v2853_v52 = vsub.f32 1.0, %v6293_v46  ;;  %v2855_v6 = vsub.f32 1.0, %v6298_v47  ;;  %v2857_v1 = vsub.f32 1.0, %v6303_v51  ;;  %v2859_v30 = vsub.f32 1.0, %v6307_v49  ;;  %v6384_v49 = vpop.permute.xlu0 %3158 }
 0x489   : > { %v2861_v25 = vsub.f32 1.0, %v6313_v59  ;;  %v6366_v10 = vmax.f32 %v2787_v61, 0.0  ;;  %v6368_v39 = vmax.f32 %v2789_v27, 0.0  ;;  %v6370_v11 = vmax.f32 %v2791_v4, 0.0 }
 0x48a   : > { %v6372_v16 = vmax.f32 %v2793_v22, 0.0  ;;  %v6376_v21 = vmax.f32 %v2795_v9, 0.0  ;;  %v6378_v46 = vmax.f32 %v2797_v58, 0.0  ;;  %v6380_v47 = vmax.f32 %v2799_v18, 0.0 }
 0x48b   : > { %7386 = vst [vmem:[#allocation20_spill] sm:$0xff] %v6366_v10  ;;  %7387 = vst [vmem:[#allocation23_spill] sm:$0xff] %v6368_v39  ;;  %v6382_v51 = vmax.f32 %v2801_v38, 0.0  ;;  %v6386_v59 = vmax.f32 %v2803_v33, 0.0  ;;  %v6388_v61 = vmax.f32 %v2805_v7, 0.0  ;;  %v6390_v4 = vmax.f32 %v2807_v23, 0.0 }
 0x48c   : > { %7388 = vst [vmem:[#allocation22_spill] sm:$0xff] %v6370_v11  ;;  %7389 = vst [vmem:[#allocation25_spill] sm:$0xff] %v6372_v16  ;;  %v6392_v22 = vmax.f32 %v2809_v35, 0.0  ;;  %v6394_v27 = vmax.f32 %v2811_v26, 0.0  ;;  %v6396_v9 = vmax.f32 %v2813_v44, 0.0  ;;  %v6398_v58 = vmax.f32 %v2815_v20, 0.0 }
 0x48d   : > { %7390 = vst [vmem:[#allocation24_spill] sm:$0xff] %v6376_v21  ;;  %7391 = vst [vmem:[#allocation27_spill] sm:$0xff] %v6378_v46  ;;  %v6400_v18 = vmax.f32 %v2821_v29, 0.0  ;;  %v6402_v38 = vmax.f32 %v2823_v0, 0.0  ;;  %v6404_v10 = vmax.f32 %v2825_v32, 0.0  ;;  %v6406_v33 = vmax.f32 %v2827_v55, 0.0  ;;  %v6426_v55 = vpop.permute.xlu1 %3313 }
 0x48e   : > { %7392 = vst [vmem:[#allocation29_spill] sm:$0xff] %v6380_v47  ;;  %7393 = vst [vmem:[#allocation28_spill] sm:$0xff] %v6382_v51  ;;  %v6408_v7 = vmax.f32 %v2829_v17, 0.0  ;;  %v6410_v23 = vmax.f32 %v2831_v2, 0.0  ;;  %v6412_v35 = vmax.f32 %v2833_v42, 0.0  ;;  %v6414_v26 = vmax.f32 %v2835_v63, 0.0 }
 0x48f   : > { %7394 = vst [vmem:[#allocation53_spill] sm:$0xff] %v6400_v18  ;;  %7395 = vst [vmem:[#allocation31_spill] sm:$0xff] %v6402_v38  ;;  %v6416_v44 = vmax.f32 %v2837_v24, 0.0  ;;  %v6418_v20 = vmax.f32 %v2839_v12, 0.0  ;;  %v6420_v29 = vmax.f32 %v2841_v3, 0.0  ;;  %v6422_v0 = vmax.f32 %v2843_v56, 0.0  ;;  %v6436_v24 = vpop.permute.xlu0 %3153 }
 0x490   : > { %7396 = vst [vmem:[#allocation30_spill] sm:$0xff] %v6404_v10  ;;  %7397 = vst [vmem:[#allocation33_spill] sm:$0xff] %v6406_v33  ;;  %v6424_v32 = vmax.f32 %v2845_v41, 0.0  ;;  %v6428_v17 = vmax.f32 %v2847_v48, 0.0  ;;  %v6430_v2 = vmax.f32 %v2849_v43, 0.0  ;;  %v6432_v42 = vmax.f32 %v2851_v31, 0.0 }
 0x491   : > { %7398 = vst [vmem:[#allocation32_spill] sm:$0xff] %v6408_v7  ;;  %7399 = vst [vmem:[#allocation35_spill] sm:$0xff] %v6410_v23  ;;  %v6434_v63 = vmax.f32 %v2853_v52, 0.0  ;;  %v6438_v12 = vmax.f32 %v2855_v6, 0.0  ;;  %v6440_v3 = vmax.f32 %v2857_v1, 0.0  ;;  %v7413_v56 = vsub.f32 %v7349_v15, %v5609_v8  ;;  %v7418_v10 = vld [vmem:[#allocation58_spill] sm:$0xff] }
 0x492   : > { %7400 = vst [vmem:[#allocation34_spill] sm:$0xff] %v6412_v35  ;;  %7401 = vst [vmem:[#allocation54_spill] sm:$0xff] %v6414_v26  ;;  %v7414_v48 = vsub.f32 %v7349_v15, %v5709_v19  ;;  %v7415_v43 = vsub.f32 %v7362_v5, %v5609_v8  ;;  %v7416_v52 = vsub.f32 %v7362_v5, %v5709_v19 }
 0x493   : > { %7402 = vst [vmem:[#allocation37_spill] sm:$0xff] %v6416_v44  ;;  %7403 = vst [vmem:[#allocation39_spill] sm:$0xff] %v6418_v20  ;;  %v2740_v41 = vand.u32 2147483647, %v7413_v56  ;;  %v7417_v6 = vsub.f32 %v7371_v45, %v5609_v8  ;;  %v2618_v33 = vsub.f32 %v7418_v10, %v5609_v8  ;;  %v7419_v15 = vsub.f32 %v7371_v45, %v5709_v19  ;;  %v6474_v45 = vpop.permute.xlu1 %3308 }
 0x494   : > { %7404 = vst [vmem:[#allocation55_spill] sm:$0xff] %v6420_v29  ;;  %7405 = vst [vmem:[#allocation42_spill] sm:$0xff] %v6422_v0  ;;  %v2741_v18 = vand.u32 2147483647, %v7414_v48  ;;  %v2738_v31 = vand.u32 2147483647, %v7415_v43  ;;  %v7420_v43 = vsub.f32 %v7380_v50, %v5609_v8  ;;  %v7421_v26 = vsub.f32 %v7380_v50, %v5709_v19 }
 0x495   : > { %7406 = vst [vmem:[#allocation46_spill] sm:$0xff] %v6424_v32  ;;  %7407 = vst [vmem:[#allocation56_spill] sm:$0xff] %v6428_v17  ;;  %v2739_v38 = vand.u32 2147483647, %v7416_v52  ;;  %v2744_v1 = vand.u32 2147483647, %v7417_v6  ;;  %v2620_v16 = vsub.f32 %v6122_v40, %v5609_v8 }
 0x496   : > { %7408 = vst [vmem:[#allocation57_spill] sm:$0xff] %v6430_v2  ;;  %7409 = vst [vmem:[#allocation91_spill] sm:$0xff] %v6432_v42  ;;  %v2868_v56 = vsub.f32 1.0, %v2740_v41  ;;  %v2869_v7 = vsub.f32 1.0, %v2741_v18  ;;  %v2745_v48 = vand.u32 2147483647, %v7419_v15 }
 0x497   : > { %7410 = vst [vmem:[#allocation92_spill] sm:$0xff] %v6434_v63  ;;  %7411 = vst [vmem:[#allocation93_spill] sm:$0xff] %v6438_v12  ;;  %v2742_v23 = vand.u32 2147483647, %v7420_v43  ;;  %v2866_v35 = vsub.f32 1.0, %v2738_v31  ;;  %v2867_v5 = vsub.f32 1.0, %v2739_v38 }
 0x498   : > { %7412 = vst [vmem:[#allocation94_spill] sm:$0xff] %v6440_v3  ;;  %v2872_v52 = vsub.f32 1.0, %v2744_v1  ;;  %v2743_v6 = vand.u32 2147483647, %v7421_v26  ;;  %v6468_v44 = vmax.f32 %v2859_v30, 0.0  ;;  %v6470_v20 = vmax.f32 %v2861_v25, 0.0  ;;  %v6482_v1 = vpop.permute.xlu0 %3148 }
 0x499   : > { %v6472_v18 = vmax.f32 %v2868_v56, 0.0  ;;  %v2873_v41 = vsub.f32 1.0, %v2745_v48  ;;  %v6476_v15 = vmax.f32 %v2869_v7, 0.0  ;;  %v6478_v29 = vmax.f32 %v2866_v35, 0.0 }
 0x49a   : > { %7422 = vst [vmem:[#allocation58_spill] sm:$0xff] %v6468_v44  ;;  %7423 = vst [vmem:[#allocation95_spill] sm:$0xff] %v6470_v20  ;;  %v6480_v31 = vmax.f32 %v2867_v5, 0.0  ;;  %v2870_v38 = vsub.f32 1.0, %v2742_v23  ;;  %v6484_v50 = vmax.f32 %v2872_v52, 0.0  ;;  %v2871_v30 = vsub.f32 1.0, %v2743_v6 }
 0x49b   : > { %v7425_v25 = vsub.f32 %v7382_v54, %v5609_v8  ;;  %v7426_v56 = vsub.f32 %v7382_v54, %v5709_v19  ;;  %v6492_v7 = vmax.f32 %v2873_v41, 0.0  ;;  %v2619_v35 = vsub.f32 %v7418_v10, %v5709_v19  ;;  %v7427_v23 = vld [vmem:[#allocation45_spill] sm:$0xff]  ;;  %v7428_v5 = vld [vmem:[#allocation36_spill] sm:$0xff] }
 0x49c   : > { %7424 = vst [vmem:[#allocation96_spill] sm:$0xff] %v6480_v31  ;;  %v2746_v43 = vand.u32 2147483647, %v2618_v33  ;;  %v3528_v0 = vsub.f32 %v7428_v5, %v7427_v23  ;;  %v7429_v6 = vld [vmem:[#allocation49_spill] sm:$0xff]  ;;  %v6504_v42 = vmax.f32 %v2870_v38, 0.0  ;;  %v6506_v10 = vmax.f32 %v2871_v30, 0.0  ;;  %v6510_v11 = vpop.permute.xlu0 %3143 }
 0x49d   : > { %v2752_v26 = vand.u32 2147483647, %v7425_v25  ;;  %v2753_v48 = vand.u32 2147483647, %v7426_v56  ;;  %v3529_v17 = vsub.f32 %v7428_v5, %v7429_v6  ;;  %v3464_v25 = vsub.f32 %v5952_v36, %v7427_v23 }
 0x49e   : > { %v2747_v2 = vand.u32 2147483647, %v2619_v35  ;;  %v2874_v54 = vsub.f32 1.0, %v2746_v43  ;;  %v3656_v56 = vand.u32 2147483647, %v3528_v0  ;;  %v3465_v41 = vsub.f32 %v5952_v36, %v7429_v6 }
 0x49f   : > { %v2880_v52 = vsub.f32 1.0, %v2752_v26  ;;  %v2881_v32 = vsub.f32 1.0, %v2753_v48  ;;  %v3657_v33 = vand.u32 2147483647, %v3529_v17  ;;  %v3592_v63 = vand.u32 2147483647, %v3464_v25  ;;  %v6508_v26 = vpop.permute.xlu1 %3303 }
 0x4a0   : > { %v2875_v5 = vsub.f32 1.0, %v2747_v2  ;;  %v3784_v12 = vsub.f32 1.0, %v3656_v56  ;;  %v6512_v35 = vmax.f32 %v2874_v54, 0.0  ;;  %v3462_v36 = vsub.f32 %v6034_v62, %v7427_v23 }
 0x4a1   : > { %v3008_v48 = vmax.f32 %v2880_v52, 0.0  ;;  %v3009_v39 = vmax.f32 %v2881_v32, 0.0  ;;  %v3785_v0 = vsub.f32 1.0, %v3657_v33  ;;  %v3463_v38 = vsub.f32 %v6034_v62, %v7429_v6 }
 0x4a2   : > { %v3593_v30 = vand.u32 2147483647, %v3465_v41  ;;  %v3720_v17 = vsub.f32 1.0, %v3592_v63  ;;  %v2622_v43 = vsub.f32 %v6052_v60, %v5609_v8  ;;  %v2623_v32 = vsub.f32 %v6052_v60, %v5709_v19 }
 0x4a3   : > { %v6522_v2 = vmax.f32 %v2875_v5, 0.0  ;;  %v3912_v52 = vmax.f32 %v3784_v12, 0.0  ;;  %v3590_v25 = vand.u32 2147483647, %v3462_v36  ;;  %v3591_v54 = vand.u32 2147483647, %v3463_v38  ;;  %v6530_v60 = vpop.permute.xlu1 %3298  ;;  %v6534_v38 = vpop.permute.xlu0 %3138 }
 0x4a4   : > { %v3913_v56 = vmax.f32 %v3785_v0, 0.0  ;;  %v2750_v33 = vand.u32 2147483647, %v2622_v43  ;;  %v2751_v3 = vand.u32 2147483647, %v2623_v32  ;;  %v2621_v63 = vsub.f32 %v6122_v40, %v5709_v19 }
 0x4a5   : > { %v3718_v62 = vsub.f32 1.0, %v3590_v25  ;;  %v3719_v41 = vsub.f32 1.0, %v3591_v54  ;;  %v3526_v44 = vsub.f32 %v6141_v53, %v7427_v23  ;;  %v3848_v5 = vmax.f32 %v3720_v17, 0.0 }
 0x4a6   : > { %v2878_v12 = vsub.f32 1.0, %v2750_v33  ;;  %v2748_v36 = vand.u32 2147483647, %v2620_v16  ;;  %v3527_v0 = vsub.f32 %v6141_v53, %v7429_v6  ;;  %v4040_v43 = vmul.f32 %v3912_v52, %v3008_v48 }
 0x4a7   : > { %v2879_v32 = vsub.f32 1.0, %v2751_v3  ;;  %v2749_v25 = vand.u32 2147483647, %v2621_v63  ;;  %v3654_v54 = vand.u32 2147483647, %v3526_v44  ;;  %v3846_v8 = vmax.f32 %v3718_v62, 0.0  ;;  %v6542_v62 = vpop.permute.xlu1 %3293 }
 0x4a8   : > { %v3847_v21 = vmax.f32 %v3719_v41, 0.0  ;;  %v2876_v40 = vsub.f32 1.0, %v2748_v36  ;;  %v3655_v20 = vand.u32 2147483647, %v3527_v0  ;;  %v2561_v17 = vsub.f32 %v7430_v37, %v5709_v19 }
 0x4a9   : > { %v2877_v46 = vsub.f32 1.0, %v2749_v25  ;;  %v3782_v47 = vsub.f32 1.0, %v3654_v54  ;;  %v3721_v33 = vsub.f32 1.0, %v3593_v30  ;;  %v3006_v16 = vmax.f32 %v2878_v12, 0.0  ;;  %v7431_v12 = vld [vmem:[#allocation51_spill] sm:$0xff] }
 0x4aa   : > { %v3783_v51 = vsub.f32 1.0, %v3655_v20  ;;  %v4041_v31 = vmul.f32 %v3913_v56, %v3009_v39  ;;  %v3524_v53 = vsub.f32 %v6218_v13, %v7427_v23  ;;  %v3007_v48 = vmax.f32 %v2879_v32, 0.0  ;;  %v6548_v39 = vpop.permute.xlu0 %3133 }
 0x4ab   : > { %v3004_v3 = vmax.f32 %v2876_v40, 0.0  ;;  %v6540_v52 = vmax.f32 %v2877_v46, 0.0  ;;  %v2689_v44 = vand.u32 2147483647, %v2561_v17  ;;  %v3910_v41 = vmax.f32 %v3782_v47, 0.0  ;;  %v7432_v40 = vld [vmem:[#allocation19_spill] sm:$0xff] }
 0x4ac   : > { %4149 = vmatprep.subr.mxu0 %v4041_v31  ;;  %v3525_v63 = vsub.f32 %v6218_v13, %v7429_v6  ;;  %v3652_v37 = vand.u32 2147483647, %v3524_v53  ;;  %v3460_v20 = vsub.f32 %v6237_v34, %v7427_v23  ;;  %v3849_v56 = vmax.f32 %v3721_v33, 0.0 }
 0x4ad   : > { %v2817_v30 = vsub.f32 1.0, %v2689_v44  ;;  %v3461_v46 = vsub.f32 %v6237_v34, %v7429_v6  ;;  %v2816_v36 = vsub.f32 1.0, %v7431_v12  ;;  %4150 = vmatpush1.msra.mxu0 %v4040_v43  ;;  %v3911_v0 = vmax.f32 %v3783_v51, 0.0 }
 0x4ae   : > { %v3653_v47 = vand.u32 2147483647, %v3525_v63  ;;  %v3780_v31 = vsub.f32 1.0, %v3652_v37  ;;  %v3588_v32 = vand.u32 2147483647, %v3460_v20  ;;  %v3522_v17 = vsub.f32 %v7432_v40, %v7427_v23  ;;  %v6558_v63 = vpop.permute.xlu1 %3288 }
 0x4af   : > { %v2945_v25 = vmax.f32 %v2817_v30, 0.0  ;;  %v3589_v13 = vand.u32 2147483647, %v3461_v46  ;;  %v2944_v54 = vmax.f32 %v2816_v36, 0.0  ;;  %v4038_v53 = vmul.f32 %v3910_v41, %v3006_v16  ;;  %v6560_v36 = vpop.permute.xlu0 %3128 }
 0x4b0   : > { %v3781_v19 = vsub.f32 1.0, %v3653_v47  ;;  %v3975_v33 = vmul.f32 %v3847_v21, %v6398_v58  ;;  %v3523_v34 = vsub.f32 %v7432_v40, %v7429_v6  ;;  %v3650_v51 = vand.u32 2147483647, %v3522_v17  ;;  %v7433_v21 = vld [vmem:[#allocation50_spill] sm:$0xff]  ;;  %v7434_v47 = vld [vmem:[#allocation69_spill] sm:$0xff] }
 0x4b1   : > { %v3977_v44 = vmul.f32 %v3849_v56, %v2945_v25  ;;  %v3717_v12 = vsub.f32 1.0, %v3589_v13  ;;  %v3976_v43 = vmul.f32 %v3848_v5, %v2944_v54  ;;  %v3908_v37 = vmax.f32 %v3780_v31, 0.0 }
 0x4b2   : > { %v3909_v20 = vmax.f32 %v3781_v19, 0.0  ;;  %v3716_v30 = vsub.f32 1.0, %v3588_v32  ;;  %v3651_v46 = vand.u32 2147483647, %v3523_v34  ;;  %v3778_v41 = vsub.f32 1.0, %v3650_v51 }
 0x4b3   : > { %4078 = vmatprep.subr.mxu1 %v3977_v44  ;;  %v3845_v16 = vmax.f32 %v3717_v12, 0.0  ;;  %v3458_v58 = vsub.f32 %v7433_v21, %v7427_v23  ;;  %v3459_v56 = vsub.f32 %v7433_v21, %v7429_v6  ;;  %v3974_v25 = vmul.f32 %v3846_v8, %v7434_v47 }
 0x4b4   : > { %4079 = vmatpush1.msra.mxu1 %v3976_v43  ;;  %v3779_v5 = vsub.f32 1.0, %v3651_v46  ;;  %v4039_v13 = vmul.f32 %v3911_v0, %v3007_v48  ;;  %v3520_v19 = vsub.f32 %v6342_v57, %v7427_v23  ;;  %v3906_v31 = vmax.f32 %v3778_v41, 0.0  ;;  %v6575_v43 = vpop.permute.xlu1 %3283 }
 0x4b5   : > { %4080 = vmatprep.subr.mxu1 %v3975_v33  ;;  %v3586_v32 = vand.u32 2147483647, %v3458_v58  ;;  %v3587_v54 = vand.u32 2147483647, %v3459_v56  ;;  %v3521_v40 = vsub.f32 %v6342_v57, %v7429_v6  ;;  %v4036_v17 = vmul.f32 %v3908_v37, %v3004_v3  ;;  %v6578_v37 = vpop.permute.xlu0 %3123 }
 0x4b6   : > { %4081 = vmatpush1.msra.mxu1 %v3974_v25  ;;  %4151 = vmatprep.subr.mxu0 %v4039_v13  ;;  %v3648_v34 = vand.u32 2147483647, %v3520_v19  ;;  %v3456_v44 = vsub.f32 %v6348_v28, %v7427_v23  ;;  %v3457_v8 = vsub.f32 %v6348_v28, %v7429_v6  ;;  %v3844_v48 = vmax.f32 %v3716_v30, 0.0 }
 0x4b7   : > { %v3714_v0 = vsub.f32 1.0, %v3586_v32  ;;  %v3715_v12 = vsub.f32 1.0, %v3587_v54  ;;  %v3649_v33 = vand.u32 2147483647, %v3521_v40  ;;  %4152 = vmatpush1.msra.mxu0 %v4038_v53  ;;  %v3973_v3 = vmul.f32 %v3845_v16, %v6396_v9  ;;  %v7435_v54 = vld [vmem:[#allocation68_spill] sm:$0xff] }
 0x4b8   : > { %v3776_v51 = vsub.f32 1.0, %v3648_v34  ;;  %v3584_v46 = vand.u32 2147483647, %v3456_v44  ;;  %v3585_v57 = vand.u32 2147483647, %v3457_v8  ;;  %v3907_v41 = vmax.f32 %v3779_v5, 0.0  ;;  %v6591_v34 = vpop.permute.xlu1 %3278 }
 0x4b9   : > { %v4034_v21 = vmul.f32 %v3906_v31, %v6512_v35  ;;  %v3777_v58 = vsub.f32 1.0, %v3649_v33  ;;  %v4037_v28 = vmul.f32 %v3909_v20, %v6540_v52  ;;  %v3842_v30 = vmax.f32 %v3714_v0, 0.0  ;;  %4082 = vmatprep.subr.mxu1 %v3973_v3  ;;  %v6597_v0 = vpop.permute.xlu0 %3118 }
 0x4ba   : > { %v3843_v56 = vmax.f32 %v3715_v12, 0.0  ;;  %v3713_v47 = vsub.f32 1.0, %v3585_v57  ;;  %v3518_v53 = vsub.f32 %v6374_v14, %v7427_v23  ;;  %v3904_v25 = vmax.f32 %v3776_v51, 0.0 }
 0x4bb   : > { %4153 = vmatprep.subr.mxu0 %v4037_v28  ;;  %v3519_v9 = vsub.f32 %v6374_v14, %v7429_v6  ;;  %v3454_v16 = vsub.f32 %v6384_v49, %v7427_v23  ;;  %v3455_v35 = vsub.f32 %v6384_v49, %v7429_v6  ;;  %v3905_v5 = vmax.f32 %v3777_v58, 0.0 }
 0x4bc   : > { %v3712_v52 = vsub.f32 1.0, %v3584_v46  ;;  %v3841_v20 = vmax.f32 %v3713_v47, 0.0  ;;  %v3646_v13 = vand.u32 2147483647, %v3518_v53  ;;  %4154 = vmatpush1.msra.mxu0 %v4036_v17  ;;  %v3972_v40 = vmul.f32 %v3844_v48, %v7435_v54 }
 0x4bd   : > { %v3647_v19 = vand.u32 2147483647, %v3519_v9  ;;  %v3582_v31 = vand.u32 2147483647, %v3454_v16  ;;  %v3583_v32 = vand.u32 2147483647, %v3455_v35  ;;  %v3971_v14 = vmul.f32 %v3843_v56, %v6394_v27 }
 0x4be   : > { %v3774_v44 = vsub.f32 1.0, %v3646_v13  ;;  %v4035_v8 = vmul.f32 %v3907_v41, %v6522_v2  ;;  %v3516_v49 = vsub.f32 %v6426_v55, %v7427_v23  ;;  %4083 = vmatpush1.msra.mxu1 %v3972_v40  ;;  %v3517_v51 = vsub.f32 %v6426_v55, %v7429_v6  ;;  %v7436_v9 = vld [vmem:[#allocation67_spill] sm:$0xff] }
 0x4bf   : > { %v3775_v12 = vsub.f32 1.0, %v3647_v19  ;;  %v3710_v33 = vsub.f32 1.0, %v3582_v31  ;;  %v3711_v17 = vsub.f32 1.0, %v3583_v32  ;;  %4084 = vmatprep.subr.mxu1 %v3971_v14  ;;  %v3452_v27 = vsub.f32 %v6436_v24, %v7427_v23  ;;  %v6609_v19 = vpop.permute.xlu1 %3273  ;;  %v7437_v14 = vld [vmem:[#allocation66_spill] sm:$0xff] }
 0x4c0   : > { %v3902_v48 = vmax.f32 %v3774_v44, 0.0  ;;  %4155 = vmatprep.subr.mxu0 %v4035_v8  ;;  %v3644_v46 = vand.u32 2147483647, %v3516_v49  ;;  %v3453_v2 = vsub.f32 %v6436_v24, %v7429_v6  ;;  %v4032_v57 = vmul.f32 %v3904_v25, %v6484_v50 }
 0x4c1   : > { %v3840_v3 = vmax.f32 %v3712_v52, 0.0  ;;  %v3903_v41 = vmax.f32 %v3775_v12, 0.0  ;;  %v3645_v58 = vand.u32 2147483647, %v3517_v51  ;;  %4156 = vmatpush1.msra.mxu0 %v4034_v21  ;;  %v3838_v28 = vmax.f32 %v3710_v33, 0.0  ;;  %v6614_v52 = vpop.permute.xlu0 %3113 }
 0x4c2   : > { %v3772_v56 = vsub.f32 1.0, %v3644_v46  ;;  %v3580_v47 = vand.u32 2147483647, %v3452_v27  ;;  %v3581_v55 = vand.u32 2147483647, %v3453_v2  ;;  %v3970_v16 = vmul.f32 %v3842_v30, %v7436_v9 }
 0x4c3   : > { %v3773_v53 = vsub.f32 1.0, %v3645_v58  ;;  %v3969_v35 = vmul.f32 %v3841_v20, %v6392_v22  ;;  %v4033_v13 = vmul.f32 %v3905_v5, %v6492_v7  ;;  %v4030_v24 = vmul.f32 %v3902_v48, %v6504_v42  ;;  %v6629_v46 = vpop.permute.xlu1 %3268 }
 0x4c4   : > { %v3839_v50 = vmax.f32 %v3711_v17, 0.0  ;;  %v3709_v25 = vsub.f32 1.0, %v3581_v55  ;;  %v3514_v21 = vsub.f32 %v6474_v45, %v7427_v23  ;;  %v3900_v31 = vmax.f32 %v3772_v56, 0.0  ;;  %4085 = vmatpush1.msra.mxu1 %v3970_v16  ;;  %v7438_v16 = vld [vmem:[#allocation65_spill] sm:$0xff] }
 0x4c5   : > { %4157 = vmatprep.subr.mxu0 %v4033_v13  ;;  %v3515_v30 = vsub.f32 %v6474_v45, %v7429_v6  ;;  %v3450_v22 = vsub.f32 %v6482_v1, %v7427_v23  ;;  %v3451_v7 = vsub.f32 %v6482_v1, %v7429_v6  ;;  %v3901_v42 = vmax.f32 %v3773_v53, 0.0  ;;  %4086 = vmatprep.subr.mxu1 %v3969_v35 }
 0x4c6   : > { %v3708_v5 = vsub.f32 1.0, %v3580_v47  ;;  %v3837_v20 = vmax.f32 %v3709_v25, 0.0  ;;  %v3642_v32 = vand.u32 2147483647, %v3514_v21  ;;  %4158 = vmatpush1.msra.mxu0 %v4032_v57  ;;  %v3968_v8 = vmul.f32 %v3840_v3, %v7437_v14  ;;  %v6635_v57 = vpop.permute.xlu0 %3108  ;;  %v7440_v14 = vld [vmem:[#allocation96_spill] sm:$0xff] }
 0x4c7   : > { %v3643_v54 = vand.u32 2147483647, %v3515_v30  ;;  %v3578_v40 = vand.u32 2147483647, %v3450_v22  ;;  %v3579_v44 = vand.u32 2147483647, %v3451_v7  ;;  %v3967_v45 = vmul.f32 %v3839_v50, %v6390_v4 }
 0x4c8   : > { %v3770_v49 = vsub.f32 1.0, %v3642_v32  ;;  %v4031_v12 = vmul.f32 %v3903_v41, %v6506_v10  ;;  %v3512_v33 = vsub.f32 %v6508_v26, %v7427_v23  ;;  %4087 = vmatpush1.msra.mxu1 %v3968_v8  ;;  %v3513_v48 = vsub.f32 %v6508_v26, %v7429_v6 }
 0x4c9   : > { %v3771_v1 = vsub.f32 1.0, %v3643_v54  ;;  %v3706_v17 = vsub.f32 1.0, %v3578_v40  ;;  %v3707_v51 = vsub.f32 1.0, %v3579_v44  ;;  %4088 = vmatprep.subr.mxu1 %v3967_v45  ;;  %v3448_v4 = vsub.f32 %v6510_v11, %v7427_v23 }
 0x4ca   : > { %v3898_v27 = vmax.f32 %v3770_v49, 0.0  ;;  %4159 = vmatprep.subr.mxu0 %v4031_v12  ;;  %v3640_v2 = vand.u32 2147483647, %v3512_v33  ;;  %v3449_v10 = vsub.f32 %v6510_v11, %v7429_v6  ;;  %v4028_v3 = vmul.f32 %v3900_v31, %v6472_v18 }
 0x4cb   : > { %v3836_v41 = vmax.f32 %v3708_v5, 0.0  ;;  %v3899_v58 = vmax.f32 %v3771_v1, 0.0  ;;  %v3641_v56 = vand.u32 2147483647, %v3513_v48  ;;  %4160 = vmatpush1.msra.mxu0 %v4030_v24  ;;  %v3834_v26 = vmax.f32 %v3706_v17, 0.0  ;;  %v7441_v48 = vld [vmem:[#allocation47_spill] sm:$0xff] }
 0x4cc   : > { %v3768_v47 = vsub.f32 1.0, %v3640_v2  ;;  %v3576_v55 = vand.u32 2147483647, %v3448_v4  ;;  %v3577_v53 = vand.u32 2147483647, %v3449_v10  ;;  %v3966_v35 = vmul.f32 %v3838_v28, %v7438_v16  ;;  %v7443_v16 = vld [vmem:[#allocation28_spill] sm:$0xff] }
 0x4cd   : > { %v3769_v9 = vsub.f32 1.0, %v3641_v56  ;;  %v3965_v13 = vmul.f32 %v3837_v20, %v6388_v61  ;;  %v4029_v50 = vmul.f32 %v3901_v42, %v6476_v15  ;;  %v4026_v11 = vmul.f32 %v3898_v27, %v6478_v29  ;;  %v6650_v15 = vpop.permute.xlu1 %3263  ;;  %v6652_v42 = vpop.permute.xlu0 %2519 }
 0x4ce   : > { %v3835_v25 = vmax.f32 %v3707_v51, 0.0  ;;  %v3705_v21 = vsub.f32 1.0, %v3577_v53  ;;  %v3510_v18 = vsub.f32 %v6530_v60, %v7427_v23  ;;  %v3896_v31 = vmax.f32 %v3768_v47, 0.0  ;;  %4089 = vmatpush1.msra.mxu1 %v3966_v35  ;;  %v7442_v53 = vld [vmem:[#allocation63_spill] sm:$0xff] }
 0x4cf   : > { %4161 = vmatprep.subr.mxu0 %v4029_v50  ;;  %v3511_v24 = vsub.f32 %v6530_v60, %v7429_v6  ;;  %v3446_v28 = vsub.f32 %v6534_v38, %v7427_v23  ;;  %v3447_v61 = vsub.f32 %v6534_v38, %v7429_v6  ;;  %v3897_v29 = vmax.f32 %v3769_v9, 0.0  ;;  %4090 = vmatprep.subr.mxu1 %v3965_v13  ;;  %v7439_v60 = vld [vmem:[#allocation64_spill] sm:$0xff]  ;;  %v7445_v50 = vld [vmem:[#allocation18_spill] sm:$0xff] }
 0x4d0   : > { %v3704_v30 = vsub.f32 1.0, %v3576_v55  ;;  %v3833_v22 = vmax.f32 %v3705_v21, 0.0  ;;  %v3638_v7 = vand.u32 2147483647, %v3510_v18  ;;  %4162 = vmatpush1.msra.mxu0 %v4028_v3  ;;  %v3964_v54 = vmul.f32 %v3836_v41, %v7439_v60 }
 0x4d1   : > { %v3639_v5 = vand.u32 2147483647, %v3511_v24  ;;  %v3574_v20 = vand.u32 2147483647, %v3446_v28  ;;  %v3575_v32 = vand.u32 2147483647, %v3447_v61  ;;  %v3963_v44 = vmul.f32 %v3835_v25, %v6386_v59  ;;  %v6666_v3 = vpop.permute.xlu1 %2514  ;;  %v6668_v47 = vpop.permute.xlu0 %3423 }
 0x4d2   : > { %v3766_v40 = vsub.f32 1.0, %v3638_v7  ;;  %v4027_v38 = vmul.f32 %v3899_v58, %v7440_v14  ;;  %v3508_v8 = vsub.f32 %v6542_v62, %v7427_v23  ;;  %4091 = vmatpush1.msra.mxu1 %v3964_v54  ;;  %v3509_v33 = vsub.f32 %v6542_v62, %v7429_v6  ;;  %v7448_v14 = vld [vmem:[#allocation21_spill] sm:$0xff] }
 0x4d3   : > { %v3767_v49 = vsub.f32 1.0, %v3639_v5  ;;  %v3702_v45 = vsub.f32 1.0, %v3574_v20  ;;  %v3703_v12 = vsub.f32 1.0, %v3575_v32  ;;  %4092 = vmatprep.subr.mxu1 %v3963_v44  ;;  %v3444_v51 = vsub.f32 %v6548_v39, %v7427_v23  ;;  %v7446_v32 = vld [vmem:[#allocation62_spill] sm:$0xff] }
 0x4d4   : > { %v3894_v1 = vmax.f32 %v3766_v40, 0.0  ;;  %4163 = vmatprep.subr.mxu0 %v4027_v38  ;;  %v3636_v17 = vand.u32 2147483647, %v3508_v8  ;;  %v3445_v59 = vsub.f32 %v6548_v39, %v7429_v6  ;;  %v4024_v27 = vmul.f32 %v3896_v31, %v7441_v48  ;;  %v7444_v39 = vld [vmem:[#allocation17_spill] sm:$0xff]  ;;  %v7449_v48 = vld [vmem:[#allocation90_spill] sm:$0xff] }
 0x4d5   : > { %v3832_v2 = vmax.f32 %v3704_v30, 0.0  ;;  %v3895_v4 = vmax.f32 %v3767_v49, 0.0  ;;  %v3637_v10 = vand.u32 2147483647, %v3509_v33  ;;  %4164 = vmatpush1.msra.mxu0 %v4026_v11  ;;  %v3830_v41 = vmax.f32 %v3702_v45, 0.0  ;;  %v6683_v54 = vpop.permute.xlu1 %3418  ;;  %v7447_v40 = vld [vmem:[#allocation29_spill] sm:$0xff]  ;;  %v6689_v8 = vpop.permute.xlu0 %3258 }
 0x4d6   : > { %v3764_v62 = vsub.f32 1.0, %v3636_v17  ;;  %v3572_v58 = vand.u32 2147483647, %v3444_v51  ;;  %v3573_v56 = vand.u32 2147483647, %v3445_v59  ;;  %v3962_v9 = vmul.f32 %v3834_v26, %v7442_v53  ;;  %v7450_v53 = vld [vmem:[#allocation61_spill] sm:$0xff] }
 0x4d7   : > { %v3765_v55 = vsub.f32 1.0, %v3637_v10  ;;  %v3961_v35 = vmul.f32 %v3833_v22, %v7443_v16  ;;  %v4025_v13 = vmul.f32 %v3897_v29, %v7444_v39  ;;  %v4022_v25 = vmul.f32 %v3894_v1, %v7445_v50  ;;  %v7451_v16 = vld [vmem:[#allocation27_spill] sm:$0xff] }
 0x4d8   : > { %v3831_v21 = vmax.f32 %v3703_v12, 0.0  ;;  %v3701_v18 = vsub.f32 1.0, %v3573_v56  ;;  %v3506_v11 = vsub.f32 %v6558_v63, %v7427_v23  ;;  %v3892_v31 = vmax.f32 %v3764_v62, 0.0  ;;  %4093 = vmatpush1.msra.mxu1 %v3962_v9  ;;  %v7452_v39 = vld [vmem:[#allocation95_spill] sm:$0xff] }
 0x4d9   : > { %4165 = vmatprep.subr.mxu0 %v4025_v13  ;;  %v3507_v24 = vsub.f32 %v6558_v63, %v7429_v6  ;;  %v3442_v26 = vsub.f32 %v6560_v36, %v7427_v23  ;;  %v3443_v28 = vsub.f32 %v6560_v36, %v7429_v6  ;;  %v3893_v61 = vmax.f32 %v3765_v55, 0.0  ;;  %4094 = vmatprep.subr.mxu1 %v3961_v35  ;;  %v6701_v50 = vpop.permute.xlu1 %3253 }
 0x4da   : > { %v3700_v29 = vsub.f32 1.0, %v3572_v58  ;;  %v3829_v30 = vmax.f32 %v3701_v18, 0.0  ;;  %v3634_v22 = vand.u32 2147483647, %v3506_v11  ;;  %4166 = vmatpush1.msra.mxu0 %v4024_v27  ;;  %v3960_v60 = vmul.f32 %v3832_v2, %v7446_v32  ;;  %v7454_v32 = vld [vmem:[#allocation60_spill] sm:$0xff] }
 0x4db   : > { %v3635_v7 = vand.u32 2147483647, %v3507_v24  ;;  %v3570_v5 = vand.u32 2147483647, %v3442_v26  ;;  %v3571_v20 = vand.u32 2147483647, %v3443_v28  ;;  %v3959_v44 = vmul.f32 %v3831_v21, %v7447_v40 }
 0x4dc   : > { %v3762_v63 = vsub.f32 1.0, %v3634_v22  ;;  %v4023_v38 = vmul.f32 %v3895_v4, %v7448_v14  ;;  %v3504_v36 = vsub.f32 %v6575_v43, %v7427_v23  ;;  %4095 = vmatpush1.msra.mxu1 %v3960_v60  ;;  %v3505_v33 = vsub.f32 %v6575_v43, %v7429_v6  ;;  %v7455_v40 = vld [vmem:[#allocation24_spill] sm:$0xff] }
 0x4dd   : > { %v3763_v49 = vsub.f32 1.0, %v3635_v7  ;;  %v3698_v45 = vsub.f32 1.0, %v3570_v5  ;;  %v3699_v12 = vsub.f32 1.0, %v3571_v20  ;;  %4096 = vmatprep.subr.mxu1 %v3959_v44  ;;  %v3440_v51 = vsub.f32 %v6578_v37, %v7427_v23  ;;  %v7456_v44 = vld [vmem:[#allocation58_spill] sm:$0xff] }
 0x4de   : > { %v3890_v1 = vmax.f32 %v3762_v63, 0.0  ;;  %4167 = vmatprep.subr.mxu0 %v4023_v38  ;;  %v3632_v17 = vand.u32 2147483647, %v3504_v36  ;;  %v3441_v59 = vsub.f32 %v6578_v37, %v7429_v6  ;;  %v4020_v27 = vmul.f32 %v3892_v31, %v7449_v48  ;;  %v7453_v37 = vld [vmem:[#allocation89_spill] sm:$0xff]  ;;  %v6706_v31 = vpop.permute.xlu0 %2509 }
 0x4df   : > { %v3828_v2 = vmax.f32 %v3700_v29, 0.0  ;;  %v3891_v4 = vmax.f32 %v3763_v49, 0.0  ;;  %v3633_v10 = vand.u32 2147483647, %v3505_v33  ;;  %4168 = vmatpush1.msra.mxu0 %v4022_v25  ;;  %v3826_v62 = vmax.f32 %v3698_v45, 0.0 }
 0x4e0   : > { %v3760_v58 = vsub.f32 1.0, %v3632_v17  ;;  %v3568_v56 = vand.u32 2147483647, %v3440_v51  ;;  %v3569_v43 = vand.u32 2147483647, %v3441_v59  ;;  %v3958_v9 = vmul.f32 %v3830_v41, %v7450_v53  ;;  %v4077_v53 = vld [vmem:[#allocation2 + $0x8] sm:$0xff] }
 0x4e1   : > { %v3761_v55 = vsub.f32 1.0, %v3633_v10  ;;  %v3957_v35 = vmul.f32 %v3829_v30, %v7451_v16  ;;  %v4021_v13 = vmul.f32 %v3893_v61, %v7452_v39  ;;  %v4018_v21 = vmul.f32 %v3890_v1, %v7453_v37  ;;  %v7457_v10 = vld [vmem:[#allocation88_spill] sm:$0xff]  ;;  %v7458_v16 = vld [vmem:[#allocation59_spill] sm:$0xff]  ;;  %4213 = vmatprep.mubr.f32.mxu0 %v4077_v53 }
 0x4e2   : > { %v3827_v18 = vmax.f32 %v3699_v12, 0.0  ;;  %v3697_v11 = vsub.f32 1.0, %v3569_v43  ;;  %v3502_v25 = vsub.f32 %v6591_v34, %v7427_v23  ;;  %v3888_v24 = vmax.f32 %v3760_v58, 0.0  ;;  %4097 = vmatpush1.msra.mxu1 %v3958_v9  ;;  %v6721_v12 = vpop.permute.xlu1 %2504  ;;  %v6727_v59 = vpop.permute.xlu0 %3413 }
 0x4e3   : > { %4169 = vmatprep.subr.mxu0 %v4021_v13  ;;  %v3503_v41 = vsub.f32 %v6591_v34, %v7429_v6  ;;  %v3438_v26 = vsub.f32 %v6597_v0, %v7427_v23  ;;  %v3439_v28 = vsub.f32 %v6597_v0, %v7429_v6  ;;  %v3889_v61 = vmax.f32 %v3761_v55, 0.0  ;;  %4098 = vmatprep.subr.mxu1 %v3957_v35  ;;  %v7460_v13 = vld [vmem:[#allocation94_spill] sm:$0xff] }
 0x4e4   : > { %v3696_v29 = vsub.f32 1.0, %v3568_v56  ;;  %v3825_v30 = vmax.f32 %v3697_v11, 0.0  ;;  %v3630_v22 = vand.u32 2147483647, %v3502_v25  ;;  %4170 = vmatpush1.msra.mxu0 %v4020_v27  ;;  %v3956_v60 = vmul.f32 %v3828_v2, %v7454_v32 }
 0x4e5   : > { %v3631_v7 = vand.u32 2147483647, %v3503_v41  ;;  %v3566_v5 = vand.u32 2147483647, %v3438_v26  ;;  %v3567_v20 = vand.u32 2147483647, %v3439_v28  ;;  %v3955_v34 = vmul.f32 %v3827_v18, %v7455_v40 }
 0x4e6   : > { %v3758_v63 = vsub.f32 1.0, %v3630_v22  ;;  %v4019_v14 = vmul.f32 %v3891_v4, %v7456_v44  ;;  %v3500_v38 = vsub.f32 %v6609_v19, %v7427_v23  ;;  %4099 = vmatpush1.msra.mxu1 %v3956_v60  ;;  %v3501_v45 = vsub.f32 %v6609_v19, %v7429_v6  ;;  %v4075_v19 = vld [vmem:[#allocation2] sm:$0xff] }
 0x4e7   : > { %v3759_v0 = vsub.f32 1.0, %v3631_v7  ;;  %v3694_v36 = vsub.f32 1.0, %v3566_v5  ;;  %v3695_v49 = vsub.f32 1.0, %v3567_v20  ;;  %4100 = vmatprep.subr.mxu1 %v3955_v34  ;;  %v3436_v17 = vsub.f32 %v6614_v52, %v7427_v23  ;;  %4142 = vmatprep.mubr.f32.mxu1 %v4075_v19  ;;  %v7461_v18 = vld [vmem:[#allocation87_spill] sm:$0xff]  ;;  %v6746_v5 = vpop.permute.xlu0 %3248  ;;  %v7463_v34 = vld [vmem:[#allocation22_spill] sm:$0xff] }
 0x4e8   : > { %v3886_v33 = vmax.f32 %v3758_v63, 0.0  ;;  %4171 = vmatprep.subr.mxu0 %v4019_v14  ;;  %v3628_v1 = vand.u32 2147483647, %v3500_v38  ;;  %v3437_v51 = vsub.f32 %v6614_v52, %v7429_v6  ;;  %v3824_v48 = vmax.f32 %v3696_v29, 0.0  ;;  %v7459_v52 = vld [vmem:[#allocation25_spill] sm:$0xff] }
 0x4e9   : > { %v3887_v27 = vmax.f32 %v3759_v0, 0.0  ;;  %v6729_v2 = vmax.f32 %v3694_v36, 0.0  ;;  %v3629_v4 = vand.u32 2147483647, %v3501_v45  ;;  %4172 = vmatpush1.msra.mxu0 %v4018_v21  ;;  %v4016_v58 = vmul.f32 %v3888_v24, %v7457_v10  ;;  %v7464_v14 = vld [vmem:[#allocation93_spill] sm:$0xff] }
 0x4ea   : > { %v3756_v56 = vsub.f32 1.0, %v3628_v1  ;;  %v3564_v43 = vand.u32 2147483647, %v3436_v17  ;;  %v3565_v55 = vand.u32 2147483647, %v3437_v51  ;;  %v3954_v35 = vmul.f32 %v3826_v62, %v7458_v16  ;;  %v7465_v17 = vld [vmem:[#allocation44_spill] sm:$0xff] }
 0x4eb   : > { %v3757_v9 = vsub.f32 1.0, %v3629_v4  ;;  %v3953_v39 = vmul.f32 %v3825_v30, %v7459_v52  ;;  %v4017_v37 = vmul.f32 %v3889_v61, %v7460_v13  ;;  %v4014_v11 = vmul.f32 %v3886_v33, %v7461_v18  ;;  %v6744_v61 = vpop.permute.xlu1 %3408  ;;  %v7467_v4 = vld [vmem:[#allocation86_spill] sm:$0xff]  ;;  %v6762_v16 = vpop.permute.xlu0 %2499  ;;  %v7468_v52 = vld [vmem:[#allocation40_spill] sm:$0xff]  ;;  %v7469_v13 = vld [vmem:[#allocation23_spill] sm:$0xff] }
 0x4ec   : > { %v3823_v25 = vmax.f32 %v3695_v49, 0.0  ;;  %v3693_v21 = vsub.f32 1.0, %v3565_v55  ;;  %v3498_v24 = vsub.f32 %v6629_v46, %v7427_v23  ;;  %v3884_v41 = vmax.f32 %v3756_v56, 0.0  ;;  %4101 = vmatpush1.msra.mxu1 %v3954_v35 }
 0x4ed   : > { %4173 = vmatprep.subr.mxu0 %v4017_v37  ;;  %v3499_v26 = vsub.f32 %v6629_v46, %v7429_v6  ;;  %v3434_v62 = vsub.f32 %v6635_v57, %v7427_v23  ;;  %v3435_v28 = vsub.f32 %v6635_v57, %v7429_v6  ;;  %v3885_v29 = vmax.f32 %v3757_v9, 0.0  ;;  %4102 = vmatprep.subr.mxu1 %v3953_v39  ;;  %v7462_v46 = vld [vmem:[#allocation43_spill] sm:$0xff]  ;;  %v7470_v37 = vld [vmem:[#allocation92_spill] sm:$0xff] }
 0x4ee   : > { %v3692_v30 = vsub.f32 1.0, %v3564_v43  ;;  %v3821_v22 = vmax.f32 %v3693_v21, 0.0  ;;  %v3626_v7 = vand.u32 2147483647, %v3498_v24  ;;  %4174 = vmatpush1.msra.mxu0 %v4016_v58  ;;  %v3952_v63 = vmul.f32 %v3824_v48, %v7462_v46  ;;  %v7466_v48 = vld [vmem:[#allocation48_spill] sm:$0xff] }
 0x4ef   : > { %v3627_v20 = vand.u32 2147483647, %v3499_v26  ;;  %v3562_v32 = vand.u32 2147483647, %v3434_v62  ;;  %v3563_v60 = vand.u32 2147483647, %v3435_v28  ;;  %v3951_v44 = vmul.f32 %v3823_v25, %v7463_v34  ;;  %v6760_v43 = vpop.permute.xlu1 %3243 }
 0x4f0   : > { %v3754_v40 = vsub.f32 1.0, %v3626_v7  ;;  %v4015_v57 = vmul.f32 %v3887_v27, %v7464_v14  ;;  %v3496_v38 = vsub.f32 %v6650_v15, %v7427_v23  ;;  %4103 = vmatpush1.msra.mxu1 %v3952_v63  ;;  %v3497_v45 = vsub.f32 %v6650_v15, %v7429_v6  ;;  %v7471_v25 = vld [vmem:[#allocation85_spill] sm:$0xff]  ;;  %v7473_v63 = vld [vmem:[#allocation20_spill] sm:$0xff] }
 0x4f1   : > { %v3755_v0 = vsub.f32 1.0, %v3627_v20  ;;  %v3690_v36 = vsub.f32 1.0, %v3562_v32  ;;  %v3691_v49 = vsub.f32 1.0, %v3563_v60  ;;  %4104 = vmatprep.subr.mxu1 %v3951_v44  ;;  %v2656_v51 = vsub.f32 %v6652_v42, %v7465_v17  ;;  %v7472_v7 = vld [vmem:[#allocation41_spill] sm:$0xff]  ;;  %v7474_v44 = vld [vmem:[#allocation91_spill] sm:$0xff] }
 0x4f2   : > { %v3882_v33 = vmax.f32 %v3754_v40, 0.0  ;;  %4175 = vmatprep.subr.mxu0 %v4015_v57  ;;  %v3624_v1 = vand.u32 2147483647, %v3496_v38  ;;  %v2657_v27 = vsub.f32 %v6652_v42, %v7466_v48  ;;  %v4012_v19 = vmul.f32 %v3884_v41, %v7467_v4  ;;  %v6788_v38 = vpop.permute.xlu0 %3403 }
 0x4f3   : > { %v3820_v10 = vmax.f32 %v3692_v30, 0.0  ;;  %v3883_v58 = vmax.f32 %v3755_v0, 0.0  ;;  %v3625_v56 = vand.u32 2147483647, %v3497_v45  ;;  %4176 = vmatpush1.msra.mxu0 %v4014_v11  ;;  %v3819_v55 = vmax.f32 %v3691_v49, 0.0  ;;  %v6781_v34 = vpop.permute.xlu1 %2494 }
 0x4f4   : > { %v3752_v15 = vsub.f32 1.0, %v3624_v1  ;;  %v2784_v53 = vand.u32 2147483647, %v2656_v51  ;;  %v2785_v9 = vand.u32 2147483647, %v2657_v27  ;;  %v3950_v39 = vmul.f32 %v6729_v2, %v7468_v52  ;;  %v7476_v52 = vld [vmem:[#allocation57_spill] sm:$0xff] }
 0x4f5   : > { %v3753_v35 = vsub.f32 1.0, %v3625_v56  ;;  %v3949_v42 = vmul.f32 %v3821_v22, %v7469_v13  ;;  %v4013_v18 = vmul.f32 %v3885_v29, %v7470_v37  ;;  %v4010_v21 = vmul.f32 %v3882_v33, %v7471_v25 }
 0x4f6   : > { %v3818_v24 = vmax.f32 %v3690_v36, 0.0  ;;  %v6769_v11 = vmax.f32 %v3752_v15, 0.0  ;;  %v2654_v41 = vsub.f32 %v6666_v3, %v7465_v17  ;;  %v2912_v26 = vsub.f32 1.0, %v2784_v53  ;;  %4105 = vmatpush1.msra.mxu1 %v3950_v39  ;;  %v7475_v15 = vld [vmem:[#allocation38_spill] sm:$0xff] }
 0x4f7   : > { %4177 = vmatprep.subr.mxu0 %v4013_v18  ;;  %v2655_v62 = vsub.f32 %v6666_v3, %v7466_v48  ;;  %v3560_v2 = vsub.f32 %v6668_v47, %v7427_v23  ;;  %v3561_v28 = vsub.f32 %v6668_v47, %v7429_v6  ;;  %v3881_v29 = vmax.f32 %v3753_v35, 0.0  ;;  %4106 = vmatprep.subr.mxu1 %v3949_v42  ;;  %v6798_v42 = vpop.permute.xlu1 %3398 }
 0x4f8   : > { %v2913_v30 = vsub.f32 1.0, %v2785_v9  ;;  %v2782_v22 = vand.u32 2147483647, %v2654_v41  ;;  %v3948_v20 = vmul.f32 %v3820_v10, %v7472_v7  ;;  %4178 = vmatpush1.msra.mxu0 %v4012_v19  ;;  %v3947_v40 = vmul.f32 %v3819_v55, %v7473_v63 }
 0x4f9   : > { %v2783_v32 = vand.u32 2147483647, %v2655_v62  ;;  %v3688_v60 = vand.u32 2147483647, %v3560_v2  ;;  %v3689_v46 = vand.u32 2147483647, %v3561_v28  ;;  %v4011_v14 = vmul.f32 %v3883_v58, %v7474_v44 }
 0x4fa   : > { %v2910_v3 = vsub.f32 1.0, %v2782_v22  ;;  %4107 = vmatpush1.msra.mxu1 %v3948_v20  ;;  %v3558_v47 = vsub.f32 %v6683_v54, %v7427_v23  ;;  %v3559_v57 = vsub.f32 %v6683_v54, %v7429_v6  ;;  %v3494_v45 = vsub.f32 %v6689_v8, %v7427_v23 }
 0x4fb   : > { %v2911_v0 = vsub.f32 1.0, %v2783_v32  ;;  %v3816_v36 = vsub.f32 1.0, %v3688_v60  ;;  %v3817_v49 = vsub.f32 1.0, %v3689_v46  ;;  %4108 = vmatprep.subr.mxu1 %v3947_v40  ;;  %v3040_v33 = vmax.f32 %v2912_v26, 0.0  ;;  %4179 = vmatprep.subr.mxu0 %v4011_v14  ;;  %v6818_v14 = vpop.permute.xlu1 %3233 }
 0x4fc   : > { %v3686_v1 = vand.u32 2147483647, %v3558_v47  ;;  %v3687_v51 = vand.u32 2147483647, %v3559_v57  ;;  %v3495_v27 = vsub.f32 %v6689_v8, %v7429_v6  ;;  %v3041_v4 = vmax.f32 %v2913_v30, 0.0  ;;  %4180 = vmatpush1.msra.mxu0 %v4010_v21  ;;  %v6802_v21 = vpop.permute.xlu0 %3238  ;;  %v7477_v30 = vld [vmem:[#allocation84_spill] sm:$0xff] }
 0x4fd   : > { %v3038_v19 = vmax.f32 %v2910_v3, 0.0  ;;  %v3944_v10 = vmax.f32 %v3816_v36, 0.0  ;;  %v3622_v54 = vand.u32 2147483647, %v3494_v45  ;;  %v3946_v53 = vmul.f32 %v3818_v24, %v7475_v15  ;;  %v7478_v36 = vld [vmem:[#allocation56_spill] sm:$0xff] }
 0x4fe   : > { %v3814_v58 = vsub.f32 1.0, %v3686_v1  ;;  %v3815_v56 = vsub.f32 1.0, %v3687_v51  ;;  %v3623_v55 = vand.u32 2147483647, %v3495_v27  ;;  %v3039_v9 = vmax.f32 %v2911_v0, 0.0 }
 0x4ff   : > { %v3945_v35 = vmax.f32 %v3817_v49, 0.0  ;;  %v4009_v39 = vmul.f32 %v3881_v29, %v7476_v52  ;;  %v3492_v13 = vsub.f32 %v6701_v50, %v7427_v23  ;;  %v4072_v8 = vmul.f32 %v3944_v10, %v3040_v33  ;;  %4109 = vmatpush1.msra.mxu1 %v3946_v53 }
 0x500   : > { %v3750_v37 = vsub.f32 1.0, %v3622_v54  ;;  %v3751_v18 = vsub.f32 1.0, %v3623_v55  ;;  %v3493_v25 = vsub.f32 %v6701_v50, %v7429_v6  ;;  %v3942_v41 = vmax.f32 %v3814_v58, 0.0  ;;  %v6821_v45 = vpop.permute.xlu0 %2489 }
 0x501   : > { %4110 = vmatprep.subr.mxu1 %v4009_v39  ;;  %v3620_v24 = vand.u32 2147483647, %v3492_v13  ;;  %v2652_v26 = vsub.f32 %v6706_v31, %v7465_v17  ;;  %v2653_v62 = vsub.f32 %v6706_v31, %v7466_v48  ;;  %v3943_v2 = vmax.f32 %v3815_v56, 0.0 }
 0x502   : > { %v3879_v28 = vmax.f32 %v3751_v18, 0.0  ;;  %v3621_v29 = vand.u32 2147483647, %v3493_v25  ;;  %v4008_v22 = vmul.f32 %v6769_v11, %v7477_v30  ;;  %v4073_v32 = vmul.f32 %v3945_v35, %v3041_v4 }
 0x503   : > { %v3748_v7 = vsub.f32 1.0, %v3620_v24  ;;  %v2780_v20 = vand.u32 2147483647, %v2652_v26  ;;  %v2781_v50 = vand.u32 2147483647, %v2653_v62  ;;  %v2650_v46 = vsub.f32 %v6721_v12, %v7465_v17 }
 0x504   : > { %v3749_v60 = vsub.f32 1.0, %v3621_v29  ;;  %4111 = vmatpush2.msra.mxu1 %v4008_v22  ;;  %v2651_v63 = vsub.f32 %v6721_v12, %v7466_v48  ;;  %v3556_v31 = vsub.f32 %v6727_v59, %v7427_v23  ;;  %v4070_v40 = vmul.f32 %v3942_v41, %v3038_v19  ;;  %4181 = vmatprep.subr.mxu0 %v4073_v32  ;;  %v7480_v41 = vld [vmem:[#allocation46_spill] sm:$0xff]  ;;  %v6835_v26 = vpop.permute.xlu0 %3393 }
 0x505   : > { %v3878_v3 = vmax.f32 %v3750_v37, 0.0  ;;  %v2908_v44 = vsub.f32 1.0, %v2780_v20  ;;  %v3557_v11 = vsub.f32 %v6727_v59, %v7429_v6  ;;  %v2909_v47 = vsub.f32 1.0, %v2781_v50  ;;  %4182 = vmatpush2.msra.mxu0 %v4072_v8  ;;  %v6831_v8 = vpop.permute.xlu1 %2484 }
 0x506   : > { %v2778_v57 = vand.u32 2147483647, %v2650_v46  ;;  %v2779_v0 = vand.u32 2147483647, %v2651_v63  ;;  %v4007_v49 = vmul.f32 %v3879_v28, %v7478_v36  ;;  %v3876_v12 = vmax.f32 %v3748_v7, 0.0 }
 0x507   : > { %v3877_v33 = vmax.f32 %v3749_v60, 0.0  ;;  %v3684_v1 = vand.u32 2147483647, %v3556_v31  ;;  %v3685_v51 = vand.u32 2147483647, %v3557_v11  ;;  %v4071_v19 = vmul.f32 %v3943_v2, %v3039_v9  ;;  %v7481_v11 = vld [vmem:[#allocation82_spill] sm:$0xff] }
 0x508   : > { %v2906_v27 = vsub.f32 1.0, %v2778_v57  ;;  %v2907_v4 = vsub.f32 1.0, %v2779_v0  ;;  %4112 = vmatprep.subr.mxu1 %v4007_v49  ;;  %v3554_v59 = vsub.f32 %v6744_v61, %v7427_v23  ;;  %v3555_v58 = vsub.f32 %v6744_v61, %v7429_v6  ;;  %v7479_v61 = vld [vmem:[#allocation83_spill] sm:$0xff] }
 0x509   : > { %v3812_v10 = vsub.f32 1.0, %v3684_v1  ;;  %v3813_v54 = vsub.f32 1.0, %v3685_v51  ;;  %v3490_v56 = vsub.f32 %v6746_v5, %v7427_v23  ;;  %v3036_v55 = vmax.f32 %v2908_v44, 0.0  ;;  %4183 = vmatprep.subr.mxu0 %v4071_v19 }
 0x50a   : > { %v3037_v15 = vmax.f32 %v2909_v47, 0.0  ;;  %v3682_v53 = vand.u32 2147483647, %v3554_v59  ;;  %v3491_v35 = vsub.f32 %v6746_v5, %v7429_v6  ;;  %v3034_v52 = vmax.f32 %v2906_v27, 0.0  ;;  %4184 = vmatpush2.msra.mxu0 %v4070_v40 }
 0x50b   : > { %v3940_v9 = vmax.f32 %v3812_v10, 0.0  ;;  %v3683_v39 = vand.u32 2147483647, %v3555_v58  ;;  %v3618_v13 = vand.u32 2147483647, %v3490_v56  ;;  %v4006_v25 = vmul.f32 %v3878_v3, %v7479_v61  ;;  %v7482_v56 = vld [vmem:[#allocation42_spill] sm:$0xff] }
 0x50c   : > { %v3810_v37 = vsub.f32 1.0, %v3682_v53  ;;  %v3619_v18 = vand.u32 2147483647, %v3491_v35  ;;  %v4005_v24 = vmul.f32 %v3877_v33, %v7480_v41  ;;  %v3035_v62 = vmax.f32 %v2907_v4, 0.0 }
 0x50d   : > { %v3941_v2 = vmax.f32 %v3813_v54, 0.0  ;;  %v3811_v28 = vsub.f32 1.0, %v3683_v39  ;;  %v3488_v5 = vsub.f32 %v6760_v43, %v7427_v23  ;;  %v3746_v29 = vsub.f32 1.0, %v3618_v13  ;;  %4113 = vmatpush2.msra.mxu1 %v4006_v25 }
 0x50e   : > { %v3747_v30 = vsub.f32 1.0, %v3619_v18  ;;  %v3489_v22 = vsub.f32 %v6760_v43, %v7429_v6  ;;  %v2648_v7 = vsub.f32 %v6762_v16, %v7465_v17  ;;  %v4068_v20 = vmul.f32 %v3940_v9, %v3036_v55  ;;  %4114 = vmatprep.subr.mxu1 %v4005_v24  ;;  %v6846_v43 = vpop.permute.xlu1 %3388 }
 0x50f   : > { %v3938_v50 = vmax.f32 %v3810_v37, 0.0  ;;  %v3616_v32 = vand.u32 2147483647, %v3488_v5  ;;  %v2649_v60 = vsub.f32 %v6762_v16, %v7466_v48  ;;  %v3939_v46 = vmax.f32 %v3811_v28, 0.0  ;;  %v6852_v16 = vpop.permute.xlu0 %3228 }
 0x510   : > { %v3875_v63 = vmax.f32 %v3747_v30, 0.0  ;;  %v3617_v31 = vand.u32 2147483647, %v3489_v22  ;;  %v2776_v40 = vand.u32 2147483647, %v2648_v7  ;;  %v4004_v47 = vmul.f32 %v3876_v12, %v7481_v11  ;;  %v7483_v30 = vld [vmem:[#allocation81_spill] sm:$0xff] }
 0x511   : > { %v3744_v3 = vsub.f32 1.0, %v3616_v32  ;;  %v2777_v44 = vand.u32 2147483647, %v2649_v60  ;;  %v4069_v57 = vmul.f32 %v3941_v2, %v3037_v15  ;;  %v3874_v0 = vmax.f32 %v3746_v29, 0.0  ;;  %v7484_v7 = vld [vmem:[#allocation55_spill] sm:$0xff] }
 0x512   : > { %v3745_v36 = vsub.f32 1.0, %v3617_v31  ;;  %v2646_v49 = vsub.f32 %v6781_v34, %v7465_v17  ;;  %v2647_v33 = vsub.f32 %v6781_v34, %v7466_v48  ;;  %v4066_v1 = vmul.f32 %v3938_v50, %v3034_v52  ;;  %4115 = vmatpush2.msra.mxu1 %v4004_v47  ;;  %v6865_v37 = vpop.permute.xlu1 %3223 }
 0x513   : > { %v2904_v51 = vsub.f32 1.0, %v2776_v40  ;;  %4185 = vmatprep.subr.mxu0 %v4069_v57  ;;  %v3552_v12 = vsub.f32 %v6788_v38, %v7427_v23  ;;  %v3553_v27 = vsub.f32 %v6788_v38, %v7429_v6  ;;  %v3872_v4 = vmax.f32 %v3744_v3, 0.0  ;;  %v6869_v24 = vpop.permute.xlu0 %2479 }
 0x514   : > { %v2905_v19 = vsub.f32 1.0, %v2777_v44  ;;  %v2774_v59 = vand.u32 2147483647, %v2646_v49  ;;  %v2775_v10 = vand.u32 2147483647, %v2647_v33  ;;  %4186 = vmatpush2.msra.mxu0 %v4068_v20  ;;  %v3873_v54 = vmax.f32 %v3745_v36, 0.0 }
 0x515   : > { %v3680_v58 = vand.u32 2147483647, %v3552_v12  ;;  %v3681_v34 = vand.u32 2147483647, %v3553_v27  ;;  %v4003_v55 = vmul.f32 %v3875_v63, %v7482_v56  ;;  %v4067_v35 = vmul.f32 %v3939_v46, %v3035_v62  ;;  %v7485_v12 = vld [vmem:[#allocation80_spill] sm:$0xff] }
 0x516   : > { %v2902_v15 = vsub.f32 1.0, %v2774_v59  ;;  %v2903_v53 = vsub.f32 1.0, %v2775_v10  ;;  %v3550_v52 = vsub.f32 %v6798_v42, %v7427_v23  ;;  %v3551_v38 = vsub.f32 %v6798_v42, %v7429_v6  ;;  %v6881_v57 = vpop.permute.xlu1 %2474 }
 0x517   : > { %v3808_v9 = vsub.f32 1.0, %v3680_v58  ;;  %v3809_v39 = vsub.f32 1.0, %v3681_v34  ;;  %4116 = vmatprep.subr.mxu1 %v4003_v55  ;;  %v3486_v13 = vsub.f32 %v6802_v21, %v7427_v23  ;;  %v3032_v18 = vmax.f32 %v2904_v51, 0.0  ;;  %4187 = vmatprep.subr.mxu0 %v4067_v35 }
 0x518   : > { %v3033_v61 = vmax.f32 %v2905_v19, 0.0  ;;  %v3678_v25 = vand.u32 2147483647, %v3550_v52  ;;  %v3487_v41 = vsub.f32 %v6802_v21, %v7429_v6  ;;  %v3030_v62 = vmax.f32 %v2902_v15, 0.0  ;;  %4188 = vmatpush2.msra.mxu0 %v4066_v1  ;;  %v6883_v1 = vpop.permute.xlu0 %3383 }
 0x519   : > { %v3936_v2 = vmax.f32 %v3808_v9, 0.0  ;;  %v3679_v28 = vand.u32 2147483647, %v3551_v38  ;;  %v3614_v5 = vand.u32 2147483647, %v3486_v13  ;;  %v4002_v22 = vmul.f32 %v3874_v0, %v7483_v30  ;;  %v7486_v38 = vld [vmem:[#allocation39_spill] sm:$0xff] }
 0x51a   : > { %v3806_v42 = vsub.f32 1.0, %v3678_v25  ;;  %v3615_v29 = vand.u32 2147483647, %v3487_v41  ;;  %v4001_v20 = vmul.f32 %v3873_v54, %v7484_v7  ;;  %v3031_v50 = vmax.f32 %v2903_v53, 0.0  ;;  %v6895_v13 = vpop.permute.xlu1 %3378 }
 0x51b   : > { %v3937_v32 = vmax.f32 %v3809_v39, 0.0  ;;  %v3807_v60 = vsub.f32 1.0, %v3679_v28  ;;  %v3484_v46 = vsub.f32 %v6818_v14, %v7427_v23  ;;  %v3742_v21 = vsub.f32 1.0, %v3614_v5  ;;  %4117 = vmatpush2.msra.mxu1 %v4002_v22 }
 0x51c   : > { %v3743_v63 = vsub.f32 1.0, %v3615_v29  ;;  %v3485_v31 = vsub.f32 %v6818_v14, %v7429_v6  ;;  %v2644_v40 = vsub.f32 %v6821_v45, %v7465_v17  ;;  %v4064_v3 = vmul.f32 %v3936_v2, %v3032_v18  ;;  %4118 = vmatprep.subr.mxu1 %v4001_v20 }
 0x51d   : > { %v3934_v44 = vmax.f32 %v3806_v42, 0.0  ;;  %v3612_v11 = vand.u32 2147483647, %v3484_v46  ;;  %v2645_v47 = vsub.f32 %v6821_v45, %v7466_v48  ;;  %v3935_v0 = vmax.f32 %v3807_v60, 0.0 }
 0x51e   : > { %v3871_v36 = vmax.f32 %v3743_v63, 0.0  ;;  %v3613_v49 = vand.u32 2147483647, %v3485_v31  ;;  %v2772_v33 = vand.u32 2147483647, %v2644_v40  ;;  %v4000_v27 = vmul.f32 %v3872_v4, %v7485_v12 }
 0x51f   : > { %v3740_v51 = vsub.f32 1.0, %v3612_v11  ;;  %v2773_v14 = vand.u32 2147483647, %v2645_v47  ;;  %v4065_v19 = vmul.f32 %v3937_v32, %v3033_v61  ;;  %v3870_v59 = vmax.f32 %v3742_v21, 0.0  ;;  %v7487_v21 = vld [vmem:[#allocation79_spill] sm:$0xff]  ;;  %v6911_v47 = vpop.permute.xlu1 %3213 }
 0x520   : > { %v3741_v10 = vsub.f32 1.0, %v3613_v49  ;;  %v2642_v54 = vsub.f32 %v6831_v8, %v7465_v17  ;;  %v2643_v45 = vsub.f32 %v6831_v8, %v7466_v48  ;;  %v4062_v58 = vmul.f32 %v3934_v44, %v3030_v62  ;;  %4119 = vmatpush2.msra.mxu1 %v4000_v27  ;;  %v6899_v62 = vpop.permute.xlu0 %3218 }
 0x521   : > { %v2900_v34 = vsub.f32 1.0, %v2772_v33  ;;  %4189 = vmatprep.subr.mxu0 %v4065_v19  ;;  %v3548_v56 = vsub.f32 %v6835_v26, %v7427_v23  ;;  %v3549_v55 = vsub.f32 %v6835_v26, %v7429_v6  ;;  %v3868_v4 = vmax.f32 %v3740_v51, 0.0 }
 0x522   : > { %v2901_v15 = vsub.f32 1.0, %v2773_v14  ;;  %v2770_v53 = vand.u32 2147483647, %v2642_v54  ;;  %v2771_v35 = vand.u32 2147483647, %v2643_v45  ;;  %4190 = vmatpush2.msra.mxu0 %v4064_v3  ;;  %v3869_v52 = vmax.f32 %v3741_v10, 0.0 }
 0x523   : > { %v3676_v9 = vand.u32 2147483647, %v3548_v56  ;;  %v3677_v39 = vand.u32 2147483647, %v3549_v55  ;;  %v3999_v8 = vmul.f32 %v3871_v36, %v7486_v38  ;;  %v4063_v25 = vmul.f32 %v3935_v0, %v3031_v50 }
 0x524   : > { %v2898_v18 = vsub.f32 1.0, %v2770_v53  ;;  %v2899_v61 = vsub.f32 1.0, %v2771_v35  ;;  %v3546_v41 = vsub.f32 %v6846_v43, %v7427_v23  ;;  %v3547_v28 = vsub.f32 %v6846_v43, %v7429_v6  ;;  %v7488_v43 = vld [vmem:[#allocation37_spill] sm:$0xff]  ;;  %v6917_v33 = vpop.permute.xlu0 %2469 }
 0x525   : > { %v3804_v26 = vsub.f32 1.0, %v3676_v9  ;;  %v3805_v2 = vsub.f32 1.0, %v3677_v39  ;;  %4120 = vmatprep.subr.mxu1 %v3999_v8  ;;  %v3482_v5 = vsub.f32 %v6852_v16, %v7427_v23  ;;  %v3028_v42 = vmax.f32 %v2900_v34, 0.0  ;;  %4191 = vmatprep.subr.mxu0 %v4063_v25  ;;  %v7489_v34 = vld [vmem:[#allocation78_spill] sm:$0xff] }
 0x526   : > { %v3029_v29 = vmax.f32 %v2901_v15, 0.0  ;;  %v3674_v30 = vand.u32 2147483647, %v3546_v41  ;;  %v3483_v22 = vsub.f32 %v6852_v16, %v7429_v6  ;;  %v3026_v7 = vmax.f32 %v2898_v18, 0.0  ;;  %4192 = vmatpush2.msra.mxu0 %v4062_v58 }
 0x527   : > { %v3932_v20 = vmax.f32 %v3804_v26, 0.0  ;;  %v3675_v50 = vand.u32 2147483647, %v3547_v28  ;;  %v3610_v32 = vand.u32 2147483647, %v3482_v5  ;;  %v3998_v63 = vmul.f32 %v3870_v59, %v7487_v21 }
 0x528   : > { %v3802_v60 = vsub.f32 1.0, %v3674_v30  ;;  %v3611_v46 = vand.u32 2147483647, %v3483_v22  ;;  %v3997_v31 = vmul.f32 %v3869_v52, %v7488_v43  ;;  %v3027_v40 = vmax.f32 %v2899_v61, 0.0  ;;  %v6932_v25 = vpop.permute.xlu0 %3373 }
 0x529   : > { %v3933_v3 = vmax.f32 %v3805_v2, 0.0  ;;  %v3803_v44 = vsub.f32 1.0, %v3675_v50  ;;  %v3480_v11 = vsub.f32 %v6865_v37, %v7427_v23  ;;  %v3738_v16 = vsub.f32 1.0, %v3610_v32  ;;  %4121 = vmatpush2.msra.mxu1 %v3998_v63  ;;  %v7490_v2 = vld [vmem:[#allocation54_spill] sm:$0xff] }
 0x52a   : > { %v3739_v0 = vsub.f32 1.0, %v3611_v46  ;;  %v3481_v36 = vsub.f32 %v6865_v37, %v7429_v6  ;;  %v2640_v49 = vsub.f32 %v6869_v24, %v7465_v17  ;;  %v4060_v51 = vmul.f32 %v3932_v20, %v3028_v42  ;;  %4122 = vmatprep.subr.mxu1 %v3997_v31 }
 0x52b   : > { %v3930_v14 = vmax.f32 %v3802_v60, 0.0  ;;  %v3608_v12 = vand.u32 2147483647, %v3480_v11  ;;  %v2641_v27 = vsub.f32 %v6869_v24, %v7466_v48  ;;  %v3931_v19 = vmax.f32 %v3803_v44, 0.0 }
 0x52c   : > { %v3867_v59 = vmax.f32 %v3739_v0, 0.0  ;;  %v3609_v10 = vand.u32 2147483647, %v3481_v36  ;;  %v2768_v54 = vand.u32 2147483647, %v2640_v49  ;;  %v3996_v37 = vmul.f32 %v3868_v4, %v7489_v34  ;;  %v6930_v4 = vpop.permute.xlu1 %2464  ;;  %v6947_v36 = vpop.permute.xlu0 %3208 }
 0x52d   : > { %v3736_v45 = vsub.f32 1.0, %v3608_v12  ;;  %v2769_v58 = vand.u32 2147483647, %v2641_v27  ;;  %v4061_v56 = vmul.f32 %v3933_v3, %v3029_v29  ;;  %v3866_v55 = vmax.f32 %v3738_v16, 0.0  ;;  %v7492_v16 = vld [vmem:[#allocation34_spill] sm:$0xff] }
 0x52e   : > { %v3737_v15 = vsub.f32 1.0, %v3609_v10  ;;  %v2638_v53 = vsub.f32 %v6881_v57, %v7465_v17  ;;  %v2639_v35 = vsub.f32 %v6881_v57, %v7466_v48  ;;  %v4058_v52 = vmul.f32 %v3930_v14, %v3026_v7  ;;  %4123 = vmatpush2.msra.mxu1 %v3996_v37 }
 0x52f   : > { %v2896_v9 = vsub.f32 1.0, %v2768_v54  ;;  %4193 = vmatprep.subr.mxu0 %v4061_v56  ;;  %v3544_v24 = vsub.f32 %v6883_v1, %v7427_v23  ;;  %v3545_v39 = vsub.f32 %v6883_v1, %v7429_v6  ;;  %v3864_v38 = vmax.f32 %v3736_v45, 0.0 }
 0x530   : > { %v2897_v8 = vsub.f32 1.0, %v2769_v58  ;;  %v2766_v18 = vand.u32 2147483647, %v2638_v53  ;;  %v2767_v61 = vand.u32 2147483647, %v2639_v35  ;;  %4194 = vmatpush2.msra.mxu0 %v4060_v51  ;;  %v3865_v57 = vmax.f32 %v3737_v15, 0.0 }
 0x531   : > { %v3672_v41 = vand.u32 2147483647, %v3544_v24  ;;  %v3673_v26 = vand.u32 2147483647, %v3545_v39  ;;  %v3995_v28 = vmul.f32 %v3867_v59, %v7490_v2  ;;  %v4059_v29 = vmul.f32 %v3931_v19, %v3027_v40  ;;  %v6943_v40 = vpop.permute.xlu1 %3368  ;;  %v7493_v35 = vld [vmem:[#allocation76_spill] sm:$0xff] }
 0x532   : > { %v2894_v5 = vsub.f32 1.0, %v2766_v18  ;;  %v2895_v42 = vsub.f32 1.0, %v2767_v61  ;;  %v3542_v1 = vsub.f32 %v6895_v13, %v7427_v23  ;;  %v3543_v7 = vsub.f32 %v6895_v13, %v7429_v6  ;;  %v7491_v13 = vld [vmem:[#allocation77_spill] sm:$0xff] }
 0x533   : > { %v3800_v30 = vsub.f32 1.0, %v3672_v41  ;;  %v3801_v22 = vsub.f32 1.0, %v3673_v26  ;;  %4124 = vmatprep.subr.mxu1 %v3995_v28  ;;  %v3478_v20 = vsub.f32 %v6899_v62, %v7427_v23  ;;  %v3024_v50 = vmax.f32 %v2896_v9, 0.0  ;;  %4195 = vmatprep.subr.mxu0 %v4059_v29 }
 0x534   : > { %v3025_v32 = vmax.f32 %v2897_v8, 0.0  ;;  %v3670_v60 = vand.u32 2147483647, %v3542_v1  ;;  %v3479_v46 = vsub.f32 %v6899_v62, %v7429_v6  ;;  %v3022_v21 = vmax.f32 %v2894_v5, 0.0  ;;  %4196 = vmatpush2.msra.mxu0 %v4058_v52 }
 0x535   : > { %v3928_v63 = vmax.f32 %v3800_v30, 0.0  ;;  %v3671_v43 = vand.u32 2147483647, %v3543_v7  ;;  %v3606_v31 = vand.u32 2147483647, %v3478_v20  ;;  %v3994_v11 = vmul.f32 %v3866_v55, %v7491_v13 }
 0x536   : > { %v3798_v3 = vsub.f32 1.0, %v3670_v60  ;;  %v3607_v44 = vand.u32 2147483647, %v3479_v46  ;;  %v3993_v0 = vmul.f32 %v3865_v57, %v7492_v16  ;;  %v3023_v49 = vmax.f32 %v2895_v42, 0.0 }
 0x537   : > { %v3929_v51 = vmax.f32 %v3801_v22, 0.0  ;;  %v3799_v14 = vsub.f32 1.0, %v3671_v43  ;;  %v3476_v62 = vsub.f32 %v6911_v47, %v7427_v23  ;;  %v3734_v12 = vsub.f32 1.0, %v3606_v31  ;;  %4125 = vmatpush2.msra.mxu1 %v3994_v11 }
 0x538   : > { %v3735_v27 = vsub.f32 1.0, %v3607_v44  ;;  %v3477_v19 = vsub.f32 %v6911_v47, %v7429_v6  ;;  %v2636_v59 = vsub.f32 %v6917_v33, %v7465_v17  ;;  %v4056_v10 = vmul.f32 %v3928_v63, %v3024_v50  ;;  %4126 = vmatprep.subr.mxu1 %v3993_v0  ;;  %v6958_v47 = vpop.permute.xlu1 %3203 }
 0x539   : > { %v3926_v54 = vmax.f32 %v3798_v3, 0.0  ;;  %v3604_v45 = vand.u32 2147483647, %v3476_v62  ;;  %v2637_v58 = vsub.f32 %v6917_v33, %v7466_v48  ;;  %v3927_v34 = vmax.f32 %v3799_v14, 0.0  ;;  %v2460_v33 = vpop.permute.xlu0 %2459  ;;  %v7496_v62 = vld [vmem:[#allocation32_spill] sm:$0xff] }
 0x53a   : > { %v3863_v37 = vmax.f32 %v3735_v27, 0.0  ;;  %v3605_v56 = vand.u32 2147483647, %v3477_v19  ;;  %v2764_v55 = vand.u32 2147483647, %v2636_v59  ;;  %v3992_v52 = vmul.f32 %v3864_v38, %v7493_v35 }
 0x53b   : > { %v3732_v15 = vsub.f32 1.0, %v3604_v45  ;;  %v2765_v53 = vand.u32 2147483647, %v2637_v58  ;;  %v4057_v9 = vmul.f32 %v3929_v51, %v3025_v32  ;;  %v3862_v24 = vmax.f32 %v3734_v12, 0.0 }
 0x53c   : > { %v3733_v39 = vsub.f32 1.0, %v3605_v56  ;;  %v2634_v8 = vsub.f32 %v6930_v4, %v7465_v17  ;;  %v2635_v18 = vsub.f32 %v6930_v4, %v7466_v48  ;;  %v4054_v61 = vmul.f32 %v3926_v54, %v3022_v21  ;;  %4127 = vmatpush2.msra.mxu1 %v3992_v52  ;;  %v7494_v4 = vld [vmem:[#allocation35_spill] sm:$0xff]  ;;  %v2455_v21 = vpop.permute.xlu1 %2454 }
 0x53d   : > { %v2892_v57 = vsub.f32 1.0, %v2764_v55  ;;  %4197 = vmatprep.subr.mxu0 %v4057_v9  ;;  %v3540_v41 = vsub.f32 %v6932_v25, %v7427_v23  ;;  %v3541_v38 = vsub.f32 %v6932_v25, %v7429_v6  ;;  %v3860_v26 = vmax.f32 %v3732_v15, 0.0  ;;  %v3364_v44 = vpop.permute.xlu0 %3363 }
 0x53e   : > { %v2893_v2 = vsub.f32 1.0, %v2765_v53  ;;  %v2762_v28 = vand.u32 2147483647, %v2634_v8  ;;  %v2763_v5 = vand.u32 2147483647, %v2635_v18  ;;  %4198 = vmatpush2.msra.mxu0 %v4056_v10  ;;  %v3861_v42 = vmax.f32 %v3733_v39, 0.0 }
 0x53f   : > { %v3668_v29 = vand.u32 2147483647, %v3540_v41  ;;  %v3669_v1 = vand.u32 2147483647, %v3541_v38  ;;  %v3991_v30 = vmul.f32 %v3863_v37, %v7494_v4  ;;  %v4055_v20 = vmul.f32 %v3927_v34, %v3023_v49  ;;  %v7497_v18 = vld [vmem:[#allocation74_spill] sm:$0xff] }
 0x540   : > { %v2890_v22 = vsub.f32 1.0, %v2762_v28  ;;  %v2891_v7 = vsub.f32 1.0, %v2763_v5  ;;  %v3538_v50 = vsub.f32 %v6943_v40, %v7427_v23  ;;  %v3539_v25 = vsub.f32 %v6943_v40, %v7429_v6  ;;  %v7495_v40 = vld [vmem:[#allocation75_spill] sm:$0xff]  ;;  %v3359_v15 = vpop.permute.xlu1 %3358 }
 0x541   : > { %v3796_v32 = vsub.f32 1.0, %v3668_v29  ;;  %v3797_v60 = vsub.f32 1.0, %v3669_v1  ;;  %4128 = vmatprep.subr.mxu1 %v3991_v30  ;;  %v3474_v46 = vsub.f32 %v6947_v36, %v7427_v23  ;;  %v3020_v63 = vmax.f32 %v2892_v57, 0.0  ;;  %4199 = vmatprep.subr.mxu0 %v4055_v20  ;;  %v7498_v20 = vld [vmem:[#allocation33_spill] sm:$0xff] }
 0x542   : > { %v3021_v43 = vmax.f32 %v2893_v2, 0.0  ;;  %v3666_v31 = vand.u32 2147483647, %v3538_v50  ;;  %v3475_v3 = vsub.f32 %v6947_v36, %v7429_v6  ;;  %v3018_v13 = vmax.f32 %v2890_v22, 0.0  ;;  %4200 = vmatpush2.msra.mxu0 %v4054_v61 }
 0x543   : > { %v3924_v11 = vmax.f32 %v3796_v32, 0.0  ;;  %v3667_v16 = vand.u32 2147483647, %v3539_v25  ;;  %v3602_v0 = vand.u32 2147483647, %v3474_v46  ;;  %v3990_v14 = vmul.f32 %v3862_v24, %v7495_v40  ;;  %v3199_v24 = vpop.permute.xlu0 %3198 }
 0x544   : > { %v3794_v49 = vsub.f32 1.0, %v3666_v31  ;;  %v3603_v51 = vand.u32 2147483647, %v3475_v3  ;;  %v3989_v12 = vmul.f32 %v3861_v42, %v7496_v62  ;;  %v3019_v27 = vmax.f32 %v2891_v7, 0.0  ;;  %v3194_v32 = vpop.permute.xlu1 %3193 }
 0x545   : > { %v3925_v19 = vmax.f32 %v3797_v60, 0.0  ;;  %v3795_v59 = vsub.f32 1.0, %v3667_v16  ;;  %v3472_v10 = vsub.f32 %v6958_v47, %v7427_v23  ;;  %v3730_v54 = vsub.f32 1.0, %v3602_v0  ;;  %4129 = vmatpush2.msra.mxu1 %v3990_v14 }
 0x546   : > { %v3731_v36 = vsub.f32 1.0, %v3603_v51  ;;  %v3473_v45 = vsub.f32 %v6958_v47, %v7429_v6  ;;  %v2632_v58 = vsub.f32 %v2460_v33, %v7465_v17  ;;  %v4052_v34 = vmul.f32 %v3924_v11, %v3020_v63  ;;  %4130 = vmatprep.subr.mxu1 %v3989_v12 }
 0x547   : > { %v3922_v37 = vmax.f32 %v3794_v49, 0.0  ;;  %v3600_v56 = vand.u32 2147483647, %v3472_v10  ;;  %v2633_v55 = vsub.f32 %v2460_v33, %v7466_v48  ;;  %v3923_v53 = vmax.f32 %v3795_v59, 0.0  ;;  %v2450_v63 = vpop.permute.xlu0 %2449  ;;  %v7500_v59 = vld [vmem:[#allocation30_spill] sm:$0xff] }
 0x548   : > { %v3859_v35 = vmax.f32 %v3731_v36, 0.0  ;;  %v3601_v52 = vand.u32 2147483647, %v3473_v45  ;;  %v2760_v9 = vand.u32 2147483647, %v2632_v58  ;;  %v3988_v61 = vmul.f32 %v3860_v26, %v7497_v18 }
 0x549   : > { %v3728_v39 = vsub.f32 1.0, %v3600_v56  ;;  %v2761_v8 = vand.u32 2147483647, %v2633_v55  ;;  %v4053_v57 = vmul.f32 %v3925_v19, %v3021_v43  ;;  %v3858_v47 = vmax.f32 %v3730_v54, 0.0 }
 0x54a   : > { %v3729_v41 = vsub.f32 1.0, %v3601_v52  ;;  %v2630_v38 = vsub.f32 %v2455_v21, %v7465_v17  ;;  %v2631_v2 = vsub.f32 %v2455_v21, %v7466_v48  ;;  %v4050_v28 = vmul.f32 %v3922_v37, %v3018_v13  ;;  %4131 = vmatpush2.msra.mxu1 %v3988_v61 }
 0x54b   : > { %v2888_v5 = vsub.f32 1.0, %v2760_v9  ;;  %4201 = vmatprep.subr.mxu0 %v4053_v57  ;;  %v3536_v33 = vsub.f32 %v3364_v44, %v7427_v23  ;;  %v3537_v42 = vsub.f32 %v3364_v44, %v7429_v6  ;;  %v3856_v29 = vmax.f32 %v3728_v39, 0.0 }
 0x54c   : > { %v2889_v1 = vsub.f32 1.0, %v2761_v8  ;;  %v2758_v4 = vand.u32 2147483647, %v2630_v38  ;;  %v2759_v30 = vand.u32 2147483647, %v2631_v2  ;;  %4202 = vmatpush2.msra.mxu0 %v4052_v34  ;;  %v3857_v26 = vmax.f32 %v3729_v41, 0.0  ;;  %v2445_v34 = vpop.permute.xlu1 %2444 }
 0x54d   : > { %v3664_v22 = vand.u32 2147483647, %v3536_v33  ;;  %v3665_v7 = vand.u32 2147483647, %v3537_v42  ;;  %v3987_v50 = vmul.f32 %v3859_v35, %v7498_v20  ;;  %v4051_v46 = vmul.f32 %v3923_v53, %v3019_v27  ;;  %v7499_v27 = vld [vmem:[#allocation73_spill] sm:$0xff]  ;;  %v3354_v53 = vpop.permute.xlu0 %3353  ;;  %v7501_v41 = vld [vmem:[#allocation72_spill] sm:$0xff] }
 0x54e   : > { %v2886_v60 = vsub.f32 1.0, %v2758_v4  ;;  %v2887_v25 = vsub.f32 1.0, %v2759_v30  ;;  %v3534_v21 = vsub.f32 %v3359_v15, %v7427_v23  ;;  %v3535_v3 = vsub.f32 %v3359_v15, %v7429_v6 }
 0x54f   : > { %v3792_v43 = vsub.f32 1.0, %v3664_v22  ;;  %v3793_v31 = vsub.f32 1.0, %v3665_v7  ;;  %4132 = vmatprep.subr.mxu1 %v3987_v50  ;;  %v3470_v44 = vsub.f32 %v3199_v24, %v7427_v23  ;;  %v3016_v13 = vmax.f32 %v2888_v5, 0.0  ;;  %4203 = vmatprep.subr.mxu0 %v4051_v46  ;;  %v7502_v46 = vld [vmem:[#allocation31_spill] sm:$0xff] }
 0x550   : > { %v3017_v11 = vmax.f32 %v2889_v1, 0.0  ;;  %v3662_v16 = vand.u32 2147483647, %v3534_v21  ;;  %v3471_v0 = vsub.f32 %v3199_v24, %v7429_v6  ;;  %v3014_v49 = vmax.f32 %v2886_v60, 0.0  ;;  %4204 = vmatpush2.msra.mxu0 %v4050_v28  ;;  %v3349_v22 = vpop.permute.xlu1 %3348 }
 0x551   : > { %v3920_v51 = vmax.f32 %v3792_v43, 0.0  ;;  %v3663_v40 = vand.u32 2147483647, %v3535_v3  ;;  %v3598_v14 = vand.u32 2147483647, %v3470_v44  ;;  %v3986_v19 = vmul.f32 %v3858_v47, %v7499_v27 }
 0x552   : > { %v3790_v62 = vsub.f32 1.0, %v3662_v16  ;;  %v3599_v12 = vand.u32 2147483647, %v3471_v0  ;;  %v3985_v10 = vmul.f32 %v3857_v26, %v7500_v59  ;;  %v3015_v54 = vmax.f32 %v2887_v25, 0.0  ;;  %v7503_v59 = vld [vmem:[#allocation71_spill] sm:$0xff] }
 0x553   : > { %v3921_v36 = vmax.f32 %v3793_v31, 0.0  ;;  %v3791_v45 = vsub.f32 1.0, %v3663_v40  ;;  %v3468_v58 = vsub.f32 %v3194_v32, %v7427_v23  ;;  %v4048_v37 = vmul.f32 %v3920_v51, %v3016_v13  ;;  %4133 = vmatpush2.msra.mxu1 %v3986_v19 }
 0x554   : > { %v3727_v56 = vsub.f32 1.0, %v3599_v12  ;;  %v3469_v55 = vsub.f32 %v3194_v32, %v7429_v6  ;;  %v2628_v15 = vsub.f32 %v2450_v63, %v7465_v17  ;;  %v3918_v35 = vmax.f32 %v3790_v62, 0.0  ;;  %4134 = vmatprep.subr.mxu1 %v3985_v10  ;;  %v3189_v32 = vpop.permute.xlu0 %3188 }
 0x555   : > { %v3726_v52 = vsub.f32 1.0, %v3598_v14  ;;  %v3596_v9 = vand.u32 2147483647, %v3468_v58  ;;  %v2629_v24 = vsub.f32 %v2450_v63, %v7466_v48  ;;  %v3919_v39 = vmax.f32 %v3791_v45, 0.0 }
 0x556   : > { %v3855_v8 = vmax.f32 %v3727_v56, 0.0  ;;  %v3597_v18 = vand.u32 2147483647, %v3469_v55  ;;  %v2756_v61 = vand.u32 2147483647, %v2628_v15  ;;  %v3984_v38 = vmul.f32 %v3856_v29, %v7501_v41 }
 0x557   : > { %v3724_v57 = vsub.f32 1.0, %v3596_v9  ;;  %v2757_v47 = vand.u32 2147483647, %v2629_v24  ;;  %v4049_v2 = vmul.f32 %v3921_v36, %v3017_v11  ;;  %v2626_v33 = vsub.f32 %v2445_v34, %v7465_v17 }
 0x558   : > { %v3725_v28 = vsub.f32 1.0, %v3597_v18  ;;  %v2884_v5 = vsub.f32 1.0, %v2756_v61  ;;  %v2627_v42 = vsub.f32 %v2445_v34, %v7466_v48  ;;  %v3854_v1 = vmax.f32 %v3726_v52, 0.0  ;;  %4135 = vmatpush2.msra.mxu1 %v3984_v38  ;;  %v7505_v34 = vld [vmem:[#allocation70_spill] sm:$0xff] }
 0x559   : > { %v2885_v4 = vsub.f32 1.0, %v2757_v47  ;;  %4205 = vmatprep.subr.mxu0 %v4049_v2  ;;  %v3532_v30 = vsub.f32 %v3354_v53, %v7427_v23  ;;  %v3533_v26 = vsub.f32 %v3354_v53, %v7429_v6  ;;  %v4046_v7 = vmul.f32 %v3918_v35, %v3014_v49  ;;  %v7506_v53 = vld [vmem:[#allocation52_spill] sm:$0xff] }
 0x55a   : > { %v3852_v20 = vmax.f32 %v3724_v57, 0.0  ;;  %v2754_v50 = vand.u32 2147483647, %v2626_v33  ;;  %v2755_v29 = vand.u32 2147483647, %v2627_v42  ;;  %4206 = vmatpush2.msra.mxu0 %v4048_v37  ;;  %v3853_v60 = vmax.f32 %v3725_v28, 0.0 }
 0x55b   : > { %v3660_v25 = vand.u32 2147483647, %v3532_v30  ;;  %v3661_v17 = vand.u32 2147483647, %v3533_v26  ;;  %v3983_v48 = vmul.f32 %v3855_v8, %v7502_v46  ;;  %v3012_v21 = vmax.f32 %v2884_v5, 0.0  ;;  %v7508_v8 = vld [vmem:[#allocation16_spill] sm:$0xff] }
 0x55c   : > { %v3013_v63 = vmax.f32 %v2885_v4, 0.0  ;;  %v4047_v43 = vmul.f32 %v3919_v39, %v3015_v54  ;;  %v3530_v31 = vsub.f32 %v3349_v22, %v7427_v23  ;;  %v3531_v13 = vsub.f32 %v3349_v22, %v7429_v6  ;;  %v7504_v54 = vld [vmem:[#allocation53_spill] sm:$0xff]  ;;  %v4076_v28 = vld [vmem:[#allocation2 + $0x18] sm:$0xff] }
 0x55d   : > { %v3788_v3 = vsub.f32 1.0, %v3660_v25  ;;  %v3789_v44 = vsub.f32 1.0, %v3661_v17  ;;  %4136 = vmatprep.subr.mxu1 %v3983_v48  ;;  %v3466_v11 = vsub.f32 %v3189_v32, %v7427_v23  ;;  %v2882_v16 = vsub.f32 1.0, %v2754_v50  ;;  %v4074_v5 = vld [vmem:[#allocation2 + $0x10] sm:$0xff] }
 0x55e   : > { %v2883_v0 = vsub.f32 1.0, %v2755_v29  ;;  %4207 = vmatprep.subr.mxu0 %v4047_v43  ;;  %v3658_v49 = vand.u32 2147483647, %v3530_v31  ;;  %v3467_v51 = vsub.f32 %v3189_v32, %v7429_v6  ;;  %v3659_v62 = vand.u32 2147483647, %v3531_v13 }
 0x55f   : > { %v3916_v40 = vmax.f32 %v3788_v3, 0.0  ;;  %v3917_v14 = vmax.f32 %v3789_v44, 0.0  ;;  %v3594_v12 = vand.u32 2147483647, %v3466_v11  ;;  %4208 = vmatpush2.msra.mxu0 %v4046_v7  ;;  %v3982_v10 = vmul.f32 %v3854_v1, %v7503_v59 }
 0x560   : > { %v3786_v27 = vsub.f32 1.0, %v3658_v49  ;;  %v3595_v19 = vand.u32 2147483647, %v3467_v51  ;;  %v3981_v36 = vmul.f32 %v3853_v60, %v7504_v54  ;;  %v3787_v58 = vsub.f32 1.0, %v3659_v62 }
 0x561   : > { %v4044_v45 = vmul.f32 %v3916_v40, %v3012_v21  ;;  %v3722_v23 = vsub.f32 1.0, %v3594_v12  ;;  %v3980_v37 = vmul.f32 %v3852_v20, %v7505_v34  ;;  %v3010_v56 = vmax.f32 %v2882_v16, 0.0  ;;  %4137 = vmatpush2.msra.mxu1 %v3982_v10 }
 0x562   : > { %v3914_v55 = vmax.f32 %v3786_v27, 0.0  ;;  %v3723_v15 = vsub.f32 1.0, %v3595_v19  ;;  %v4045_v6 = vmul.f32 %v3917_v14, %v3013_v63  ;;  %v7507_v35 = vsub.f32 1.0, %v7506_v53  ;;  %4138 = vmatprep.subr.mxu1 %v3981_v36 }
 0x563   : > { %v3011_v9 = vmax.f32 %v2883_v0, 0.0  ;;  %v3915_v24 = vmax.f32 %v3787_v58, 0.0  ;;  %v3850_v39 = vmax.f32 %v3722_v23, 0.0  ;;  %v7509_v18 = vsub.f32 1.0, %v7508_v8  ;;  %4139 = vmatpush2.msra.mxu1 %v3980_v37 }
 0x564   : > { %v2946_v52 = vmax.f32 %v7507_v35, 0.0  ;;  %v4042_v57 = vmul.f32 %v3914_v55, %v3010_v56  ;;  %v3851_v47 = vmax.f32 %v3723_v15, 0.0  ;;  %4209 = vmatprep.subr.mxu0 %v4045_v6 }
 0x565   : > { %v2947_v61 = vmax.f32 %v7509_v18, 0.0  ;;  %4210 = vmatpush2.msra.mxu0 %v4044_v45  ;;  %v4043_v41 = vmul.f32 %v3915_v24, %v3011_v9 }
 0x566   : > { %v3978_v38 = vmul.f32 %v3850_v39, %v2946_v52 }
 0x567   : > { %v3979_v2 = vmul.f32 %v3851_v47, %v2947_v61  ;;  %4211 = vmatprep.subr.mxu0 %v4043_v41 }
 0x568   : > { %4212 = vmatpush2.msra.mxu0 %v4042_v57 }
 0x569   : > { %4140 = vmatprep.subr.mxu1 %v3979_v2  ;;  %4214 = vmatmul.mubr.f32.vlgmr.msra.gmra.mxu0 %v4076_v28 }
 0x56a   : > { %4141 = vmatpush2.msra.mxu1 %v3978_v38 }
 0x56b   : > { %4143 = vmatmul.mubr.f32.vlgmr.msra.gmra.mxu1 %v4074_v5 }
 0x629   : > { %v4215_v33 = vpop.f32.mrf.mxu0 }
 0x62b   : > { %v4144_v42 = vpop.f32.mrf.mxu1  ;;  %v4217_v4 = vpop.f32.mrf.mxu0 }
 0x62c   : > { %v4216_v1 = vadd.f32 %v4215_v33, %v4144_v42 }
 0x62d   : > { %v4146_v30 = vpop.f32.mrf.mxu1 }
 0x62e   : > { %4220 = vst [vmem:[%s4929_s9] sm:$0xff] %v4216_v1  ;;  %v4218_v26 = vadd.f32 %v4217_v4, %v4146_v30 }
 0x630   : > { %4221 = vst [vmem:[%s4929_s9 + $0x8] sm:$0xff] %v4218_v26 }
 0x631 PF: > { %s7510_s6 = sld [smem:[#allocation11_spill]] }
 0x632   : > { %s7511_s24 = sld [smem:[#allocation8_spill]] }
 0x633   : > { %s7512_s25 = sld [smem:[#allocation14_spill]] }
 0x634   : > { %s7513_s26 = sld [smem:[#allocation9_spill]] }
 0x635   : > { %s7514_s27 = sld [smem:[#allocation10_spill]] }
 0x636   : > { %s7515_s28 = sld [smem:[#allocation12_spill]] }
 0x637   : > { %s29_s0 = sadd.s32 1, %s7510_s6   ;;  %s7516_s29 = sld [smem:[#allocation13_spill]] }
 0x638   : > { %p26_p9 = scmp.ge.s32.totalorder %s29_s0, 6  }
 0x63a   :  { %28 = sbr.rel (!%p26_p9) target bundleno = 15 (0xf), region = 172 }
 0x63f   :  { %4268 = vsyncpa [#allocation6], 1 }
 0x640   :  { %4270 = vsyncpa [#allocation6 + $0x1], 1 }

</bundles_post_ra>
